<compile_context>
chip_gen: v7x
topology: tpu7x:2x2x1
jax: 0.10.0
libtpu: 0.0.40
codegen_flags: <defaults>
</compile_context>

<pallas_src>
import functools
import math

import jax
import jax.numpy as jnp
from jax import lax
from jax.experimental import pallas as pl
from jax.experimental.pallas import tpu as pltpu


def _round_up(x, m):
    return ((x + m - 1) // m) * m


def _pad_rows(x, n_rows):
    pad = n_rows - x.shape[0]
    if pad <= 0:
        return x
    return jnp.concatenate([x, jnp.zeros((pad,) + x.shape[1:], x.dtype)], axis=0)


# ----------------------------------------------------------------------------
# Fused CIAN forward kernel (single launch, everything VMEM resident).
#   ids_ref   : [R, 1]        int32 symbol ids; R = 2*t_pad*(1+M).
#                             Row order: entity rows (heads then tails, 2*t_pad),
#                             then all neighbor rows (row-major over [2*t_pad, M]).
#   embed_ref : [S_pad, E]    symbol embedding table (rows >= num_symbols are 0).
#   w_ref     : [2E, E]       stacked projection  vstack([W_self, W_ctx]).
#   b_ref     : [1, E]        projection bias.
#   out_ref   : [1, out_cols] lane-dense score slab; cols [0, qf_pad) are valid.
# Pair-row order: [queries(Q), false(F), pad, support(K), pad]  (length t_pad).
# ----------------------------------------------------------------------------
def _cian_kernel(ids_ref, embed_ref, w_ref, b_ref, out_ref, *,
                 t_pad, qf_pad, k, m, n_ent, out_cols):
    e = embed_ref.shape[1]
    s = embed_ref.shape[0]
    n_rows = ids_ref.shape[0]

    # ---- in-kernel embedding gather: one-hot MXU matmul ---------------------
    # Exact gather (one-hot rows select exactly one table row); kept in f32.
    ids = ids_ref[...]                                                    # [R, 1]
    iota = lax.broadcasted_iota(jnp.int32, (n_rows, s), 1)                # [R, S]
    onehot = (ids == iota).astype(jnp.float32)                            # [R, S]
    emb = jnp.dot(onehot, embed_ref[...],
                  preferred_element_type=jnp.float32)                     # [R, E]

    ent = emb[:n_ent]                                                     # [2T, E]
    nbr = emb[n_ent:].reshape(n_ent, m, e)                                # [2T, M, E]

    # ---- entity encoder: neighbor attention --------------------------------
    # scores[n, mm] = <nbr[n, mm, :], ent[n, :]> / sqrt(E)
    # TODO(synk): this batched [N,M,E]x[N,E] matvec has no clean 2-D MXU form;
    # at these sizes the VPU broadcast + lane reduce is kept on purpose.
    s_nbr = jnp.sum(nbr * ent[:, None, :], axis=-1) * (1.0 / math.sqrt(e))  # [2T, M]
    s_nbr = s_nbr - jnp.max(s_nbr, axis=-1, keepdims=True)
    p_nbr = jnp.exp(s_nbr)
    a_nbr = p_nbr * pl.reciprocal(jnp.sum(p_nbr, axis=-1, keepdims=True), approx=True)
    ctx = jnp.sum(a_nbr[:, :, None] * nbr, axis=1)                          # [2T, E]

    # ---- projection: ent @ W_self + ctx @ W_ctx + b (no lane-concat copy) ---
    # (On v6e/v7x a single fused 2E-contraction matches the 256-deep MXU; the
    #  split form is neutral there and strictly better on v5e.)
    w_self = w_ref[:e, :]
    w_ctx = w_ref[e:, :]
    rep = jnp.tanh(
        jnp.dot(ent, w_self, preferred_element_type=jnp.float32)
        + jnp.dot(ctx, w_ctx, preferred_element_type=jnp.float32)
        + b_ref[...])                                                       # [2T, E]

    # ---- SoftSelectPrototype + matching score (support-major layout) --------
    # Pair rep is head||tail; instead of materializing the [T, 2E] concat,
    # compute S^T = sup_h.qf_h^T + sup_t.qf_t^T (identical arithmetic).
    rep_h = rep[:t_pad]                                                     # heads
    rep_t = rep[t_pad:]                                                     # tails
    qf_h, qf_t = rep_h[:qf_pad], rep_t[:qf_pad]                             # [QF, E]
    sup_h, sup_t = rep_h[qf_pad:qf_pad + k], rep_t[qf_pad:qf_pad + k]       # [K, E]
    dn = (((1,), (1,)), ((), ()))                                           # contract last dims
    s_t = (lax.dot_general(sup_h, qf_h, dn, preferred_element_type=jnp.float32)
           + lax.dot_general(sup_t, qf_t, dn, preferred_element_type=jnp.float32))  # [K, QF]

    s_sh = s_t - jnp.max(s_t, axis=0, keepdims=True)
    p_sup = jnp.exp(s_sh)
    a_t = p_sup * pl.reciprocal(jnp.sum(p_sup, axis=0, keepdims=True), approx=True)
    # score[q] = <qf[q], proto[q]> = sum_k softmax_k(S)[q,k] * S[q,k]
    # (exact algebraic identity with proto = softmax(S) @ sup), written as one
    # lane-dense row via a sublane reduce.
    score_row = jnp.sum(a_t * s_t, axis=0, keepdims=True)                   # [1, QF]
    if out_cols > qf_pad:
        score_row = jnp.concatenate(
            [score_row, jnp.zeros((1, out_cols - qf_pad), jnp.float32)], axis=-1)
    out_ref[...] = score_row.astype(out_ref.dtype)


# ----------------------------------------------------------------------------
# JAX glue reproducing CIAN.forward with a single kernel launch.
# ----------------------------------------------------------------------------
def cian_forward(params, support, support_meta, query, query_meta,
                 false=None, false_meta=None, *, is_train=True):
    embed = params["embed"]                      # [S_pad, E]
    w_proj = params["w_proj"]                    # [2E, E]
    b = params["b"]                              # [1, E]
    e = embed.shape[1]
    s_pad = embed.shape[0]
    k = support.shape[0]
    q = query.shape[0]

    if is_train:
        f = false.shape[0]
        qf_pairs = jnp.concatenate([query, false], axis=0)
        qf_meta = jnp.concatenate([query_meta, false_meta], axis=0)
    else:
        f = 0
        qf_pairs = query
        qf_meta = query_meta

    qf = q + f
    qf_pad = _round_up(qf, 8)            # support block starts sublane-tile aligned
    t_pad = _round_up(qf_pad + k, 8)     # tail block starts sublane-tile aligned
    m = support_meta.shape[-1]
    n_ent = 2 * t_pad

    pairs = _pad_rows(jnp.concatenate([_pad_rows(qf_pairs, qf_pad), support], axis=0), t_pad)
    meta = _pad_rows(jnp.concatenate([_pad_rows(qf_meta, qf_pad), support_meta], axis=0), t_pad)

    # Symbol ids for the in-kernel gather: entity rows (heads, tails) first,
    # then all neighbor rows (row-major over [2T, M]).
    ent_ids = jnp.concatenate([pairs[:, 0], pairs[:, 1]], axis=0)            # [2T]
    nbr_ids = jnp.concatenate([meta[:, 0], meta[:, 1]], axis=0)              # [2T, M]
    ids_all = jnp.concatenate([ent_ids, nbr_ids.reshape(-1)], axis=0)
    ids_all = ids_all.astype(jnp.int32)[:, None]                             # [R, 1]
    n_rows = ids_all.shape[0]

    out_cols = max(128, _round_up(qf_pad, 128))  # lane-dense output slab

    flops = int(
        2 * n_rows * s_pad * e          # one-hot gather matmul
        + 4 * n_ent * m * e             # neighbor scores + weighted ctx sum
        + 4 * n_ent * e * e             # projection (two K=E matmuls)
        + 4 * k * qf_pad * e            # score matmuls
    )
    transcendentals = int(n_ent * m + k * qf_pad + n_ent * e + n_ent + qf_pad)
    bytes_accessed = int(4 * (ids_all.size + embed.size + w_proj.size + b.size + out_cols))

    kernel = functools.partial(
        _cian_kernel, t_pad=t_pad, qf_pad=qf_pad, k=k, m=m,
        n_ent=n_ent, out_cols=out_cols)

    scores = pl.pallas_call(
        kernel,
        out_shape=jax.ShapeDtypeStruct((1, out_cols), jnp.float32),
        in_specs=[pl.BlockSpec(memory_space=pltpu.MemorySpace.VMEM)] * 4,
        out_specs=pl.BlockSpec(memory_space=pltpu.MemorySpace.VMEM),
        compiler_params=pltpu.CompilerParams(vmem_limit_bytes=32 * 1024 * 1024),
        cost_estimate=pl.CostEstimate(flops=flops,
                                      transcendentals=transcendentals,
                                      bytes_accessed=bytes_accessed),
        # TODO(synk): for many few-shot tasks per step, add a leading grid axis
        # over tasks with per-task BlockSpecs and
        # dimension_semantics=("parallel",) so v7x's two TensorCores split the
        # grid and HBM<->VMEM is double-buffered; re-derive the nbr tile for
        # v7x's 64 MiB VMEM when scaling T or M.
    )(ids_all, embed, w_proj, b)

    positive_score = scores[0, :q]
    negative_score = scores[0, q:q + f] if is_train else None
    return positive_score, negative_score


def init_params(key, num_symbols, embedding_size):
    k1, k2, k3 = jax.random.split(key, 3)
    # Pad the symbol table to a multiple of 128 rows so the in-kernel one-hot
    # operand is lane-dense; padded rows are zero and never selected.
    s_pad = _round_up(max(num_symbols, 1), 128)
    embed_core = 0.1 * jax.random.normal(k1, (num_symbols, embedding_size), jnp.float32)
    embed = jnp.zeros((s_pad, embedding_size), jnp.float32).at[:num_symbols].set(embed_core)
    w_self = 0.1 * jax.random.normal(k2, (embedding_size, embedding_size), jnp.float32)
    w_ctx = 0.1 * jax.random.normal(k3, (embedding_size, embedding_size), jnp.float32)
    # Stack once; the kernel statically slices the two halves (no per-call copy).
    w_proj = jnp.concatenate([w_self, w_ctx], axis=0)            # [2E, E]
    b = jnp.zeros((1, embedding_size), jnp.float32)
    return {"embed": embed, "w_proj": w_proj, "b": b}


if __name__ == "__main__":
    key = jax.random.PRNGKey(0)
    num_symbols = 64
    embedding_size = 128     # pair representation dim D = 256 (keeps lane math aligned)
    K, Q, F, M = 4, 8, 8, 8  # support size, #queries, #false, #neighbors

    params = init_params(key, num_symbols, embedding_size)

    k_ids = jax.random.split(key, 6)
    support = jax.random.randint(k_ids[0], (K, 2), 0, num_symbols, jnp.int32)
    support_meta = jax.random.randint(k_ids[1], (K, 2, M), 0, num_symbols, jnp.int32)
    query = jax.random.randint(k_ids[2], (Q, 2), 0, num_symbols, jnp.int32)
    query_meta = jax.random.randint(k_ids[3], (Q, 2, M), 0, num_symbols, jnp.int32)
    false = jax.random.randint(k_ids[4], (F, 2), 0, num_symbols, jnp.int32)
    false_meta = jax.random.randint(k_ids[5], (F, 2, M), 0, num_symbols, jnp.int32)

    fwd = jax.jit(cian_forward, static_argnames=("is_train",))
    pos, neg = fwd(params, support, support_meta, query, query_meta,
                   false, false_meta, is_train=True)
    jax.block_until_ready(pos)
    jax.block_until_ready(neg)
    assert pos.shape == (Q,) and neg.shape == (F,)
    assert bool(jnp.all(jnp.isfinite(pos))) and bool(jnp.all(jnp.isfinite(neg)))

    # Eval path (no negatives) also goes through the same single-launch kernel.
    pos_eval, neg_eval = fwd(params, support, support_meta, query, query_meta,
                             None, None, is_train=False)
    jax.block_until_ready(pos_eval)
    assert pos_eval.shape == (Q,) and neg_eval is None
    assert bool(jnp.all(jnp.isfinite(pos_eval)))

    print("KERNEL_OK")
</pallas_src>

<mosaic_0001>
module attributes {stable_mosaic.version = 11 : i64} {
  func.func @_cian_kernel(%arg0: memref<432x1xi32, #tpu.memory_space<vmem>>, %arg1: memref<128x128xf32, #tpu.memory_space<vmem>>, %arg2: memref<256x128xf32, #tpu.memory_space<vmem>>, %arg3: memref<1x128xf32, #tpu.memory_space<vmem>>, %arg4: memref<1x128xf32, #tpu.memory_space<vmem>>) attributes {dimension_semantics = [], scalar_prefetch = 0 : i64, scratch_operands = 0 : i64, tpu.core_type = #tpu.core_type<tc>} {
    %c0 = arith.constant 0 : index
    %c0_0 = arith.constant 0 : index
    %0 = vector.load %arg0[%c0, %c0_0] : memref<432x1xi32, #tpu.memory_space<vmem>>, vector<432x1xi32>
    %1 = tpu.iota {dimensions = array<i32: 1>} : vector<432x128xi32>
    %2 = vector.broadcast %0 : vector<432x1xi32> to vector<432x128xi32>
    %3 = arith.cmpi eq, %2, %1 : vector<432x128xi32>
    %4 = arith.extui %3 : vector<432x128xi1> to vector<432x128xi32>
    %5 = arith.sitofp %4 : vector<432x128xi32> to vector<432x128xf32>
    %c0_1 = arith.constant 0 : index
    %c0_2 = arith.constant 0 : index
    %6 = vector.load %arg1[%c0_1, %c0_2] : memref<128x128xf32, #tpu.memory_space<vmem>>, vector<128x128xf32>
    %cst = arith.constant dense<0.000000e+00> : vector<432x128xf32>
    %7 = tpu.matmul %5, %6, %cst {dimension_numbers = #tpu.dot_dimension_numbers<[1], [0], [0], [1], [0, 0, 1, 1], [], []>} : vector<432x128xf32>, vector<128x128xf32>, vector<432x128xf32> -> vector<432x128xf32>
    %8 = vector.extract_strided_slice %7 {offsets = [0, 0], sizes = [48, 128], strides = [1, 1]} : vector<432x128xf32> to vector<48x128xf32>
    %9 = vector.extract_strided_slice %7 {offsets = [48, 0], sizes = [384, 128], strides = [1, 1]} : vector<432x128xf32> to vector<384x128xf32>
    %10 = vector.shape_cast %9 : vector<384x128xf32> to vector<48x8x128xf32>
    %11 = vector.shape_cast %8 : vector<48x128xf32> to vector<48x1x128xf32>
    %12 = vector.broadcast %11 : vector<48x1x128xf32> to vector<48x8x128xf32>
    %13 = arith.mulf %10, %12 : vector<48x8x128xf32>
    %cst_3 = arith.constant dense<0.000000e+00> : vector<48x8xf32>
    %14 = vector.multi_reduction <add>, %13, %cst_3 [2] : vector<48x8x128xf32> to vector<48x8xf32>
    %cst_4 = arith.constant 0.0883883461 : f32
    %15 = vector.broadcast %cst_4 : f32 to vector<48x8xf32>
    %16 = arith.mulf %14, %15 : vector<48x8xf32>
    %cst_5 = arith.constant dense<0xFF800000> : vector<48xf32>
    %17 = vector.multi_reduction <maximumf>, %16, %cst_5 [1] : vector<48x8xf32> to vector<48xf32>
    %18 = vector.shape_cast %17 : vector<48xf32> to vector<48x1xf32>
    %19 = vector.broadcast %18 : vector<48x1xf32> to vector<48x8xf32>
    %20 = arith.subf %16, %19 : vector<48x8xf32>
    %21 = math.exp %20 : vector<48x8xf32>
    %cst_6 = arith.constant dense<0.000000e+00> : vector<48xf32>
    %22 = vector.multi_reduction <add>, %21, %cst_6 [1] : vector<48x8xf32> to vector<48xf32>
    %23 = vector.shape_cast %22 : vector<48xf32> to vector<48x1xf32>
    %24 = tpu.reciprocal %23 {approx = true} : vector<48x1xf32> -> vector<48x1xf32>
    %25 = vector.broadcast %24 : vector<48x1xf32> to vector<48x8xf32>
    %26 = arith.mulf %21, %25 : vector<48x8xf32>
    %27 = vector.shape_cast %26 : vector<48x8xf32> to vector<48x8x1xf32>
    %28 = vector.broadcast %27 : vector<48x8x1xf32> to vector<48x8x128xf32>
    %29 = arith.mulf %28, %10 : vector<48x8x128xf32>
    %cst_7 = arith.constant dense<0.000000e+00> : vector<48x128xf32>
    %30 = vector.multi_reduction <add>, %29, %cst_7 [1] : vector<48x8x128xf32> to vector<48x128xf32>
    %c0_8 = arith.constant 0 : index
    %c0_9 = arith.constant 0 : index
    %31 = vector.load %arg2[%c0_8, %c0_9] : memref<256x128xf32, #tpu.memory_space<vmem>>, vector<128x128xf32>
    %c128 = arith.constant 128 : index
    %c0_10 = arith.constant 0 : index
    %32 = vector.load %arg2[%c128, %c0_10] : memref<256x128xf32, #tpu.memory_space<vmem>>, vector<128x128xf32>
    %cst_11 = arith.constant dense<0.000000e+00> : vector<48x128xf32>
    %33 = tpu.matmul %8, %31, %cst_11 {dimension_numbers = #tpu.dot_dimension_numbers<[1], [0], [0], [1], [0, 0, 1, 1], [], []>} : vector<48x128xf32>, vector<128x128xf32>, vector<48x128xf32> -> vector<48x128xf32>
    %cst_12 = arith.constant dense<0.000000e+00> : vector<48x128xf32>
    %34 = tpu.matmul %30, %32, %cst_12 {dimension_numbers = #tpu.dot_dimension_numbers<[1], [0], [0], [1], [0, 0, 1, 1], [], []>} : vector<48x128xf32>, vector<128x128xf32>, vector<48x128xf32> -> vector<48x128xf32>
    %35 = arith.addf %33, %34 : vector<48x128xf32>
    %c0_13 = arith.constant 0 : index
    %c0_14 = arith.constant 0 : index
    %36 = vector.load %arg3[%c0_13, %c0_14] : memref<1x128xf32, #tpu.memory_space<vmem>>, vector<1x128xf32>
    %37 = vector.broadcast %36 : vector<1x128xf32> to vector<48x128xf32>
    %38 = arith.addf %35, %37 : vector<48x128xf32>
    %39 = math.tanh %38 : vector<48x128xf32>
    %40 = vector.extract_strided_slice %39 {offsets = [0, 0], sizes = [24, 128], strides = [1, 1]} : vector<48x128xf32> to vector<24x128xf32>
    %41 = vector.extract_strided_slice %39 {offsets = [24, 0], sizes = [24, 128], strides = [1, 1]} : vector<48x128xf32> to vector<24x128xf32>
    %42 = vector.extract_strided_slice %40 {offsets = [0, 0], sizes = [16, 128], strides = [1, 1]} : vector<24x128xf32> to vector<16x128xf32>
    %43 = vector.extract_strided_slice %41 {offsets = [0, 0], sizes = [16, 128], strides = [1, 1]} : vector<24x128xf32> to vector<16x128xf32>
    %44 = vector.extract_strided_slice %40 {offsets = [16, 0], sizes = [4, 128], strides = [1, 1]} : vector<24x128xf32> to vector<4x128xf32>
    %45 = vector.extract_strided_slice %41 {offsets = [16, 0], sizes = [4, 128], strides = [1, 1]} : vector<24x128xf32> to vector<4x128xf32>
    %cst_15 = arith.constant dense<0.000000e+00> : vector<4x16xf32>
    %46 = tpu.matmul %44, %42, %cst_15 {dimension_numbers = #tpu.dot_dimension_numbers<[1], [1], [0], [0], [0, 0, 1, 0], [], []>} : vector<4x128xf32>, vector<16x128xf32>, vector<4x16xf32> -> vector<4x16xf32>
    %cst_16 = arith.constant dense<0.000000e+00> : vector<4x16xf32>
    %47 = tpu.matmul %45, %43, %cst_16 {dimension_numbers = #tpu.dot_dimension_numbers<[1], [1], [0], [0], [0, 0, 1, 0], [], []>} : vector<4x128xf32>, vector<16x128xf32>, vector<4x16xf32> -> vector<4x16xf32>
    %48 = arith.addf %46, %47 : vector<4x16xf32>
    %cst_17 = arith.constant dense<0xFF800000> : vector<16xf32>
    %49 = vector.multi_reduction <maximumf>, %48, %cst_17 [0] : vector<4x16xf32> to vector<16xf32>
    %50 = vector.shape_cast %49 : vector<16xf32> to vector<1x16xf32>
    %51 = vector.broadcast %50 : vector<1x16xf32> to vector<4x16xf32>
    %52 = arith.subf %48, %51 : vector<4x16xf32>
    %53 = math.exp %52 : vector<4x16xf32>
    %cst_18 = arith.constant dense<0.000000e+00> : vector<16xf32>
    %54 = vector.multi_reduction <add>, %53, %cst_18 [0] : vector<4x16xf32> to vector<16xf32>
    %55 = vector.shape_cast %54 : vector<16xf32> to vector<1x16xf32>
    %56 = tpu.reciprocal %55 {approx = true} : vector<1x16xf32> -> vector<1x16xf32>
    %57 = vector.broadcast %56 : vector<1x16xf32> to vector<4x16xf32>
    %58 = arith.mulf %53, %57 : vector<4x16xf32>
    %59 = arith.mulf %58, %48 : vector<4x16xf32>
    %cst_19 = arith.constant dense<0.000000e+00> : vector<16xf32>
    %60 = vector.multi_reduction <add>, %59, %cst_19 [0] : vector<4x16xf32> to vector<16xf32>
    %61 = vector.shape_cast %60 : vector<16xf32> to vector<1x16xf32>
    %cst_20 = arith.constant 0.000000e+00 : f32
    %62 = vector.broadcast %cst_20 : f32 to vector<1x112xf32>
    %63 = tpu.concatenate %61, %62 in 1 : vector<1x16xf32>, vector<1x112xf32> -> vector<1x128xf32>
    %c0_21 = arith.constant 0 : index
    %c0_22 = arith.constant 0 : index
    %64 = vector.load %arg4[%c0_21, %c0_22] : memref<1x128xf32, #tpu.memory_space<vmem>>, vector<1x128xf32>
    tpu.vector_store %arg4[%c0_21, %c0_22], %63 {strides = array<i32>} : memref<1x128xf32, #tpu.memory_space<vmem>>, vector<1x128xf32>,
    return
  }
}

</mosaic_0001>

<bundles_post_ra>
// kernel: cian_forward.1
= control target key start
LH: loop header
LB: loop body
LE: loop exit
PB: predicated region body
PF: predicated region fallthrough
CT: control target
= control target key end

     0   :  { %v4702_v0 = vmov 0   ;;  %s6347_s0 = inlined_call_operand.vmem [shape: s32[432,1], index: 0, kind: input, shape index: {}]   ;;  %s6348_s1 = inlined_call_operand.vmem [shape: f32[128,128], index: 1, kind: input, shape index: {}]   ;;  %s6349_s2 = inlined_call_operand.vmem [shape: f32[256,128], index: 2, kind: input, shape index: {}]   ;;  %s6350_s3 = inlined_call_operand.vmem [shape: f32[1,128], index: 3, kind: input, shape index: {}]   ;;  %s6351_s4 = inlined_call_operand.vmem [shape: f32[1,128], index: 4, kind: output, shape index: {}]  }
   0x1   :  { %4577 = vset.pattern.permute.xlu1 %v4702_v0  ;;  %4576 = vset.pattern.permute.xlu0 %v4702_v0  ;;  %v19_v1 = vld [vmem:[%s6347_s0 + $0x10] sm:$0xff]  ;;  %v17_v2 = vld [vmem:[%s6347_s0] sm:$0xff]  ;;  %v20_v3 = vld [vmem:[%s6347_s0 + $0x18] sm:$0xff] }
   0x2   :  { %80 = vperm.xlu1 %4577, %v19_v1   ;;  %74 = vperm.xlu0 %4576, %v17_v2   ;;  %v18_v4 = vld [vmem:[%s6347_s0 + $0x8] sm:$0xff]  ;;  %v21_v6 = vld [vmem:[%s6347_s0 + $0x20] sm:$0xff]  ;;  %v24_v7 = vld [vmem:[%s6347_s0 + $0x38] sm:$0xff] }
   0x3   :  { %v22_v5 = vld [vmem:[%s6347_s0 + $0x28] sm:$0xff]  ;;  %v23_v8 = vld [vmem:[%s6347_s0 + $0x30] sm:$0xff]  ;;  %v25_v10 = vld [vmem:[%s6347_s0 + $0x40] sm:$0xff] }
   0x4   :  { %v26_v9 = vld [vmem:[%s6347_s0 + $0x48] sm:$0xff]  ;;  %v397_v11 = vld [vmem:[%s6348_s1] sm:$0xff]  ;;  %v28_v13 = vld [vmem:[%s6347_s0 + $0x58] sm:$0xff] }
   0x5   :  { %v398_v12 = vld [vmem:[%s6348_s1 + $0x8] sm:$0xff]  ;;  %v27_v14 = vld [vmem:[%s6347_s0 + $0x50] sm:$0xff]  ;;  %v400_v17 = vld [vmem:[%s6348_s1 + $0x18] sm:$0xff] }
   0x6   :  { %83 = vperm.xlu1 %4577, %v20_v3   ;;  %77 = vperm.xlu0 %4576, %v18_v4   ;;  %v4460_v15 = vpack.c.bf16 %v398_v12, %v397_v11  ;;  %v399_v16 = vld [vmem:[%s6348_s1 + $0x10] sm:$0xff]  ;;  %v401_v19 = vld [vmem:[%s6348_s1 + $0x20] sm:$0xff]  ;;  %v402_v20 = vld [vmem:[%s6348_s1 + $0x28] sm:$0xff] }
   0x7   :  { %v4464_v18 = vpack.c.bf16 %v400_v17, %v399_v16  ;;  %v30_v21 = vld [vmem:[%s6347_s0 + $0x68] sm:$0xff]  ;;  %v29_v22 = vld [vmem:[%s6347_s0 + $0x60] sm:$0xff]  ;;  %v4468_v23 = vpack.c.bf16 %v402_v20, %v401_v19  ;;  %v403_v24 = vld [vmem:[%s6348_s1 + $0x30] sm:$0xff]  ;;  %v4703_v19 = vmov 1.0  }
   0x8   :  { %4461 = vmatprep.subr.bf16.mxu0 %v4460_v15  ;;  %v404_v25 = vld [vmem:[%s6348_s1 + $0x38] sm:$0xff]  ;;  %v31_v27 = vld [vmem:[%s6347_s0 + $0x70] sm:$0xff]  ;;  %v405_v29 = vld [vmem:[%s6348_s1 + $0x40] sm:$0xff] }
   0x9   :  { %4463 = vmatpush3.bf16.msra.mxu0 %v4460_v15  ;;  %v32_v26 = vld [vmem:[%s6347_s0 + $0x78] sm:$0xff]  ;;  %v4472_v28 = vpack.c.bf16 %v404_v25, %v403_v24  ;;  %v406_v30 = vld [vmem:[%s6348_s1 + $0x48] sm:$0xff]  ;;  %v33_v32 = vld [vmem:[%s6347_s0 + $0x80] sm:$0xff]  ;;  %v71_v15 = vlaneseq }
   0xa   :  { %89 = vperm.xlu1 %4577, %v22_v5   ;;  %86 = vperm.xlu0 %4576, %v21_v6   ;;  %v34_v31 = vld [vmem:[%s6347_s0 + $0x88] sm:$0xff]  ;;  %v4476_v33 = vpack.c.bf16 %v406_v30, %v405_v29  ;;  %v407_v34 = vld [vmem:[%s6348_s1 + $0x50] sm:$0xff]  ;;  %v408_v35 = vld [vmem:[%s6348_s1 + $0x58] sm:$0xff] }
   0xb   :  { %4465 = vmatprep.subr.bf16.mxu0 %v4464_v18  ;;  %v36_v36 = vld [vmem:[%s6347_s0 + $0x98] sm:$0xff]  ;;  %v35_v37 = vld [vmem:[%s6347_s0 + $0x90] sm:$0xff]  ;;  %v4480_v38 = vpack.c.bf16 %v408_v35, %v407_v34  ;;  %v409_v39 = vld [vmem:[%s6348_s1 + $0x60] sm:$0xff]  ;;  %v4944_v16 = vand.u32 127, %v71_v15 }
   0xc   :  { %v410_v40 = vld [vmem:[%s6348_s1 + $0x68] sm:$0xff]  ;;  %v37_v42 = vld [vmem:[%s6347_s0 + $0xa0] sm:$0xff]  ;;  %v411_v44 = vld [vmem:[%s6348_s1 + $0x70] sm:$0xff] }
   0xd   :  { %4467 = vmatpush3.bf16.msra.mxu0 %v4464_v18  ;;  %v38_v41 = vld [vmem:[%s6347_s0 + $0xa8] sm:$0xff]  ;;  %v4484_v43 = vpack.c.bf16 %v410_v40, %v409_v39  ;;  %v412_v45 = vld [vmem:[%s6348_s1 + $0x78] sm:$0xff]  ;;  %v39_v47 = vld [vmem:[%s6347_s0 + $0xb0] sm:$0xff] }
   0xe   :  { %95 = vperm.xlu1 %4577, %v24_v7   ;;  %92 = vperm.xlu0 %4576, %v23_v8   ;;  %v40_v46 = vld [vmem:[%s6347_s0 + $0xb8] sm:$0xff]  ;;  %v4488_v48 = vpack.c.bf16 %v412_v45, %v411_v44  ;;  %v42_v49 = vld [vmem:[%s6347_s0 + $0xc8] sm:$0xff]  ;;  %v41_v50 = vld [vmem:[%s6347_s0 + $0xc0] sm:$0xff] }
   0xf   :  { %4469 = vmatprep.subr.bf16.mxu0 %v4468_v23  ;;  %v44_v51 = vld [vmem:[%s6347_s0 + $0xd8] sm:$0xff]  ;;  %v43_v52 = vld [vmem:[%s6347_s0 + $0xd0] sm:$0xff]  ;;  %v46_v53 = vld [vmem:[%s6347_s0 + $0xe8] sm:$0xff] }
  0x10   :  { %v45_v54 = vld [vmem:[%s6347_s0 + $0xe0] sm:$0xff]  ;;  %v48_v55 = vld [vmem:[%s6347_s0 + $0xf8] sm:$0xff]  ;;  %v47_v56 = vld [vmem:[%s6347_s0 + $0xf0] sm:$0xff] }
  0x11   :  { %4471 = vmatpush3.bf16.msra.mxu0 %v4468_v23  ;;  %v50_v57 = vld [vmem:[%s6347_s0 + $0x108] sm:$0xff]  ;;  %v49_v58 = vld [vmem:[%s6347_s0 + $0x100] sm:$0xff]  ;;  %v52_v59 = vld [vmem:[%s6347_s0 + $0x118] sm:$0xff] }
  0x12   :  { %101 = vperm.xlu1 %4577, %v26_v9   ;;  %98 = vperm.xlu0 %4576, %v25_v10   ;;  %v51_v60 = vld [vmem:[%s6347_s0 + $0x110] sm:$0xff]  ;;  %v54_v61 = vld [vmem:[%s6347_s0 + $0x128] sm:$0xff]  ;;  %v53_v62 = vld [vmem:[%s6347_s0 + $0x120] sm:$0xff] }
  0x13   :  { %4473 = vmatprep.subr.bf16.mxu0 %v4472_v28  ;;  %v56_v63 = vld [vmem:[%s6347_s0 + $0x138] sm:$0xff]  ;;  %v55_v0 = vld [vmem:[%s6347_s0 + $0x130] sm:$0xff]  ;;  %v58_v1 = vld [vmem:[%s6347_s0 + $0x148] sm:$0xff] }
  0x14   :  { %v57_v2 = vld [vmem:[%s6347_s0 + $0x140] sm:$0xff]  ;;  %v60_v3 = vld [vmem:[%s6347_s0 + $0x158] sm:$0xff]  ;;  %v59_v4 = vld [vmem:[%s6347_s0 + $0x150] sm:$0xff] }
  0x15   :  { %4475 = vmatpush3.bf16.msra.mxu0 %v4472_v28  ;;  %v62_v5 = vld [vmem:[%s6347_s0 + $0x168] sm:$0xff]  ;;  %v61_v6 = vld [vmem:[%s6347_s0 + $0x160] sm:$0xff]  ;;  %v64_v7 = vld [vmem:[%s6347_s0 + $0x178] sm:$0xff] }
  0x16   :  { %107 = vperm.xlu1 %4577, %v28_v13   ;;  %104 = vperm.xlu0 %4576, %v27_v14   ;;  %v63_v8 = vld [vmem:[%s6347_s0 + $0x170] sm:$0xff]  ;;  %v66_v9 = vld [vmem:[%s6347_s0 + $0x188] sm:$0xff]  ;;  %v65_v10 = vld [vmem:[%s6347_s0 + $0x180] sm:$0xff] }
  0x17   :  { %4477 = vmatprep.subr.bf16.mxu0 %v4476_v33  ;;  %v68_v11 = vld [vmem:[%s6347_s0 + $0x198] sm:$0xff]  ;;  %v67_v12 = vld [vmem:[%s6347_s0 + $0x190] sm:$0xff]  ;;  %v70_v13 = vld [vmem:[%s6347_s0 + $0x1a8] sm:$0xff] }
  0x18   :  { %v69_v14 = vld [vmem:[%s6347_s0 + $0x1a0] sm:$0xff] }
  0x19   :  { %4479 = vmatpush3.bf16.msra.mxu0 %v4476_v33 }
  0x1a   :  { %113 = vperm.xlu1 %4577, %v30_v21   ;;  %110 = vperm.xlu0 %4576, %v29_v22  }
  0x1b   :  { %4481 = vmatprep.subr.bf16.mxu0 %v4480_v38 }
  0x1d   :  { %4483 = vmatpush3.bf16.msra.mxu0 %v4480_v38 }
  0x1e   :  { %119 = vperm.xlu1 %4577, %v32_v26   ;;  %116 = vperm.xlu0 %4576, %v31_v27  }
  0x1f   :  { %4485 = vmatprep.subr.bf16.mxu0 %v4484_v43 }
  0x21   :  { %4487 = vmatpush3.bf16.msra.mxu0 %v4484_v43 }
  0x22   :  { %125 = vperm.xlu1 %4577, %v34_v31   ;;  %122 = vperm.xlu0 %4576, %v33_v32  }
  0x23   :  { %4489 = vmatprep.subr.bf16.mxu0 %v4488_v48 }
  0x25   :  { %4491 = vmatpush3.bf16.msra.mxu0 %v4488_v48 }
  0x26   :  { %131 = vperm.xlu1 %4577, %v36_v36   ;;  %128 = vperm.xlu0 %4576, %v35_v37  }
  0x2a   :  { %137 = vperm.xlu1 %4577, %v38_v41   ;;  %134 = vperm.xlu0 %4576, %v37_v42  }
  0x2e   :  { %143 = vperm.xlu1 %4577, %v40_v46   ;;  %140 = vperm.xlu0 %4576, %v39_v47  }
  0x32   :  { %149 = vperm.xlu1 %4577, %v42_v49   ;;  %146 = vperm.xlu0 %4576, %v41_v50  }
  0x36   :  { %155 = vperm.xlu1 %4577, %v44_v51   ;;  %152 = vperm.xlu0 %4576, %v43_v52  }
  0x3a   :  { %161 = vperm.xlu1 %4577, %v46_v53   ;;  %158 = vperm.xlu0 %4576, %v45_v54  }
  0x3e   :  { %167 = vperm.xlu1 %4577, %v48_v55   ;;  %164 = vperm.xlu0 %4576, %v47_v56  }
  0x42   :  { %173 = vperm.xlu1 %4577, %v50_v57   ;;  %170 = vperm.xlu0 %4576, %v49_v58  }
  0x46   :  { %179 = vperm.xlu1 %4577, %v52_v59   ;;  %176 = vperm.xlu0 %4576, %v51_v60  }
  0x4a   :  { %185 = vperm.xlu1 %4577, %v54_v61   ;;  %182 = vperm.xlu0 %4576, %v53_v62  }
  0x4e   :  { %191 = vperm.xlu1 %4577, %v56_v63   ;;  %188 = vperm.xlu0 %4576, %v55_v0  }
  0x52   :  { %197 = vperm.xlu1 %4577, %v58_v1   ;;  %194 = vperm.xlu0 %4576, %v57_v2  }
  0x56   :  { %203 = vperm.xlu1 %4577, %v60_v3   ;;  %200 = vperm.xlu0 %4576, %v59_v4  }
  0x5a   :  { %209 = vperm.xlu1 %4577, %v62_v5   ;;  %206 = vperm.xlu0 %4576, %v61_v6  }
  0x5e   :  { %215 = vperm.xlu1 %4577, %v64_v7   ;;  %212 = vperm.xlu0 %4576, %v63_v8   ;;  %v4704_v8 = vmov 1966171168  }
  0x62   :  { %221 = vperm.xlu1 %4577, %v66_v9   ;;  %218 = vperm.xlu0 %4576, %v65_v10   ;;  %v756_v9 = vunpack.c.l.s4 %v4704_v8 }
  0x64   :  { %v757_v10 = vunpack.c.0.s8 %v756_v9 }
  0x66   :  { %227 = vperm.xlu1 %4577, %v68_v11   ;;  %224 = vperm.xlu0 %4576, %v67_v12   ;;  %v5055_v11 = vshrl.u32 %v71_v15, 7 }
  0x68   :  { %v5058_v12 = vsub.s32 %v757_v10, %v5055_v11 }
  0x6a   :  { %233 = vperm.xlu1 %4577, %v70_v13   ;;  %230 = vperm.xlu0 %4576, %v69_v14  }
  0x81   :  { %v81_v17 = vpop.permute.xlu1 %80  ;;  %v75_v18 = vpop.permute.xlu0 %74 }
  0x82   :  { %vm235_vm0 = vcmp.eq.s32.totalorder %v75_v18, %v4944_v16  ;;  %vm237_vm1 = vcmp.eq.s32.totalorder %v81_v17, %v4944_v16 }
  0x83   :  { %4283 = vmatprep.mubr.msk.f32.mxu0 %vm235_vm0, %v4703_v19 }
  0x85   :  { %v84_v20 = vpop.permute.xlu1 %83  ;;  %v78_v21 = vpop.permute.xlu0 %77 }
  0x86   :  { %vm236_vm2 = vcmp.eq.s32.totalorder %v78_v21, %v4944_v16  ;;  %vm238_vm3 = vcmp.eq.s32.totalorder %v84_v20, %v4944_v16 }
  0x87   :  { %4284 = vmatmul.mubr.msk.f32.vlgmr.msra.gmra.mrb[0].mxu0 %vm236_vm2, %v4703_v19 }
  0x88   :  { %4286 = vmatprep.mubr.msk.f32.mxu0 %vm237_vm1, %v4703_v19 }
  0x89   :  { %v90_v22 = vpop.permute.xlu1 %89  ;;  %v87_v23 = vpop.permute.xlu0 %86 }
  0x8a   :  { %vm239_vm4 = vcmp.eq.s32.totalorder %v87_v23, %v4944_v16  ;;  %vm240_vm5 = vcmp.eq.s32.totalorder %v90_v22, %v4944_v16 }
  0x8b   :  { %4287 = vmatmul.mubr.msk.f32.gmra.mrb[2].mxu0 %vm238_vm3, %v4703_v19 }
  0x8c   :  { %4289 = vmatprep.mubr.msk.f32.mxu0 %vm239_vm4, %v4703_v19 }
  0x8d   :  { %v96_v24 = vpop.permute.xlu1 %95  ;;  %v93_v25 = vpop.permute.xlu0 %92 }
  0x8e   :  { %vm241_vm6 = vcmp.eq.s32.totalorder %v93_v25, %v4944_v16  ;;  %vm242_vm7 = vcmp.eq.s32.totalorder %v96_v24, %v4944_v16  ;;  %v5077_v24 = vsub.s32 0, %v5055_v11 }
  0x8f   :  { %4290 = vmatmul.mubr.msk.f32.gmra.mrb[4].mxu0 %vm240_vm5, %v4703_v19 }
  0x90   :  { %4292 = vmatprep.mubr.msk.f32.mxu0 %vm241_vm6, %v4703_v19 }
  0x91   :  { %v102_v26 = vpop.permute.xlu1 %101  ;;  %v99_v27 = vpop.permute.xlu0 %98 }
  0x92   :  { %vm243_vm8 = vcmp.eq.s32.totalorder %v99_v27, %v4944_v16  ;;  %vm244_vm9 = vcmp.eq.s32.totalorder %v102_v26, %v4944_v16 }
  0x93   :  { %4293 = vmatmul.mubr.msk.f32.gmra.mrb[6].mxu0 %vm242_vm7, %v4703_v19 }
  0x94   :  { %4295 = vmatprep.mubr.msk.f32.mxu0 %vm243_vm8, %v4703_v19 }
  0x95   :  { %v108_v28 = vpop.permute.xlu1 %107  ;;  %v105_v29 = vpop.permute.xlu0 %104 }
  0x96   :  { %vm245_vm10 = vcmp.eq.s32.totalorder %v105_v29, %v4944_v16  ;;  %vm246_vm11 = vcmp.eq.s32.totalorder %v108_v28, %v4944_v16 }
  0x97   :  { %4296 = vmatmul.mubr.msk.f32.gmra.mrb[8].mxu0 %vm244_vm9, %v4703_v19 }
  0x98   :  { %4298 = vmatprep.mubr.msk.f32.mxu0 %vm245_vm10, %v4703_v19 }
  0x99   :  { %v114_v30 = vpop.permute.xlu1 %113  ;;  %v111_v31 = vpop.permute.xlu0 %110 }
  0x9a   :  { %vm247_vm12 = vcmp.eq.s32.totalorder %v111_v31, %v4944_v16  ;;  %vm248_vm13 = vcmp.eq.s32.totalorder %v114_v30, %v4944_v16 }
  0x9b   :  { %4299 = vmatmul.mubr.msk.f32.gmra.mrb[10].mxu0 %vm246_vm11, %v4703_v19 }
  0x9c   :  { %4301 = vmatprep.mubr.msk.f32.mxu0 %vm247_vm12, %v4703_v19 }
  0x9d   :  { %v120_v32 = vpop.permute.xlu1 %119  ;;  %v117_v33 = vpop.permute.xlu0 %116 }
  0x9e   :  { %vm249_vm14 = vcmp.eq.s32.totalorder %v117_v33, %v4944_v16  ;;  %vm250_vm15 = vcmp.eq.s32.totalorder %v120_v32, %v4944_v16 }
  0x9f   :  { %4302 = vmatmul.mubr.msk.f32.gmra.mrb[12].mxu0 %vm248_vm13, %v4703_v19 }
  0xa0   :  { %4304 = vmatprep.mubr.msk.f32.mxu0 %vm249_vm14, %v4703_v19 }
  0xa1   :  { %v126_v34 = vpop.permute.xlu1 %125  ;;  %v123_v35 = vpop.permute.xlu0 %122 }
  0xa2   :  { %vm251_vm0 = vcmp.eq.s32.totalorder %v123_v35, %v4944_v16  ;;  %vm252_vm1 = vcmp.eq.s32.totalorder %v126_v34, %v4944_v16 }
  0xa3   :  { %4305 = vmatmul.mubr.msk.f32.gmra.mrb[14].mxu0 %vm250_vm15, %v4703_v19 }
  0xa4   :  { %4307 = vmatprep.mubr.msk.f32.mxu0 %vm251_vm0, %v4703_v19 }
  0xa5   :  { %v132_v36 = vpop.permute.xlu1 %131  ;;  %v129_v37 = vpop.permute.xlu0 %128 }
  0xa6   :  { %vm253_vm2 = vcmp.eq.s32.totalorder %v129_v37, %v4944_v16  ;;  %vm254_vm3 = vcmp.eq.s32.totalorder %v132_v36, %v4944_v16 }
  0xa7   :  { %4308 = vmatmul.mubr.msk.f32.gmra.mrb[16].mxu0 %vm252_vm1, %v4703_v19 }
  0xa8   :  { %4310 = vmatprep.mubr.msk.f32.mxu0 %vm253_vm2, %v4703_v19 }
  0xa9   :  { %v138_v38 = vpop.permute.xlu1 %137  ;;  %v135_v39 = vpop.permute.xlu0 %134 }
  0xaa   :  { %vm255_vm4 = vcmp.eq.s32.totalorder %v135_v39, %v4944_v16  ;;  %vm256_vm5 = vcmp.eq.s32.totalorder %v138_v38, %v4944_v16 }
  0xab   :  { %4311 = vmatmul.mubr.msk.f32.gmra.mrb[18].mxu0 %vm254_vm3, %v4703_v19 }
  0xac   :  { %4313 = vmatprep.mubr.msk.f32.mxu0 %vm255_vm4, %v4703_v19 }
  0xad   :  { %v144_v40 = vpop.permute.xlu1 %143  ;;  %v141_v41 = vpop.permute.xlu0 %140 }
  0xae   :  { %vm257_vm6 = vcmp.eq.s32.totalorder %v141_v41, %v4944_v16  ;;  %vm258_vm7 = vcmp.eq.s32.totalorder %v144_v40, %v4944_v16 }
  0xaf   :  { %4314 = vmatmul.mubr.msk.f32.gmra.mrb[20].mxu0 %vm256_vm5, %v4703_v19 }
  0xb0   :  { %4316 = vmatprep.mubr.msk.f32.mxu0 %vm257_vm6, %v4703_v19 }
  0xb1   :  { %v150_v42 = vpop.permute.xlu1 %149  ;;  %v147_v43 = vpop.permute.xlu0 %146 }
  0xb2   :  { %vm259_vm8 = vcmp.eq.s32.totalorder %v147_v43, %v4944_v16  ;;  %vm260_vm9 = vcmp.eq.s32.totalorder %v150_v42, %v4944_v16 }
  0xb3   :  { %4317 = vmatmul.mubr.msk.f32.gmra.mrb[22].mxu0 %vm258_vm7, %v4703_v19 }
  0xb4   :  { %4319 = vmatprep.mubr.msk.f32.mxu0 %vm259_vm8, %v4703_v19 }
  0xb5   :  { %v156_v44 = vpop.permute.xlu1 %155  ;;  %v153_v45 = vpop.permute.xlu0 %152 }
  0xb6   :  { %vm261_vm10 = vcmp.eq.s32.totalorder %v153_v45, %v4944_v16  ;;  %vm262_vm11 = vcmp.eq.s32.totalorder %v156_v44, %v4944_v16 }
  0xb7   :  { %4320 = vmatmul.mubr.msk.f32.gmra.mrb[24].mxu0 %vm260_vm9, %v4703_v19 }
  0xb8   :  { %4322 = vmatprep.mubr.msk.f32.mxu0 %vm261_vm10, %v4703_v19 }
  0xb9   :  { %v162_v46 = vpop.permute.xlu1 %161  ;;  %v159_v47 = vpop.permute.xlu0 %158 }
  0xba   :  { %vm263_vm12 = vcmp.eq.s32.totalorder %v159_v47, %v4944_v16  ;;  %vm264_vm13 = vcmp.eq.s32.totalorder %v162_v46, %v4944_v16 }
  0xbb   :  { %4323 = vmatmul.mubr.msk.f32.gmra.mrb[26].mxu0 %vm262_vm11, %v4703_v19 }
  0xbc   :  { %4325 = vmatprep.mubr.msk.f32.mxu0 %vm263_vm12, %v4703_v19 }
  0xbd   :  { %v168_v48 = vpop.permute.xlu1 %167  ;;  %v165_v49 = vpop.permute.xlu0 %164 }
  0xbe   :  { %vm265_vm14 = vcmp.eq.s32.totalorder %v165_v49, %v4944_v16  ;;  %vm266_vm15 = vcmp.eq.s32.totalorder %v168_v48, %v4944_v16 }
  0xbf   :  { %4326 = vmatmul.mubr.msk.f32.gmra.mrb[28].mxu0 %vm264_vm13, %v4703_v19 }
  0xc0   :  { %4328 = vmatprep.mubr.msk.f32.mxu0 %vm265_vm14, %v4703_v19 }
  0xc1   :  { %v174_v50 = vpop.permute.xlu1 %173  ;;  %v171_v51 = vpop.permute.xlu0 %170 }
  0xc2   :  { %vm267_vm0 = vcmp.eq.s32.totalorder %v171_v51, %v4944_v16  ;;  %vm268_vm1 = vcmp.eq.s32.totalorder %v174_v50, %v4944_v16 }
  0xc3   :  { %4329 = vmatmul.mubr.msk.f32.gmra.mrb[30].mxu0 %vm266_vm15, %v4703_v19 }
  0xc4   :  { %4331 = vmatprep.mubr.msk.f32.mxu0 %vm267_vm0, %v4703_v19 }
  0xc5   :  { %v180_v52 = vpop.permute.xlu1 %179  ;;  %v177_v53 = vpop.permute.xlu0 %176 }
  0xc6   :  { %vm269_vm2 = vcmp.eq.s32.totalorder %v177_v53, %v4944_v16  ;;  %vm270_vm3 = vcmp.eq.s32.totalorder %v180_v52, %v4944_v16 }
  0xc7   :  { %4332 = vmatmul.mubr.msk.f32.gmra.mrb[32].mxu0 %vm268_vm1, %v4703_v19 }
  0xc8   :  { %4334 = vmatprep.mubr.msk.f32.mxu0 %vm269_vm2, %v4703_v19 }
  0xc9   :  { %v186_v54 = vpop.permute.xlu1 %185  ;;  %v183_v55 = vpop.permute.xlu0 %182 }
  0xca   :  { %vm271_vm4 = vcmp.eq.s32.totalorder %v183_v55, %v4944_v16  ;;  %vm272_vm5 = vcmp.eq.s32.totalorder %v186_v54, %v4944_v16 }
  0xcb   :  { %4335 = vmatmul.mubr.msk.f32.gmra.mrb[34].mxu0 %vm270_vm3, %v4703_v19 }
  0xcc   :  { %4337 = vmatprep.mubr.msk.f32.mxu0 %vm271_vm4, %v4703_v19 }
  0xcd   :  { %v192_v56 = vpop.permute.xlu1 %191  ;;  %v189_v57 = vpop.permute.xlu0 %188 }
  0xce   :  { %vm273_vm6 = vcmp.eq.s32.totalorder %v189_v57, %v4944_v16  ;;  %vm274_vm7 = vcmp.eq.s32.totalorder %v192_v56, %v4944_v16 }
  0xcf   :  { %4338 = vmatmul.mubr.msk.f32.gmra.mrb[36].mxu0 %vm272_vm5, %v4703_v19 }
  0xd0   :  { %4340 = vmatprep.mubr.msk.f32.mxu0 %vm273_vm6, %v4703_v19  ;;  %vm1720_vm6 = vcmask 1041409  }
  0xd1   :  { %v198_v58 = vpop.permute.xlu1 %197  ;;  %v195_v59 = vpop.permute.xlu0 %194 }
  0xd2   :  { %vm275_vm8 = vcmp.eq.s32.totalorder %v195_v59, %v4944_v16  ;;  %vm276_vm9 = vcmp.eq.s32.totalorder %v198_v58, %v4944_v16 }
  0xd3   :  { %4341 = vmatmul.mubr.msk.f32.gmra.mrb[38].mxu0 %vm274_vm7, %v4703_v19  ;;  %vm1722_vm7 = vcmask 1042434  }
  0xd4   :  { %4343 = vmatprep.mubr.msk.f32.mxu0 %vm275_vm8, %v4703_v19  ;;  %vm1724_vm8 = vcmask 1043459  }
  0xd5   :  { %v204_v60 = vpop.permute.xlu1 %203  ;;  %v201_v61 = vpop.permute.xlu0 %200 }
  0xd6   :  { %vm277_vm10 = vcmp.eq.s32.totalorder %v201_v61, %v4944_v16  ;;  %vm278_vm11 = vcmp.eq.s32.totalorder %v204_v60, %v4944_v16 }
  0xd7   :  { %4344 = vmatmul.mubr.msk.f32.gmra.mrb[40].mxu0 %vm276_vm9, %v4703_v19  ;;  %vm1726_vm9 = vcmask 1044484  }
  0xd8   :  { %4346 = vmatprep.mubr.msk.f32.mxu0 %vm277_vm10, %v4703_v19  ;;  %vm1728_vm10 = vcmask 1045509  }
  0xd9   :  { %v210_v62 = vpop.permute.xlu1 %209  ;;  %v207_v63 = vpop.permute.xlu0 %206 }
  0xda   :  { %vm279_vm12 = vcmp.eq.s32.totalorder %v207_v63, %v4944_v16  ;;  %vm280_vm13 = vcmp.eq.s32.totalorder %v210_v62, %v4944_v16 }
  0xdb   :  { %4347 = vmatmul.mubr.msk.f32.gmra.mrb[42].mxu0 %vm278_vm11, %v4703_v19  ;;  %vm1730_vm11 = vcmask 1046534  }
  0xdc   :  { %4349 = vmatprep.mubr.msk.f32.mxu0 %vm279_vm12, %v4703_v19  ;;  %vm1732_vm12 = vcmask 1047559  }
  0xdd   :  { %v216_v0 = vpop.permute.xlu1 %215  ;;  %v213_v1 = vpop.permute.xlu0 %212 }
  0xde   :  { %vm281_vm14 = vcmp.eq.s32.totalorder %v213_v1, %v4944_v16  ;;  %vm282_vm15 = vcmp.eq.s32.totalorder %v216_v0, %v4944_v16 }
  0xdf   :  { %4350 = vmatmul.mubr.msk.f32.gmra.mrb[44].mxu0 %vm280_vm13, %v4703_v19  ;;  %vm1775_vm13 = vcmask 64512  }
  0xe0   :  { %4352 = vmatprep.mubr.msk.f32.mxu0 %vm281_vm14, %v4703_v19  ;;  %vm4706_vm14 = vmmov 0  }
  0xe1   :  { %v222_v2 = vpop.permute.xlu1 %221  ;;  %v219_v3 = vpop.permute.xlu0 %218 }
  0xe2   :  { %vm283_vm0 = vcmp.eq.s32.totalorder %v219_v3, %v4944_v16  ;;  %vm284_vm1 = vcmp.eq.s32.totalorder %v222_v2, %v4944_v16 }
  0xe3   :  { %4353 = vmatmul.mubr.msk.f32.gmra.mrb[46].mxu0 %vm282_vm15, %v4703_v19  ;;  %vm3987_vm15 = vcmask 125952  }
  0xe4   :  { %4355 = vmatprep.mubr.msk.f32.mxu0 %vm283_vm0, %v4703_v19  ;;  %vm4015_vm0 = vcmask 130048  }
  0xe5   :  { %v228_v4 = vpop.permute.xlu1 %227  ;;  %v225_v5 = vpop.permute.xlu0 %224 }
  0xe6   :  { %vm285_vm2 = vcmp.eq.s32.totalorder %v225_v5, %v4944_v16  ;;  %vm286_vm3 = vcmp.eq.s32.totalorder %v228_v4, %v4944_v16 }
  0xe7   :  { %4356 = vmatmul.mubr.msk.f32.gmra.mrb[48].mxu0 %vm284_vm1, %v4703_v19 }
  0xe8   :  { %4358 = vmatprep.mubr.msk.f32.mxu0 %vm285_vm2, %v4703_v19 }
  0xe9   :  { %v231_v6 = vpop.permute.xlu0 %230  ;;  %v234_v7 = vpop.permute.xlu1 %233 }
  0xea   :  { %vm287_vm4 = vcmp.eq.s32.totalorder %v231_v6, %v4944_v16  ;;  %vm288_vm5 = vcmp.eq.s32.totalorder %v234_v7, %v4944_v16 }
  0xeb   :  { %4359 = vmatmul.mubr.msk.f32.gmra.mrb[50].mxu0 %vm286_vm3, %v4703_v19 }
  0xec   :  { %4361 = vmatprep.mubr.msk.f32.mxu0 %vm287_vm4, %v4703_v19 }
  0xef   :  { %4362 = vmatmul.mubr.msk.f32.gmra.mrb[52].mxu0 %vm288_vm5, %v4703_v19 }
 0x15a   :  { %v5060_v13 = vpop.f32.mrb[0].mxu0 }
 0x15b   :  { %6427 = vst [vmem:[#allocation2_spill] sm:$0xff] %v5060_v13  ;;  %v5062_v14 = vpop.f32.mrb[1].mxu0  ;;  %v810_v43 = vrot.slane %v5060_v13, %v5058_v12  ;;  %v803_v53 = vcombine.high %v5060_v13, %v5060_v13 }
 0x15c   :  { %6428 = vst [vmem:[#allocation3_spill] sm:$0xff] %v5062_v14  ;;  %v754_v17 = vcombine.high %v5062_v14, %v5062_v14  ;;  %v761_v18 = vrot.slane %v5062_v14, %v5058_v12 }
 0x15d   :  { %v818_v54 = vcombine.high %v810_v43, %v810_v43  ;;  %v817_v0 = vrot.slane %v803_v53, %v5058_v12  ;;  %v826_v1 = vrot.slane %v810_v43, %v5058_v12 }
 0x15e   :  { %v769_v19 = vcombine.high %v761_v18, %v761_v18  ;;  %v5068_v20 = vpop.f32.mrb[2].mxu0  ;;  %v768_v15 = vrot.slane %v754_v17, %v5058_v12  ;;  %v777_v25 = vrot.slane %v761_v18, %v5058_v12 }
 0x15f   :  { %6429 = vst [vmem:[#allocation4_spill] sm:$0xff] %v5068_v20  ;;  %v5070_v21 = vpop.f32.mrb[3].mxu0  ;;  %v901_v46 = vcombine.high %v5068_v20, %v5068_v20  ;;  %v840_v2 = vrot.slane %v818_v54, %v5058_v12 }
 0x160   :  { %6430 = vst [vmem:[#allocation5_spill] sm:$0xff] %v5070_v21  ;;  %v791_v22 = vrot.slane %v769_v19, %v5058_v12  ;;  %v770_v31 = vcombine.high %v768_v15, %v768_v15  ;;  %v1051_v38 = vrot.slane %v777_v25, %v5077_v24  ;;  %v799_v39 = vcombine.high %v777_v25, %v777_v25 }
 0x161   :  { %v784_v49 = vrot.slane %v768_v15, %v5058_v12  ;;  %v915_v57 = vrot.slane %v901_v46, %v5058_v12  ;;  %v1087_v15 = vrot.slane %v840_v2, %v5077_v24  ;;  %v819_v25 = vcombine.high %v817_v0, %v817_v0 }
 0x162   :  { %v5074_v23 = vpop.f32.mrb[4].mxu0  ;;  %v1055_v34 = vrot.slane %v791_v22, %v5077_v24  ;;  %v801_v35 = vcombine.high %v791_v22, %v791_v22  ;;  %v798_v45 = vrot.slane %v770_v31, %v5058_v12  ;;  %v1059_v48 = vrot.slane %v799_v39, %v5077_v24 }
 0x163   :  { %6431 = vst [vmem:[#allocation6_spill] sm:$0xff] %v5074_v23  ;;  %v999_v26 = vcombine.high %v5074_v23, %v5074_v23  ;;  %v5084_v27 = vrot.slane %v5074_v23, %v5058_v12  ;;  %v5086_v28 = vpop.f32.mrb[5].mxu0  ;;  %v1067_v59 = vrot.slane %v784_v49, %v5077_v24  ;;  %v800_v60 = vcombine.high %v784_v49, %v784_v49 }
 0x164   :  { %6432 = vst [vmem:[#allocation7_spill] sm:$0xff] %v5086_v28  ;;  %v950_v29 = vcombine.high %v5086_v28, %v5086_v28  ;;  %v957_v30 = vrot.slane %v5086_v28, %v5058_v12  ;;  %v1063_v44 = vrot.slane %v801_v35, %v5077_v24  ;;  %v1071_v55 = vrot.slane %v798_v45, %v5077_v24 }
 0x165   :  { %v5093_v32 = vrot.slane %v999_v26, %v5058_v12  ;;  %v5097_v33 = vrot.slane %v5084_v27, %v5058_v12  ;;  %v802_v56 = vcombine.high %v798_v45, %v798_v45  ;;  %v1075_v6 = vrot.slane %v800_v60, %v5077_v24 }
 0x166   :  { %v964_v36 = vrot.slane %v950_v29, %v5058_v12  ;;  %v5101_v37 = vpop.f32.mrb[6].mxu0  ;;  %v965_v4 = vcombine.high %v957_v30, %v957_v30  ;;  %v5141_v7 = vrot.slane %v915_v57, %v5058_v12  ;;  %v917_v8 = vcombine.high %v915_v57, %v915_v57 }
 0x167   :  { %6433 = vst [vmem:[#allocation8_spill] sm:$0xff] %v5101_v37  ;;  %v5104_v40 = vpop.f32.mrb[7].mxu0  ;;  %v1289_v41 = vmul.f32 %v5101_v37, %v1055_v34  ;;  %v1079_v3 = vrot.slane %v802_v56, %v5077_v24  ;;  %v5147_v17 = vrot.slane %v957_v30, %v5058_v12  ;;  %v850_v22 = vcombine.high %v840_v2, %v840_v2 }
 0x168   :  { %6434 = vst [vmem:[#allocation9_spill] sm:$0xff] %v5104_v40  ;;  %v1288_v42 = vmul.f32 %v1051_v38, %v5104_v40  ;;  %v5151_v19 = vrot.slane %v917_v8, %v5058_v12  ;;  %v966_v26 = vcombine.high %v964_v36, %v964_v36  ;;  %v1014_v29 = vcombine.high %v5084_v27, %v5084_v27 }
 0x169   :  { %1338 = vadd.xlane.f32.xlu1 %v1289_v41  ;;  %v848_v34 = vcombine.high %v826_v1, %v826_v1  ;;  %v1083_v30 = vrot.slane %v826_v1, %v5077_v24  ;;  %v5160_v35 = vrot.slane %v965_v4, %v5058_v12  ;;  %v1015_v38 = vcombine.high %v5093_v32, %v5093_v32 }
 0x16a   :  { %1336 = vadd.xlane.f32.xlu0 %v1288_v42  ;;  %v5114_v47 = vpop.f32.mrb[8].mxu0  ;;  %v5168_v42 = vrot.slane %v966_v26, %v5058_v12  ;;  %v5171_v27 = vrot.slane %v964_v36, %v5058_v12  ;;  %v1095_v45 = vrot.slane %v850_v22, %v5077_v24  ;;  %v847_v46 = vrot.slane %v819_v25, %v5058_v12 }
 0x16b   :  { %6435 = vst [vmem:[#allocation10_spill] sm:$0xff] %v5114_v47  ;;  %v5118_v50 = vpop.f32.mrb[9].mxu0  ;;  %v1291_v51 = vmul.f32 %v5114_v47, %v1063_v44  ;;  %v859_v44 = vrot.slane %v5070_v21, %v5058_v12  ;;  %v1091_v49 = vrot.slane %v848_v34, %v5077_v24  ;;  %v5183_v36 = vrot.slane %v1014_v29, %v5058_v12 }
 0x16c   :  { %6436 = vst [vmem:[#allocation11_spill] sm:$0xff] %v5118_v50  ;;  %v1290_v52 = vmul.f32 %v1059_v48, %v5118_v50  ;;  %v5189_v54 = vrot.slane %v1015_v38, %v5058_v12  ;;  %v851_v60 = vcombine.high %v847_v46, %v847_v46 }
 0x16d   :  { %v867_v57 = vcombine.high %v859_v44, %v859_v44  ;;  %v875_v22 = vrot.slane %v859_v44, %v5058_v12 }
 0x16e   :  { %1342 = vadd.xlane.f32.xlu0 %v1291_v51  ;;  %v5126_v58 = vpop.f32.mrb[10].mxu0  ;;  %v833_v51 = vrot.slane %v817_v0, %v5058_v12  ;;  %v1111_v8 = vrot.slane %v851_v60, %v5077_v24 }
 0x16f   :  { %6437 = vst [vmem:[#allocation12_spill] sm:$0xff] %v5126_v58  ;;  %v5129_v61 = vpop.f32.mrb[11].mxu0  ;;  %v1293_v62 = vmul.f32 %v5126_v58, %v1071_v55  ;;  %v852_v55 = vcombine.high %v5070_v21, %v5070_v21 }
 0x170   :  { %6438 = vst [vmem:[#allocation13_spill] sm:$0xff] %v5129_v61  ;;  %v1292_v63 = vmul.f32 %v1067_v59, %v5129_v61  ;;  %v1103_v59 = vrot.slane %v847_v46, %v5077_v24  ;;  %v1099_v0 = vrot.slane %v833_v51, %v5077_v24  ;;  %v849_v1 = vcombine.high %v833_v51, %v833_v51 }
 0x171   :  { %v908_v51 = vrot.slane %v5068_v20, %v5058_v12 }
 0x172   :  { %1340 = vadd.xlane.f32.xlu0 %v1290_v52  ;;  %v5137_v5 = vpop.f32.mrb[12].mxu0 }
 0x173   :  { %6439 = vst [vmem:[#allocation14_spill] sm:$0xff] %v5137_v5  ;;  %v5143_v9 = vpop.f32.mrb[13].mxu0  ;;  %v1295_v10 = vmul.f32 %v5137_v5, %v1079_v3 }
 0x174   :  { %6440 = vst [vmem:[#allocation15_spill] sm:$0xff] %v5143_v9  ;;  %v1294_v18 = vmul.f32 %v1075_v6, %v5143_v9  ;;  %v866_v6 = vrot.slane %v852_v55, %v5058_v12 }
 0x176   :  { %1346 = vadd.xlane.f32.xlu0 %v1293_v62  ;;  %v5156_v31 = vpop.f32.mrb[14].mxu0  ;;  %v5197_v62 = vrot.slane %v5093_v32, %v5058_v12  ;;  %v889_v32 = vrot.slane %v867_v57, %v5058_v12  ;;  %v868_v38 = vcombine.high %v866_v6, %v866_v6  ;;  %v882_v57 = vrot.slane %v866_v6, %v5058_v12 }
 0x177   :  { %6441 = vst [vmem:[#allocation16_spill] sm:$0xff] %v5156_v31  ;;  %v5164_v39 = vpop.f32.mrb[15].mxu0  ;;  %v1297_v41 = vmul.f32 %v5156_v31, %v1087_v15  ;;  %v1107_v15 = vrot.slane %v849_v1, %v5077_v24  ;;  %v916_v1 = vcombine.high %v908_v51, %v908_v51 }
 0x178   :  { %6442 = vst [vmem:[#allocation17_spill] sm:$0xff] %v5164_v39  ;;  %v1296_v43 = vmul.f32 %v1083_v30, %v5164_v39  ;;  %v1119_v34 = vrot.slane %v889_v32, %v5077_v24  ;;  %v899_v30 = vcombine.high %v889_v32, %v889_v32  ;;  %v896_v55 = vrot.slane %v868_v38, %v5058_v12 }
 0x179   :  { %1354 = vadd.xlane.f32.xlu1 %v1297_v41  ;;  %v1131_v32 = vrot.slane %v882_v57, %v5077_v24 }
 0x17a   :  { %1344 = vadd.xlane.f32.xlu0 %v1292_v63  ;;  %v5178_v48 = vpop.f32.mrb[16].mxu0 }
 0x17b   :  { %6443 = vst [vmem:[#allocation18_spill] sm:$0xff] %v5178_v48  ;;  %v5185_v52 = vpop.f32.mrb[17].mxu0  ;;  %v1299_v53 = vmul.f32 %v5178_v48, %v1095_v45  ;;  %v897_v45 = vcombine.high %v875_v22, %v875_v22 }
 0x17c   :  { %6444 = vst [vmem:[#allocation19_spill] sm:$0xff] %v5185_v52  ;;  %v1298_v56 = vmul.f32 %v1091_v49, %v5185_v52 }
 0x17d   :  { %1358 = vadd.xlane.f32.xlu1 %v1299_v53  ;;  %v1127_v53 = vrot.slane %v899_v30, %v5077_v24 }
 0x17e   :  { %1350 = vadd.xlane.f32.xlu0 %v1295_v10  ;;  %v5199_v63 = vpop.f32.mrb[18].mxu0 }
 0x17f   :  { %6445 = vst [vmem:[#allocation20_spill] sm:$0xff] %v5199_v63  ;;  %v5202_v2 = vpop.f32.mrb[19].mxu0  ;;  %v1301_v3 = vmul.f32 %v5199_v63, %v1103_v59 }
 0x180   :  { %6446 = vst [vmem:[#allocation21_spill] sm:$0xff] %v5202_v2  ;;  %v1300_v4 = vmul.f32 %v1099_v0, %v5202_v2 }
 0x181   :  { %1356 = vadd.xlane.f32.xlu1 %v1298_v56  ;;  %v1123_v56 = vrot.slane %v897_v45, %v5077_v24 }
 0x182   :  { %1348 = vadd.xlane.f32.xlu0 %v1294_v18  ;;  %v5209_v10 = vpop.f32.mrb[20].mxu0  ;;  %v1115_v18 = vrot.slane %v875_v22, %v5077_v24 }
 0x183   :  { %6447 = vst [vmem:[#allocation22_spill] sm:$0xff] %v5209_v10  ;;  %v5213_v25 = vpop.f32.mrb[21].mxu0  ;;  %v1303_v26 = vmul.f32 %v5209_v10, %v1111_v8 }
 0x184   :  { %6448 = vst [vmem:[#allocation23_spill] sm:$0xff] %v5213_v25  ;;  %v1302_v29 = vmul.f32 %v1107_v15, %v5213_v25  ;;  %v898_v15 = vcombine.high %v882_v57, %v882_v57 }
 0x185   :  { %1362 = vadd.xlane.f32.xlu1 %v1301_v3  ;;  %v1135_v3 = vrot.slane %v896_v55, %v5077_v24 }
 0x186   :  { %1352 = vadd.xlane.f32.xlu0 %v1296_v43  ;;  %v5218_v41 = vpop.f32.mrb[22].mxu0  ;;  %v1139_v38 = vrot.slane %v898_v15, %v5077_v24 }
 0x187   :  { %6449 = vst [vmem:[#allocation24_spill] sm:$0xff] %v5218_v41  ;;  %v5221_v46 = vpop.f32.mrb[23].mxu0  ;;  %v1305_v44 = vmul.f32 %v5218_v41, %v1119_v34 }
 0x188   :  { %6450 = vst [vmem:[#allocation25_spill] sm:$0xff] %v5221_v46  ;;  %v1304_v49 = vmul.f32 %v1115_v18, %v5221_v46  ;;  %v924_v18 = vrot.slane %v908_v51, %v5058_v12 }
 0x189   :  { %1360 = vadd.xlane.f32.xlu1 %v1300_v4  ;;  %v900_v4 = vcombine.high %v896_v55, %v896_v55 }
 0x18a   :  { %1366 = vadd.xlane.f32.xlu0 %v1303_v26  ;;  %v5229_v43 = vpop.f32.mrb[24].mxu0  ;;  %v1147_v57 = vrot.slane %v924_v18, %v5077_v24 }
 0x18b   :  { %6451 = vst [vmem:[#allocation26_spill] sm:$0xff] %v5229_v43  ;;  %v5233_v59 = vpop.f32.mrb[25].mxu0  ;;  %v1307_v60 = vmul.f32 %v5229_v43, %v1127_v53  ;;  %v1143_v34 = vrot.slane %v900_v4, %v5077_v24 }
 0x18c   :  { %6452 = vst [vmem:[#allocation27_spill] sm:$0xff] %v5233_v59  ;;  %v1306_v0 = vmul.f32 %v1123_v56, %v5233_v59 }
 0x18d   :  { %1364 = vadd.xlane.f32.xlu1 %v1302_v29  ;;  %v938_v29 = vrot.slane %v916_v1, %v5058_v12 }
 0x18e   :  { %1370 = vadd.xlane.f32.xlu0 %v1305_v44  ;;  %v5238_v8 = vpop.f32.mrb[26].mxu0 }
 0x18f   :  { %6453 = vst [vmem:[#allocation28_spill] sm:$0xff] %v5238_v8  ;;  %v5241_v22 = vpop.f32.mrb[27].mxu0  ;;  %v1309_v6 = vmul.f32 %v5238_v8, %v1135_v3  ;;  %v948_v55 = vcombine.high %v938_v29, %v938_v29 }
 0x190   :  { %6454 = vst [vmem:[#allocation29_spill] sm:$0xff] %v5241_v22  ;;  %v1308_v26 = vmul.f32 %v1131_v32, %v5241_v22 }
 0x191   :  { %1368 = vadd.xlane.f32.xlu1 %v1304_v49  ;;  %v1151_v49 = vrot.slane %v938_v29, %v5077_v24  ;;  %v1159_v3 = vrot.slane %v948_v55, %v5077_v24  ;;  %v949_v29 = vcombine.high %v5151_v19, %v5151_v19 }
 0x192   :  { %1374 = vadd.xlane.f32.xlu0 %v1307_v60  ;;  %v5247_v30 = vpop.f32.mrb[28].mxu0  ;;  %v946_v60 = vcombine.high %v924_v18, %v924_v18  ;;  %v1163_v18 = vrot.slane %v5141_v7, %v5077_v24 }
 0x193   :  { %6455 = vst [vmem:[#allocation30_spill] sm:$0xff] %v5247_v30  ;;  %v5251_v45 = vpop.f32.mrb[29].mxu0  ;;  %v1311_v44 = vmul.f32 %v5247_v30, %v1143_v34  ;;  %v1167_v34 = vrot.slane %v5151_v19, %v5077_v24 }
 0x194   :  { %6456 = vst [vmem:[#allocation31_spill] sm:$0xff] %v5251_v45  ;;  %v1310_v53 = vmul.f32 %v1139_v38, %v5251_v45  ;;  %v1155_v4 = vrot.slane %v946_v60, %v5077_v24 }
 0x195   :  { %1372 = vadd.xlane.f32.xlu1 %v1306_v0 }
 0x196   :  { %1378 = vadd.xlane.f32.xlu0 %v1309_v6  ;;  %v5256_v56 = vpop.f32.mrb[30].mxu0 }
 0x197   :  { %6457 = vst [vmem:[#allocation32_spill] sm:$0xff] %v5256_v56  ;;  %v5259_v1 = vpop.f32.mrb[31].mxu0  ;;  %v1313_v12 = vmul.f32 %v5256_v56, %v1151_v49 }
 0x198   :  { %6458 = vst [vmem:[#allocation33_spill] sm:$0xff] %v5259_v1  ;;  %v1312_v51 = vmul.f32 %v1147_v57, %v5259_v1  ;;  %v1175_v57 = vrot.slane %v949_v29, %v5077_v24 }
 0x199   :  { %1382 = vadd.xlane.f32.xlu1 %v1311_v44 }
 0x19a   :  { %1376 = vadd.xlane.f32.xlu0 %v1308_v26  ;;  %v5264_v0 = vpop.f32.mrb[32].mxu0  ;;  %v947_v26 = vcombine.high %v5141_v7, %v5141_v7 }
 0x19b   :  { %6459 = vst [vmem:[#allocation34_spill] sm:$0xff] %v5264_v0  ;;  %v5267_v32 = vpop.f32.mrb[33].mxu0  ;;  %v1315_v15 = vmul.f32 %v5264_v0, %v1159_v3  ;;  %v1183_v3 = vrot.slane %v5160_v35, %v5077_v24 }
 0x19c   :  { %6460 = vst [vmem:[#allocation35_spill] sm:$0xff] %v5267_v32  ;;  %v1314_v6 = vmul.f32 %v1155_v4, %v5267_v32  ;;  %v997_v4 = vcombine.high %v5160_v35, %v5160_v35 }
 0x19d   :  { %1386 = vadd.xlane.f32.xlu1 %v1313_v12 }
 0x19e   :  { %1380 = vadd.xlane.f32.xlu0 %v1310_v53  ;;  %v5275_v38 = vpop.f32.mrb[34].mxu0  ;;  %v1171_v53 = vrot.slane %v947_v26, %v5077_v24 }
 0x19f   :  { %6461 = vst [vmem:[#allocation36_spill] sm:$0xff] %v5275_v38  ;;  %v5281_v44 = vpop.f32.mrb[35].mxu0  ;;  %v1317_v49 = vmul.f32 %v5275_v38, %v1167_v34  ;;  %v995_v34 = vcombine.high %v5147_v17, %v5147_v17 }
 0x1a0   :  { %6462 = vst [vmem:[#allocation37_spill] sm:$0xff] %v5281_v44  ;;  %v1316_v55 = vmul.f32 %v1163_v18, %v5281_v44  ;;  %v1191_v18 = vrot.slane %v997_v4, %v5077_v24 }
 0x1a1   :  { %1390 = vadd.xlane.f32.xlu1 %v1315_v15 }
 0x1a2   :  { %1384 = vadd.xlane.f32.xlu0 %v1312_v51  ;;  %v5286_v19 = vpop.f32.mrb[36].mxu0  ;;  %v1179_v51 = vrot.slane %v5147_v17, %v5077_v24 }
 0x1a3   :  { %6463 = vst [vmem:[#allocation38_spill] sm:$0xff] %v5286_v19  ;;  %v5289_v60 = vpop.f32.mrb[37].mxu0  ;;  %v1319_v12 = vmul.f32 %v5286_v19, %v1175_v57  ;;  %v1187_v57 = vrot.slane %v995_v34, %v5077_v24  ;;  %v996_v34 = vcombine.high %v5171_v27, %v5171_v27 }
 0x1a4   :  { %6464 = vst [vmem:[#allocation39_spill] sm:$0xff] %v5289_v60  ;;  %v1318_v7 = vmul.f32 %v1171_v53, %v5289_v60 }
 0x1a5   :  { %1388 = vadd.xlane.f32.xlu1 %v1314_v6 }
 0x1a6   :  { %1396 = vadd.xlane.f32.xlu0 %v1318_v7  ;;  %v5297_v15 = vpop.f32.mrb[38].mxu0 }
 0x1a7   :  { %6465 = vst [vmem:[#allocation40_spill] sm:$0xff] %v5297_v15  ;;  %v5303_v29 = vpop.f32.mrb[39].mxu0  ;;  %v1321_v26 = vmul.f32 %v5297_v15, %v1183_v3  ;;  %v1199_v3 = vrot.slane %v5168_v42, %v5077_v24 }
 0x1a8   :  { %6466 = vst [vmem:[#allocation41_spill] sm:$0xff] %v5303_v29  ;;  %v1320_v6 = vmul.f32 %v1179_v51, %v5303_v29  ;;  %v1195_v51 = vrot.slane %v5171_v27, %v5077_v24 }
 0x1a9   :  { %1394 = vadd.xlane.f32.xlu1 %v1317_v49  ;;  %v998_v49 = vcombine.high %v5168_v42, %v5168_v42 }
 0x1aa   :  { %1400 = vadd.xlane.f32.xlu0 %v1320_v6  ;;  %v5308_v35 = vpop.f32.mrb[40].mxu0 }
 0x1ab   :  { %6467 = vst [vmem:[#allocation42_spill] sm:$0xff] %v5308_v35  ;;  %v5311_v53 = vpop.f32.mrb[41].mxu0  ;;  %v1323_v7 = vmul.f32 %v5308_v35, %v1191_v18 }
 0x1ac   :  { %6468 = vst [vmem:[#allocation43_spill] sm:$0xff] %v5311_v53  ;;  %v1322_v17 = vmul.f32 %v1187_v57, %v5311_v53  ;;  %v1207_v57 = vrot.slane %v998_v49, %v5077_v24 }
 0x1ad   :  { %1392 = vadd.xlane.f32.xlu1 %v1316_v55 }
 0x1ae   :  { %1404 = vadd.xlane.f32.xlu0 %v1322_v17  ;;  %v5319_v4 = vpop.f32.mrb[42].mxu0  ;;  %v1203_v17 = vrot.slane %v996_v34, %v5077_v24  ;;  %v1211_v34 = vrot.slane %v5097_v33, %v5077_v24 }
 0x1af   :  { %6469 = vst [vmem:[#allocation44_spill] sm:$0xff] %v5319_v4  ;;  %v5325_v6 = vpop.f32.mrb[43].mxu0  ;;  %v1325_v18 = vmul.f32 %v5319_v4, %v1199_v3  ;;  %v1215_v3 = vrot.slane %v5183_v36, %v5077_v24 }
 0x1b0   :  { %6470 = vst [vmem:[#allocation45_spill] sm:$0xff] %v5325_v6  ;;  %v1324_v55 = vmul.f32 %v1195_v51, %v5325_v6  ;;  %v1044_v51 = vcombine.high %v5097_v33, %v5097_v33 }
 0x1b1   :  { %1398 = vadd.xlane.f32.xlu1 %v1319_v12  ;;  %v1046_v12 = vcombine.high %v5183_v36, %v5183_v36 }
 0x1b2   :  { %1410 = vadd.xlane.f32.xlu0 %v1325_v18  ;;  %v5330_v42 = vpop.f32.mrb[44].mxu0 }
 0x1b3   :  { %6471 = vst [vmem:[#allocation46_spill] sm:$0xff] %v5330_v42  ;;  %v1327_v23 = vmul.f32 %v5330_v42, %v1207_v57  ;;  %v5334_v28 = vpop.f32.mrb[45].mxu0 }
 0x1b4   :  { %6472 = vst [vmem:[#allocation47_spill] sm:$0xff] %v5334_v28  ;;  %v1326_v27 = vmul.f32 %v1203_v17, %v5334_v28  ;;  %v1223_v17 = vrot.slane %v1046_v12, %v5077_v24 }
 0x1b5   :  { %1402 = vadd.xlane.f32.xlu1 %v1321_v26 }
 0x1b6   :  { %1408 = vadd.xlane.f32.xlu0 %v1324_v55  ;;  %v5341_v49 = vpop.f32.mrb[46].mxu0  ;;  %v1219_v55 = vrot.slane %v1044_v51, %v5077_v24  ;;  %v1227_v51 = vrot.slane %v5197_v62, %v5077_v24 }
 0x1b7   :  { %6473 = vst [vmem:[#allocation48_spill] sm:$0xff] %v5341_v49  ;;  %v5347_v18 = vpop.f32.mrb[47].mxu0  ;;  %v1329_v57 = vmul.f32 %v5341_v49, %v1215_v3  ;;  %v1047_v3 = vcombine.high %v5189_v54, %v5189_v54 }
 0x1b8   :  { %6474 = vst [vmem:[#allocation49_spill] sm:$0xff] %v5347_v18  ;;  %v1328_v26 = vmul.f32 %v1211_v34, %v5347_v18 }
 0x1b9   :  { %1406 = vadd.xlane.f32.xlu1 %v1323_v7  ;;  %v1231_v7 = vrot.slane %v5189_v54, %v5077_v24 }
 0x1ba   :  { %1412 = vadd.xlane.f32.xlu0 %v1326_v27  ;;  %v5352_v36 = vpop.f32.mrb[48].mxu0  ;;  %v1045_v27 = vcombine.high %v5197_v62, %v5197_v62 }
 0x1bb   :  { %6475 = vst [vmem:[#allocation50_spill] sm:$0xff] %v5352_v36  ;;  %v5355_v20 = vpop.f32.mrb[49].mxu0  ;;  %v1331_v21 = vmul.f32 %v5352_v36, %v1223_v17 }
 0x1bc   :  { %6476 = vst [vmem:[#allocation51_spill] sm:$0xff] %v5355_v20  ;;  %v1330_v33 = vmul.f32 %v1219_v55, %v5355_v20  ;;  %v1239_v55 = vrot.slane %v1047_v3, %v5077_v24 }
 0x1bd   :  { %1416 = vadd.xlane.f32.xlu1 %v1328_v26 }
 0x1be   :  { %1418 = vadd.xlane.f32.xlu0 %v1329_v57  ;;  %v5363_v12 = vpop.f32.mrb[50].mxu0  ;;  %v1235_v57 = vrot.slane %v1045_v27, %v5077_v24 }
 0x1bf   :  { %6477 = vst [vmem:[#allocation52_spill] sm:$0xff] %v5363_v12  ;;  %v5369_v34 = vpop.f32.mrb[51].mxu0  ;;  %v1333_v17 = vmul.f32 %v5363_v12, %v1231_v7 }
 0x1c0   :  { %6478 = vst [vmem:[#allocation53_spill] sm:$0xff] %v5369_v34  ;;  %v1332_v26 = vmul.f32 %v1227_v51, %v5369_v34 }
 0x1c1   :  { %1422 = vadd.xlane.f32.xlu1 %v1331_v21 }
 0x1c2   :  { %1420 = vadd.xlane.f32.xlu0 %v1330_v33  ;;  %v5374_v54 = vpop.f32.mrb[52].mxu0  ;;  %v5383_v33 = vsub.s32 %v4944_v16, %v5055_v11 }
 0x1c3   :  { %6479 = vst [vmem:[#allocation54_spill] sm:$0xff] %v5374_v54  ;;  %v1335_v13 = vmul.f32 %v5374_v54, %v1239_v55  ;;  %v5378_v14 = vpop.f32.mrb[53].mxu0 }
 0x1c4   :  { %6480 = vst [vmem:[#allocation55_spill] sm:$0xff] %v5378_v14  ;;  %v1334_v62 = vmul.f32 %v1235_v57, %v5378_v14  ;;  %6481 = vst [vmem:[#allocation56_spill] sm:$0xff] %v5383_v33 }
 0x1c5   :  { %1426 = vadd.xlane.f32.xlu1 %v1333_v17 }
 0x1c6   :  { %1414 = vadd.xlane.f32.xlu0 %v1327_v23 }
 0x1c9   :  { %1424 = vadd.xlane.f32.xlu1 %v1332_v26 }
 0x1ca   :  { %1430 = vadd.xlane.f32.xlu0 %v1335_v13 }
 0x1cd   :  { %1428 = vadd.xlane.f32.xlu1 %v1334_v62 }
 0x1f6   :  { %v1339_v3 = vpop.xlane.xlu1 %1338 }
 0x1f7   :  { %v1337_v7 = vpop.xlane.xlu0 %1336  ;;  %v5385_v27 = vmul.f32 0.088388346, %v1339_v3 }
 0x1f8   :  { %v5387_v55 = vmul.f32 0.088388346, %v1337_v7 }
 0x1f9   :  { %v1535_v13 = vrot.slane %v5385_v27, %v5383_v33 }
 0x1fa   :  { %v1531_v23 = vrot.slane %v5387_v55, %v5383_v33 }
 0x1fb   :  { %v1343_v21 = vpop.xlane.xlu0 %1342 }
 0x1fc   :  { %v5399_v62 = vmul.f32 0.088388346, %v1343_v21 }
 0x1fe   :  { %v1543_v12 = vrot.slane %v5399_v62, %v5383_v33 }
 0x1ff   :  { %v1341_v51 = vpop.xlane.xlu0 %1340 }
 0x200   :  { %v5389_v42 = vmul.f32 0.088388346, %v1341_v51  ;;  %v1721_v51 = vsel %vm1720_vm6, %v1535_v13, %v1531_v23 }
 0x202   :  { %v1539_v16 = vrot.slane %v5389_v42, %v5383_v33 }
 0x203   :  { %v1347_v54 = vpop.xlane.xlu0 %1346 }
 0x204   :  { %v1723_v14 = vsel %vm1722_vm7, %v1539_v16, %v1721_v51  ;;  %v5407_v49 = vmul.f32 0.088388346, %v1347_v54 }
 0x205   :  { %v1725_v21 = vsel %vm1724_vm8, %v1543_v12, %v1723_v14 }
 0x206   :  { %v1355_v17 = vpop.xlane.xlu1 %1354  ;;  %v1551_v16 = vrot.slane %v5407_v49, %v5383_v33 }
 0x207   :  { %v1345_v26 = vpop.xlane.xlu0 %1344  ;;  %v5417_v51 = vmul.f32 0.088388346, %v1355_v17 }
 0x208   :  { %v5397_v57 = vmul.f32 0.088388346, %v1345_v26 }
 0x209   :  { %v1567_v18 = vrot.slane %v5417_v51, %v5383_v33 }
 0x20a   :  { %v1359_v7 = vpop.xlane.xlu1 %1358  ;;  %v1547_v20 = vrot.slane %v5397_v57, %v5383_v33 }
 0x20b   :  { %v1351_v3 = vpop.xlane.xlu0 %1350 }
 0x20c   :  { %v5410_v34 = vmul.f32 0.088388346, %v1351_v3  ;;  %v1727_v13 = vsel %vm1726_vm9, %v1547_v20, %v1725_v21  ;;  %v5426_v3 = vmul.f32 0.088388346, %v1359_v7 }
 0x20e   :  { %v1357_v26 = vpop.xlane.xlu1 %1356  ;;  %v1559_v14 = vrot.slane %v5410_v34, %v5383_v33 }
 0x20f   :  { %v1349_v28 = vpop.xlane.xlu0 %1348  ;;  %v5423_v12 = vmul.f32 0.088388346, %v1357_v26 }
 0x210   :  { %v5413_v23 = vmul.f32 0.088388346, %v1349_v28  ;;  %v1729_v28 = vsel %vm1728_vm10, %v1551_v16, %v1727_v13 }
 0x211   :  { %v1571_v13 = vrot.slane %v5423_v12, %v5383_v33 }
 0x212   :  { %v1555_v54 = vrot.slane %v5413_v23, %v5383_v33  ;;  %v1363_v36 = vpop.xlane.xlu1 %1362 }
 0x213   :  { %v1353_v20 = vpop.xlane.xlu0 %1352 }
 0x214   :  { %v5428_v21 = vmul.f32 0.088388346, %v1353_v20  ;;  %v1731_v17 = vsel %vm1730_vm11, %v1555_v54, %v1729_v28  ;;  %v1575_v54 = vrot.slane %v5426_v3, %v5383_v33 }
 0x215   :  { %v1733_v4 = vsel %vm1732_vm12, %v1559_v14, %v1731_v17  ;;  %v5443_v14 = vmul.f32 0.088388346, %v1363_v36 }
 0x216   :  { %v1563_v6 = vrot.slane %v5428_v21, %v5383_v33  ;;  %v1361_v26 = vpop.xlane.xlu1 %1360  ;;  %v1776_v35 = vsel %vm1775_vm13, %v1733_v4, -inf }
 0x217   :  { %v5439_v7 = vmul.f32 0.088388346, %v1361_v26  ;;  %1777 = vmax.xlane.f32.xlu1 %v1776_v35  ;;  %v1367_v16 = vpop.xlane.xlu0 %1366  ;;  %v1583_v36 = vrot.slane %v5443_v14, %v5383_v33 }
 0x218   :  { %v1734_v20 = vsel %vm1720_vm6, %v1567_v18, %v1563_v6  ;;  %v5450_v53 = vmul.f32 0.088388346, %v1367_v16 }
 0x219   :  { %v1735_v28 = vsel %vm1722_vm7, %v1571_v13, %v1734_v20  ;;  %v1579_v17 = vrot.slane %v5439_v7, %v5383_v33 }
 0x21a   :  { %v1736_v4 = vsel %vm1724_vm8, %v1575_v54, %v1735_v28  ;;  %v1365_v26 = vpop.xlane.xlu1 %1364  ;;  %v1591_v18 = vrot.slane %v5450_v53, %v5383_v33 }
 0x21b   :  { %v1737_v35 = vsel %vm1726_vm9, %v1579_v17, %v1736_v4  ;;  %v5453_v15 = vmul.f32 0.088388346, %v1365_v26  ;;  %v1371_v29 = vpop.xlane.xlu0 %1370 }
 0x21c   :  { %v1738_v54 = vsel %vm1728_vm10, %v1583_v36, %v1737_v35  ;;  %v5466_v4 = vmul.f32 0.088388346, %v1371_v29 }
 0x21d   :  { %v1587_v6 = vrot.slane %v5453_v15, %v5383_v33 }
 0x21e   :  { %v1369_v13 = vpop.xlane.xlu1 %1368  ;;  %v1599_v35 = vrot.slane %v5466_v4, %v5383_v33 }
 0x21f   :  { %v5462_v16 = vmul.f32 0.088388346, %v1369_v13  ;;  %v1375_v20 = vpop.xlane.xlu0 %1374  ;;  %v1739_v28 = vsel %vm1730_vm11, %v1587_v6, %v1738_v54 }
 0x220   :  { %v1740_v17 = vsel %vm1732_vm12, %v1591_v18, %v1739_v28  ;;  %v5475_v36 = vmul.f32 0.088388346, %v1375_v20 }
 0x221   :  { %v1779_v26 = vsel %vm1775_vm13, %v1740_v17, -inf  ;;  %v1595_v38 = vrot.slane %v5462_v16, %v5383_v33 }
 0x222   :  { %v1373_v19 = vpop.xlane.xlu1 %1372  ;;  %1780 = vmax.xlane.f32.xlu0 %v1779_v26 }
 0x223   :  { %v5471_v60 = vmul.f32 0.088388346, %v1373_v19  ;;  %v1379_v44 = vpop.xlane.xlu0 %1378  ;;  %v1741_v18 = vsel %vm1720_vm6, %v1599_v35, %v1595_v38  ;;  %v1607_v19 = vrot.slane %v5475_v36, %v5383_v33 }
 0x224   :  { %v5485_v17 = vmul.f32 0.088388346, %v1379_v44 }
 0x225   :  { %v1603_v6 = vrot.slane %v5471_v60, %v5383_v33 }
 0x226   :  { %v1383_v29 = vpop.xlane.xlu1 %1382 }
 0x227   :  { %v1377_v13 = vpop.xlane.xlu0 %1376  ;;  %v1742_v54 = vsel %vm1722_vm7, %v1603_v6, %v1741_v18  ;;  %v5489_v1 = vmul.f32 0.088388346, %v1383_v29  ;;  %v1615_v6 = vrot.slane %v5485_v17, %v5383_v33 }
 0x228   :  { %v5481_v28 = vmul.f32 0.088388346, %v1377_v13  ;;  %v1743_v0 = vsel %vm1724_vm8, %v1607_v19, %v1742_v54 }
 0x229   :  { %v1623_v13 = vrot.slane %v5489_v1, %v5383_v33 }
 0x22a   :  { %v1611_v20 = vrot.slane %v5481_v28, %v5383_v33  ;;  %v1387_v26 = vpop.xlane.xlu1 %1386 }
 0x22b   :  { %v1381_v45 = vpop.xlane.xlu0 %1380  ;;  %v5509_v22 = vmul.f32 0.088388346, %v1387_v26 }
 0x22c   :  { %v1744_v38 = vsel %vm1726_vm9, %v1611_v20, %v1743_v0  ;;  %v5493_v35 = vmul.f32 0.088388346, %v1381_v45 }
 0x22d   :  { %v1745_v29 = vsel %vm1728_vm10, %v1615_v6, %v1744_v38 }
 0x22e   :  { %v1619_v44 = vrot.slane %v5493_v35, %v5383_v33  ;;  %v1391_v18 = vpop.xlane.xlu1 %1390 }
 0x22f   :  { %v1385_v32 = vpop.xlane.xlu0 %1384 }
 0x230   :  { %v1746_v54 = vsel %vm1730_vm11, %v1619_v44, %v1745_v29  ;;  %v5504_v0 = vmul.f32 0.088388346, %v1385_v32  ;;  %v1631_v32 = vrot.slane %v5509_v22, %v5383_v33  ;;  %v5517_v44 = vmul.f32 0.088388346, %v1391_v18 }
 0x231   :  { %v1747_v19 = vsel %vm1732_vm12, %v1623_v13, %v1746_v54 }
 0x232   :  { %v1389_v45 = vpop.xlane.xlu1 %1388  ;;  %v1782_v20 = vsel %vm1775_vm13, %v1747_v19, -inf  ;;  %v1627_v30 = vrot.slane %v5504_v0, %v5383_v33  ;;  %v1639_v59 = vrot.slane %v5517_v44, %v5383_v33 }
 0x233   :  { %v5507_v8 = vmul.f32 0.088388346, %v1389_v45  ;;  %1783 = vmax.xlane.f32.xlu1 %v1782_v20  ;;  %v1397_v56 = vpop.xlane.xlu0 %1396 }
 0x234   :  { %v1748_v13 = vsel %vm1720_vm6, %v1631_v32, %v1627_v30  ;;  %v5523_v19 = vmul.f32 0.088388346, %v1397_v56 }
 0x235   :  { %v1635_v38 = vrot.slane %v5507_v8, %v5383_v33 }
 0x236   :  { %v1395_v43 = vpop.xlane.xlu1 %1394 }
 0x237   :  { %v1401_v6 = vpop.xlane.xlu0 %1400  ;;  %v5520_v29 = vmul.f32 0.088388346, %v1395_v43  ;;  %v1749_v26 = vsel %vm1722_vm7, %v1635_v38, %v1748_v13  ;;  %v1651_v38 = vrot.slane %v5523_v19, %v5383_v33 }
 0x238   :  { %v1750_v43 = vsel %vm1724_vm8, %v1639_v59, %v1749_v26  ;;  %v5546_v63 = vmul.f32 0.088388346, %v1401_v6 }
 0x239   :  { %v1647_v18 = vrot.slane %v5520_v29, %v5383_v33 }
 0x23a   :  { %v1393_v54 = vpop.xlane.xlu1 %1392 }
 0x23b   :  { %v5525_v45 = vmul.f32 0.088388346, %v1393_v54  ;;  %v1405_v20 = vpop.xlane.xlu0 %1404 }
 0x23d   :  { %v1643_v41 = vrot.slane %v5525_v45, %v5383_v33 }
 0x23e   :  { %v1399_v30 = vpop.xlane.xlu1 %1398 }
 0x23f   :  { %v1751_v56 = vsel %vm1726_vm9, %v1643_v41, %v1750_v43  ;;  %v5537_v32 = vmul.f32 0.088388346, %v1399_v30  ;;  %v1411_v13 = vpop.xlane.xlu0 %1410  ;;  %v5551_v30 = vmul.f32 0.088388346, %v1405_v20 }
 0x240   :  { %v1752_v54 = vsel %vm1728_vm10, %v1647_v18, %v1751_v56 }
 0x241   :  { %v1655_v46 = vrot.slane %v5537_v32, %v5383_v33  ;;  %v1753_v10 = vsel %vm1730_vm11, %v1651_v38, %v1752_v54  ;;  %v1667_v6 = vrot.slane %v5551_v30, %v5383_v33 }
 0x242   :  { %v1403_v25 = vpop.xlane.xlu1 %1402 }
 0x243   :  { %v5543_v39 = vmul.f32 0.088388346, %v1403_v25  ;;  %v1409_v59 = vpop.xlane.xlu0 %1408  ;;  %v1754_v26 = vsel %vm1732_vm12, %v1655_v46, %v1753_v10  ;;  %v1659_v25 = vrot.slane %v5546_v63, %v5383_v33 }
 0x244   :  { %v1785_v41 = vsel %vm1775_vm13, %v1754_v26, -inf  ;;  %v5562_v26 = vmul.f32 0.088388346, %v1409_v59 }
 0x245   :  { %1786 = vmax.xlane.f32.xlu0 %v1785_v41  ;;  %v1663_v43 = vrot.slane %v5543_v39, %v5383_v33 }
 0x246   :  { %v1407_v18 = vpop.xlane.xlu1 %1406 }
 0x247   :  { %v5553_v56 = vmul.f32 0.088388346, %v1407_v18  ;;  %v1413_v38 = vpop.xlane.xlu0 %1412  ;;  %v1755_v54 = vsel %vm1720_vm6, %v1663_v43, %v1659_v25  ;;  %v5565_v18 = vmul.f32 0.088388346, %v1411_v13  ;;  %v1675_v25 = vrot.slane %v5562_v26, %v5383_v33 }
 0x248   :  { %v1756_v20 = vsel %vm1722_vm7, %v1667_v6, %v1755_v54  ;;  %v5576_v59 = vmul.f32 0.088388346, %v1413_v38 }
 0x249   :  { %v1671_v10 = vrot.slane %v5553_v56, %v5383_v33  ;;  %v1679_v13 = vrot.slane %v5565_v18, %v5383_v33 }
 0x24a   :  { %v1417_v46 = vpop.xlane.xlu1 %1416 }
 0x24b   :  { %v1419_v41 = vpop.xlane.xlu0 %1418  ;;  %v1757_v5 = vsel %vm1724_vm8, %v1671_v10, %v1756_v20  ;;  %v5568_v2 = vmul.f32 0.088388346, %v1417_v46  ;;  %v1683_v20 = vrot.slane %v5576_v59, %v5383_v33 }
 0x24c   :  { %v5570_v9 = vmul.f32 0.088388346, %v1419_v41  ;;  %v1758_v52 = vsel %vm1726_vm9, %v1675_v25, %v1757_v5 }
 0x24d   :  { %v1691_v54 = vrot.slane %v5568_v2, %v5383_v33  ;;  %v1759_v5 = vsel %vm1728_vm10, %v1679_v13, %v1758_v52 }
 0x24e   :  { %v1423_v43 = vpop.xlane.xlu1 %1422  ;;  %v1695_v10 = vrot.slane %v5570_v9, %v5383_v33 }
 0x24f   :  { %v1421_v48 = vpop.xlane.xlu0 %1420 }
 0x250   :  { %v5574_v58 = vmul.f32 0.088388346, %v1421_v48  ;;  %v5587_v48 = vmul.f32 0.088388346, %v1423_v43  ;;  %v1762_v25 = vsel %vm1720_vm6, %v1695_v10, %v1691_v54  ;;  %v1760_v43 = vsel %vm1730_vm11, %v1683_v20, %v1759_v5 }
 0x252   :  { %v1427_v46 = vpop.xlane.xlu1 %1426  ;;  %v1699_v6 = vrot.slane %v5574_v58, %v5383_v33 }
 0x253   :  { %v1415_v41 = vpop.xlane.xlu0 %1414  ;;  %v5603_v52 = vmul.f32 0.088388346, %v1427_v46 }
 0x254   :  { %v5589_v38 = vmul.f32 0.088388346, %v1415_v41  ;;  %v1763_v47 = vsel %vm1722_vm7, %v1699_v6, %v1762_v25  ;;  %v1703_v41 = vrot.slane %v5587_v48, %v5383_v33 }
 0x255   :  { %6483 = vst [vmem:[#allocation58_spill] sm:$0xff] %v5603_v52  ;;  %v1711_v46 = vrot.slane %v5603_v52, %v5383_v33 }
 0x256   :  { %6482 = vst [vmem:[#allocation57_spill] sm:$0xff] %v5589_v38  ;;  %v1687_v61 = vrot.slane %v5589_v38, %v5383_v33  ;;  %v1425_v31 = vpop.xlane.xlu1 %1424  ;;  %v1764_v40 = vsel %vm1724_vm8, %v1703_v41, %v1763_v47  ;;  %v5646_v38 = vsub.s32 5, %v5055_v11 }
 0x257   :  { %v5598_v50 = vmul.f32 0.088388346, %v1425_v31  ;;  %v1431_v37 = vpop.xlane.xlu0 %1430 }
 0x258   :  { %v1761_v13 = vsel %vm1732_vm12, %v1687_v61, %v1760_v43  ;;  %v5610_v6 = vmul.f32 0.088388346, %v1431_v37 }
 0x259   :  { %v1707_v54 = vrot.slane %v5598_v50, %v5383_v33  ;;  %v1788_v10 = vsel %vm1775_vm13, %v1761_v13, -inf  ;;  %v5629_v13 = vsub.s32 2, %v5055_v11 }
 0x25a   :  { %6484 = vst [vmem:[#allocation59_spill] sm:$0xff] %v5610_v6  ;;  %v1429_v31 = vpop.xlane.xlu1 %1428  ;;  %1789 = vmax.xlane.f32.xlu1 %v1788_v10  ;;  %v1719_v25 = vrot.slane %v5610_v6, %v5383_v33 }
 0x25b   :  { %v1765_v5 = vsel %vm1726_vm9, %v1707_v54, %v1764_v40  ;;  %v5613_v20 = vmul.f32 0.088388346, %v1429_v31  ;;  %v5626_v40 = vsub.s32 1, %v5055_v11  ;;  %v5632_v54 = vsub.s32 3, %v5055_v11 }
 0x25c   :  { %v1766_v43 = vsel %vm1728_vm10, %v1711_v46, %v1765_v5 }
 0x25d   :  { %6485 = vst [vmem:[#allocation60_spill] sm:$0xff] %v5613_v20  ;;  %v1715_v61 = vrot.slane %v5613_v20, %v5383_v33 }
 0x25f   :  { %v1767_v37 = vsel %vm1730_vm11, %v1715_v61, %v1766_v43 }
 0x260   :  { %v1768_v47 = vsel %vm1732_vm12, %v1719_v25, %v1767_v37 }
 0x261   :  { %v1791_v41 = vsel %vm1775_vm13, %v1768_v47, -inf  ;;  %v5642_v47 = vsub.s32 4, %v5055_v11 }
 0x262   :  { %1792 = vmax.xlane.f32.xlu0 %v1791_v41 }
 0x2a4   :  { %v1778_v10 = vpop.xlane.xlu1 %1777 }
 0x2a5   :  { %v1803_v31 = vrot.slane %v1778_v10, %v5077_v24  ;;  %v1807_v5 = vrot.slane %v1778_v10, %v5626_v40  ;;  %v1811_v46 = vrot.slane %v1778_v10, %v5629_v13  ;;  %v1815_v61 = vrot.slane %v1778_v10, %v5632_v54 }
 0x2a6   :  { %v1819_v52 = vrot.slane %v1778_v10, %v5642_v47 }
 0x2a7   :  { %v2040_v25 = vsub.f32 %v5387_v55, %v1803_v31  ;;  %v2041_v43 = vsub.f32 %v5385_v27, %v1807_v5  ;;  %v2042_v37 = vsub.f32 %v5389_v42, %v1811_v46  ;;  %v2043_v6 = vsub.f32 %v5399_v62, %v1815_v61 }
 0x2a8   :  { %v5650_v55 = vsub.s32 6, %v5055_v11  ;;  %v1823_v31 = vrot.slane %v1778_v10, %v5646_v38  ;;  %v2044_v5 = vsub.f32 %v5397_v57, %v1819_v52 }
 0x2a9   :  { %v2088_v41 = vmul.f32 1.442695, %v2040_v25  ;;  %v2090_v33 = vmul.f32 1.442695, %v2041_v43  ;;  %v2092_v20 = vmul.f32 1.442695, %v2042_v37 }
 0x2aa   :  { %v2094_v42 = vmul.f32 1.442695, %v2043_v6  ;;  %v5660_v43 = vsub.s32 7, %v5055_v11  ;;  %v1827_v6 = vrot.slane %v1778_v10, %v5650_v55  ;;  %v2096_v37 = vmul.f32 1.442695, %v2044_v5 }
 0x2ab   :  { %4578 = vpow2.f32 %v2088_v41 }
 0x2ac   :  { %4580 = vpow2.f32 %v2090_v33  ;;  %v1831_v11 = vrot.slane %v1778_v10, %v5660_v43 }
 0x2ad   :  { %4582 = vpow2.f32 %v2092_v20  ;;  %v2045_v20 = vsub.f32 %v5407_v49, %v1823_v31  ;;  %v2046_v49 = vsub.f32 %v5413_v23, %v1827_v6 }
 0x2ae   :  { %4584 = vpow2.f32 %v2094_v42 }
 0x2af   :  { %v1781_v27 = vpop.xlane.xlu0 %1780  ;;  %v2098_v31 = vmul.f32 1.442695, %v2045_v20 }
 0x2b0   :  { %v1839_v62 = vrot.slane %v1781_v27, %v5626_v40  ;;  %v1843_v46 = vrot.slane %v1781_v27, %v5629_v13  ;;  %v1847_v61 = vrot.slane %v1781_v27, %v5632_v54  ;;  %v1851_v42 = vrot.slane %v1781_v27, %v5642_v47 }
 0x2b1   :  { %v1835_v10 = vrot.slane %v1781_v27, %v5077_v24  ;;  %v1859_v23 = vrot.slane %v1781_v27, %v5650_v55 }
 0x2b2   :  { %v2049_v25 = vsub.f32 %v5417_v51, %v1839_v62  ;;  %v2050_v33 = vsub.f32 %v5423_v12, %v1843_v46  ;;  %v2051_v51 = vsub.f32 %v5426_v3, %v1847_v61  ;;  %v1855_v62 = vrot.slane %v1781_v27, %v5646_v38 }
 0x2b3   :  { %v2052_v46 = vsub.f32 %v5439_v7, %v1851_v42  ;;  %v2047_v61 = vsub.f32 %v5410_v34, %v1831_v11  ;;  %v2048_v34 = vsub.f32 %v5428_v21, %v1835_v10 }
 0x2b4   :  { %v2106_v52 = vmul.f32 1.442695, %v2049_v25  ;;  %v2108_v12 = vmul.f32 1.442695, %v2050_v33  ;;  %v2110_v3 = vmul.f32 1.442695, %v2051_v51  ;;  %v2053_v6 = vsub.f32 %v5443_v14, %v1855_v62 }
 0x2b5   :  { %v5664_v57 = vpop.eup %4578  ;;  %v2100_v25 = vmul.f32 1.442695, %v2046_v49  ;;  %v2112_v20 = vmul.f32 1.442695, %v2052_v46  ;;  %v2102_v7 = vmul.f32 1.442695, %v2047_v61 }
 0x2b6   :  { %v5666_v41 = vpop.eup %4580  ;;  %2233 = vperm.xlu1 %4577, %v5664_v57   ;;  %4586 = vpow2.f32 %v2106_v52  ;;  %v2114_v14 = vmul.f32 1.442695, %v2053_v6 }
 0x2b7   :  { %2236 = vperm.xlu0 %4576, %v5666_v41   ;;  %4588 = vpow2.f32 %v2096_v37  ;;  %v5674_v5 = vpop.eup %4582  ;;  %v1863_v37 = vrot.slane %v1781_v27, %v5660_v43  ;;  %v2104_v27 = vmul.f32 1.442695, %v2048_v34 }
 0x2b8   :  { %4590 = vpow2.f32 %v2108_v12  ;;  %v5681_v33 = vpop.eup %4584  ;;  %v2054_v12 = vsub.f32 %v5453_v15, %v1859_v23 }
 0x2b9   :  { %4592 = vpow2.f32 %v2098_v31  ;;  %v2055_v21 = vsub.f32 %v5450_v53, %v1863_v37 }
 0x2ba   :  { %2239 = vperm.xlu1 %4577, %v5674_v5   ;;  %4594 = vpow2.f32 %v2110_v3  ;;  %v2116_v15 = vmul.f32 1.442695, %v2054_v12 }
 0x2bb   :  { %4596 = vpow2.f32 %v2100_v25  ;;  %v2118_v53 = vmul.f32 1.442695, %v2055_v21 }
 0x2bc   :  { %4598 = vpow2.f32 %v2112_v20 }
 0x2bd   :  { %4600 = vpow2.f32 %v2102_v7 }
 0x2be   :  { %2242 = vperm.xlu1 %4577, %v5681_v33   ;;  %4602 = vpow2.f32 %v2114_v14 }
 0x2bf   :  { %4604 = vpow2.f32 %v2104_v27 }
 0x2c0   :  { %v5688_v52 = vpop.xlane.xlu1 %1783  ;;  %v5690_v42 = vpop.eup %4586  ;;  %4606 = vpow2.f32 %v2116_v15 }
 0x2c1   :  { %v5692_v51 = vpop.eup %4588  ;;  %2260 = vperm.xlu0 %4576, %v5690_v42   ;;  %v1867_v11 = vrot.slane %v5688_v52, %v5077_v24  ;;  %v1871_v49 = vrot.slane %v5688_v52, %v5626_v40  ;;  %v1875_v46 = vrot.slane %v5688_v52, %v5629_v13  ;;  %v1879_v61 = vrot.slane %v5688_v52, %v5632_v54 }
 0x2c2   :  { %2245 = vperm.xlu1 %4577, %v5692_v51   ;;  %v5702_v31 = vpop.eup %4590  ;;  %v1895_v6 = vrot.slane %v5688_v52, %v5660_v43  ;;  %4608 = vpow2.f32 %v2118_v53  ;;  %v1883_v7 = vrot.slane %v5688_v52, %v5642_v47 }
 0x2c3   :  { %v5704_v62 = vpop.eup %4592  ;;  %v2056_v3 = vsub.f32 %v5462_v16, %v1867_v11  ;;  %v2057_v25 = vsub.f32 %v5466_v4, %v1871_v49  ;;  %v2058_v16 = vsub.f32 %v5471_v60, %v1875_v46  ;;  %v2059_v4 = vsub.f32 %v5475_v36, %v1879_v61 }
 0x2c4   :  { %v5714_v10 = vpop.eup %4594  ;;  %v2063_v14 = vsub.f32 %v5489_v1, %v1895_v6  ;;  %v1887_v11 = vrot.slane %v5688_v52, %v5646_v38  ;;  %v2060_v21 = vsub.f32 %v5481_v28, %v1883_v7  ;;  %v1891_v28 = vrot.slane %v5688_v52, %v5650_v55 }
 0x2c5   :  { %2263 = vperm.xlu0 %4576, %v5702_v31   ;;  %v5716_v23 = vpop.eup %4596  ;;  %v2120_v20 = vmul.f32 1.442695, %v2056_v3  ;;  %v2122_v37 = vmul.f32 1.442695, %v2057_v25  ;;  %v2124_v60 = vmul.f32 1.442695, %v2058_v16 }
 0x2c6   :  { %2248 = vperm.xlu1 %4577, %v5704_v62   ;;  %v5726_v34 = vpop.eup %4598  ;;  %v2126_v36 = vmul.f32 1.442695, %v2059_v4  ;;  %v2134_v1 = vmul.f32 1.442695, %v2063_v14  ;;  %v2061_v53 = vsub.f32 %v5485_v17, %v1887_v11  ;;  %v2128_v61 = vmul.f32 1.442695, %v2060_v21 }
 0x2c7   :  { %v5728_v12 = vpop.eup %4600  ;;  %4610 = vpow2.f32 %v2120_v20  ;;  %v2062_v17 = vsub.f32 %v5493_v35, %v1891_v28 }
 0x2c8   :  { %4612 = vpow2.f32 %v2122_v37  ;;  %v5736_v27 = vpop.eup %4602  ;;  %v2130_v52 = vmul.f32 1.442695, %v2061_v53 }
 0x2c9   :  { %2266 = vperm.xlu0 %4576, %v5714_v10   ;;  %v5738_v49 = vpop.eup %4604  ;;  %4614 = vpow2.f32 %v2124_v60  ;;  %v2132_v35 = vmul.f32 1.442695, %v2062_v17 }
 0x2ca   :  { %2251 = vperm.xlu1 %4577, %v5716_v23   ;;  %4616 = vpow2.f32 %v2126_v36  ;;  %v5747_v25 = vpop.eup %4606 }
 0x2cb   :  { %4618 = vpow2.f32 %v2134_v1 }
 0x2cc   :  { %v5750_v16 = vpop.eup %4608  ;;  %4620 = vpow2.f32 %v2128_v61 }
 0x2cd   :  { %2269 = vperm.xlu0 %4576, %v5726_v34  }
 0x2ce   :  { %2254 = vperm.xlu1 %4577, %v5728_v12  }
 0x2d1   :  { %2272 = vperm.xlu0 %4576, %v5736_v27   ;;  %v5758_v14 = vpop.eup %4610 }
 0x2d2   :  { %v1787_v15 = vpop.xlane.xlu0 %1786  ;;  %2257 = vperm.xlu1 %4577, %v5738_v49  }
 0x2d3   :  { %v1903_v46 = vrot.slane %v1787_v15, %v5626_v40  ;;  %v1907_v3 = vrot.slane %v1787_v15, %v5629_v13  ;;  %v1911_v20 = vrot.slane %v1787_v15, %v5632_v54  ;;  %v1899_v37 = vrot.slane %v1787_v15, %v5077_v24 }
 0x2d4   :  { %v1915_v60 = vrot.slane %v1787_v15, %v5642_v47  ;;  %v1923_v21 = vrot.slane %v1787_v15, %v5650_v55 }
 0x2d5   :  { %v2065_v6 = vsub.f32 %v5509_v22, %v1903_v46  ;;  %2275 = vperm.xlu0 %4576, %v5747_v25   ;;  %v2066_v7 = vsub.f32 %v5507_v8, %v1907_v3  ;;  %v5760_v22 = vpop.eup %4612  ;;  %v2067_v8 = vsub.f32 %v5517_v44, %v1911_v20  ;;  %v2064_v36 = vsub.f32 %v5504_v0, %v1899_v37 }
 0x2d6   :  { %2278 = vperm.xlu1 %4577, %v5750_v16   ;;  %v5768_v1 = vpop.eup %4614  ;;  %v1919_v3 = vrot.slane %v1787_v15, %v5646_v38  ;;  %v2068_v28 = vsub.f32 %v5525_v45, %v1915_v60  ;;  %v2070_v53 = vsub.f32 %v5523_v19, %v1923_v21  ;;  %v1927_v20 = vrot.slane %v1787_v15, %v5660_v43 }
 0x2d7   :  { %v2138_v4 = vmul.f32 1.442695, %v2065_v6  ;;  %v2140_v11 = vmul.f32 1.442695, %v2066_v7  ;;  %v5770_v46 = vpop.eup %4616  ;;  %v2142_v44 = vmul.f32 1.442695, %v2067_v8 }
 0x2d8   :  { %v2136_v61 = vmul.f32 1.442695, %v2064_v36  ;;  %v5777_v6 = vpop.eup %4618  ;;  %v2069_v7 = vsub.f32 %v5520_v29, %v1919_v3  ;;  %v2144_v45 = vmul.f32 1.442695, %v2068_v28  ;;  %v2148_v17 = vmul.f32 1.442695, %v2070_v53 }
 0x2d9   :  { %4622 = vpow2.f32 %v2138_v4  ;;  %2281 = vperm.xlu0 %4576, %v5758_v14   ;;  %v5779_v0 = vpop.eup %4620 }
 0x2da   :  { %2284 = vperm.xlu1 %4577, %v5760_v22   ;;  %4624 = vpow2.f32 %v2130_v52  ;;  %v2071_v52 = vsub.f32 %v5537_v32, %v1927_v20  ;;  %v2146_v37 = vmul.f32 1.442695, %v2069_v7 }
 0x2db   :  { %4626 = vpow2.f32 %v2140_v11 }
 0x2dc   :  { %4628 = vpow2.f32 %v2132_v35  ;;  %v2150_v3 = vmul.f32 1.442695, %v2071_v52 }
 0x2dd   :  { %2287 = vperm.xlu0 %4576, %v5768_v1   ;;  %4630 = vpow2.f32 %v2142_v44 }
 0x2de   :  { %2290 = vperm.xlu1 %4577, %v5770_v46   ;;  %4632 = vpow2.f32 %v2136_v61 }
 0x2df   :  { %4634 = vpow2.f32 %v2144_v45 }
 0x2e0   :  { %4636 = vpow2.f32 %v2148_v17 }
 0x2e1   :  { %2302 = vperm.xlu0 %4576, %v5777_v6   ;;  %4638 = vpow2.f32 %v2146_v37 }
 0x2e2   :  { %2293 = vperm.xlu1 %4577, %v5779_v0  }
 0x2e3   :  { %v5785_v4 = vpop.eup %4622 }
 0x2e4   :  { %v5787_v19 = vpop.eup %4624 }
 0x2e5   :  { %2308 = vperm.xlu0 %4576, %v5785_v4   ;;  %v5800_v11 = vpop.eup %4626 }
 0x2e6   :  { %2296 = vperm.xlu1 %4577, %v5787_v19   ;;  %v5802_v35 = vpop.eup %4628 }
 0x2e7   :  { %v5792_v15 = vpop.xlane.xlu1 %1789  ;;  %v5813_v61 = vpop.eup %4630 }
 0x2e8   :  { %v1931_v29 = vrot.slane %v5792_v15, %v5077_v24  ;;  %v1935_v60 = vrot.slane %v5792_v15, %v5626_v40  ;;  %v1939_v8 = vrot.slane %v5792_v15, %v5629_v13  ;;  %v1947_v32 = vrot.slane %v5792_v15, %v5642_v47  ;;  %v5815_v20 = vpop.eup %4632 }
 0x2e9   :  { %2311 = vperm.xlu0 %4576, %v5800_v11   ;;  %v1943_v28 = vrot.slane %v5792_v15, %v5632_v54  ;;  %v5827_v37 = vpop.eup %4634 }
 0x2ea   :  { %v2072_v21 = vsub.f32 %v5546_v63, %v1931_v29  ;;  %v2074_v36 = vsub.f32 %v5551_v30, %v1939_v8  ;;  %v2073_v44 = vsub.f32 %v5543_v39, %v1935_v60  ;;  %2299 = vperm.xlu1 %4577, %v5802_v35   ;;  %v1951_v63 = vrot.slane %v5792_v15, %v5646_v38  ;;  %v5829_v29 = vpop.eup %4636 }
 0x2eb   :  { %v2076_v30 = vsub.f32 %v5562_v26, %v1947_v32  ;;  %v2075_v45 = vsub.f32 %v5553_v56, %v1943_v28  ;;  %v1955_v26 = vrot.slane %v5792_v15, %v5650_v55 }
 0x2ec   :  { %v2152_v53 = vmul.f32 1.442695, %v2072_v21  ;;  %v2156_v7 = vmul.f32 1.442695, %v2074_v36  ;;  %v2154_v39 = vmul.f32 1.442695, %v2073_v44  ;;  %v2077_v60 = vsub.f32 %v5565_v18, %v1951_v63  ;;  %v5839_v36 = vpop.eup %4638 }
 0x2ed   :  { %2314 = vperm.xlu0 %4576, %v5813_v61   ;;  %v2160_v8 = vmul.f32 1.442695, %v2076_v30  ;;  %v2158_v56 = vmul.f32 1.442695, %v2075_v45 }
 0x2ee   :  { %4640 = vpow2.f32 %v2152_v53  ;;  %2305 = vperm.xlu1 %4577, %v5815_v20   ;;  %v2162_v28 = vmul.f32 1.442695, %v2077_v60 }
 0x2ef   :  { %4642 = vpow2.f32 %v2150_v3  ;;  %v5823_v17 = vpop.xlane.xlu0 %1792  ;;  %v2078_v3 = vsub.f32 %v5576_v59, %v1955_v26 }
 0x2f0   :  { %v1963_v52 = vrot.slane %v5823_v17, %v5077_v24  ;;  %4644 = vpow2.f32 %v2156_v7  ;;  %v1975_v32 = vrot.slane %v5823_v17, %v5632_v54  ;;  %v1967_v18 = vrot.slane %v5823_v17, %v5626_v40 }
 0x2f1   :  { %2317 = vperm.xlu0 %4576, %v5827_v37   ;;  %4646 = vpow2.f32 %v2154_v39  ;;  %v1979_v44 = vrot.slane %v5823_v17, %v5642_v47  ;;  %v2164_v59 = vmul.f32 1.442695, %v2078_v3  ;;  %v1971_v7 = vrot.slane %v5823_v17, %v5629_v13 }
 0x2f2   :  { %v2080_v21 = vsub.f32 %v5568_v2, %v1963_v52  ;;  %2323 = vperm.xlu1 %4577, %v5829_v29   ;;  %4648 = vpow2.f32 %v2160_v8  ;;  %v2083_v53 = vsub.f32 %v5587_v48, %v1975_v32  ;;  %v2081_v45 = vsub.f32 %v5570_v9, %v1967_v18  ;;  %v6488_v32 = vld [vmem:[#allocation58_spill] sm:$0xff] }
 0x2f3   :  { %4650 = vpow2.f32 %v2158_v56  ;;  %v1983_v39 = vrot.slane %v5823_v17, %v5646_v38  ;;  %v2084_v48 = vsub.f32 %v5598_v50, %v1979_v44  ;;  %v1959_v8 = vrot.slane %v5792_v15, %v5660_v43  ;;  %v6491_v15 = vld [vmem:[#allocation57_spill] sm:$0xff] }
 0x2f4   :  { %v2168_v2 = vmul.f32 1.442695, %v2080_v21  ;;  %4652 = vpow2.f32 %v2162_v28  ;;  %v2174_v52 = vmul.f32 1.442695, %v2083_v53  ;;  %v2082_v9 = vsub.f32 %v5574_v58, %v1971_v7 }
 0x2f5   :  { %2320 = vperm.xlu0 %4576, %v5839_v36   ;;  %v2170_v56 = vmul.f32 1.442695, %v2081_v45  ;;  %v1987_v50 = vrot.slane %v5823_v17, %v5650_v55  ;;  %v2085_v21 = vsub.f32 %v6488_v32, %v1983_v39  ;;  %v2176_v3 = vmul.f32 1.442695, %v2084_v48 }
 0x2f6   :  { %4654 = vpow2.f32 %v2168_v2  ;;  %v2079_v44 = vsub.f32 %v6491_v15, %v1959_v8  ;;  %v1991_v58 = vrot.slane %v5823_v17, %v5660_v43  ;;  %v2172_v53 = vmul.f32 1.442695, %v2082_v9  ;;  %v6492_v2 = vld [vmem:[#allocation60_spill] sm:$0xff] }
 0x2f7   :  { %4656 = vpow2.f32 %v2164_v59  ;;  %v2086_v59 = vsub.f32 %v6492_v2, %v1987_v50  ;;  %v2178_v7 = vmul.f32 1.442695, %v2085_v21 }
 0x2f8   :  { %v5848_v63 = vpop.eup %4640  ;;  %4658 = vpow2.f32 %v2174_v52  ;;  %v2166_v48 = vmul.f32 1.442695, %v2079_v44  ;;  %v6495_v52 = vld [vmem:[#allocation59_spill] sm:$0xff] }
 0x2f9   :  { %6486 = vst [vmem:[#allocation61_spill] sm:$0xff] %v5848_v63  ;;  %v5850_v30 = vpop.eup %4642  ;;  %2329 = vperm.xlu1 %4577, %v5848_v63   ;;  %4660 = vpow2.f32 %v2170_v56  ;;  %v2087_v8 = vsub.f32 %v6495_v52, %v1991_v58  ;;  %v2180_v17 = vmul.f32 1.442695, %v2086_v59 }
 0x2fa   :  { %2326 = vperm.xlu0 %4576, %v5850_v30   ;;  %v5860_v26 = vpop.eup %4644  ;;  %4662 = vpow2.f32 %v2176_v3 }
 0x2fb   :  { %6487 = vst [vmem:[#allocation62_spill] sm:$0xff] %v5860_v26  ;;  %v5862_v60 = vpop.eup %4646  ;;  %4664 = vpow2.f32 %v2172_v53  ;;  %v2182_v50 = vmul.f32 1.442695, %v2087_v8 }
 0x2fc   :  { %v5872_v28 = vpop.eup %4648  ;;  %4666 = vpow2.f32 %v2178_v7 }
 0x2fd   :  { %2335 = vperm.xlu1 %4577, %v5860_v26   ;;  %6489 = vst [vmem:[#allocation58_spill] sm:$0xff] %v5872_v28  ;;  %v5874_v18 = vpop.eup %4650  ;;  %4668 = vpow2.f32 %v2166_v48 }
 0x2fe   :  { %2332 = vperm.xlu0 %4576, %v5862_v60   ;;  %6490 = vst [vmem:[#allocation63_spill] sm:$0xff] %v5874_v18  ;;  %v5882_v45 = vpop.eup %4652  ;;  %4670 = vpow2.f32 %v2180_v17 }
 0x2ff   :  { %6493 = vst [vmem:[#allocation57_spill] sm:$0xff] %v5882_v45  ;;  %4672 = vpow2.f32 %v2182_v50 }
 0x300   :  { %v5884_v39 = vpop.eup %4654 }
 0x301   :  { %2341 = vperm.xlu1 %4577, %v5872_v28   ;;  %6494 = vst [vmem:[#allocation60_spill] sm:$0xff] %v5884_v39  ;;  %v5889_v9 = vpop.eup %4656 }
 0x302   :  { %2338 = vperm.xlu0 %4576, %v5874_v18   ;;  %6496 = vst [vmem:[#allocation59_spill] sm:$0xff] %v5889_v9  ;;  %v5891_v56 = vpop.eup %4658 }
 0x303   :  { %6497 = vst [vmem:[#allocation64_spill] sm:$0xff] %v5891_v56  ;;  %v5895_v32 = vpop.eup %4660 }
 0x304   :  { %6498 = vst [vmem:[#allocation65_spill] sm:$0xff] %v5895_v32  ;;  %v5897_v21 = vpop.eup %4662 }
 0x305   :  { %2344 = vperm.xlu1 %4577, %v5882_v45   ;;  %6499 = vst [vmem:[#allocation66_spill] sm:$0xff] %v5897_v21  ;;  %v5901_v3 = vpop.eup %4664 }
 0x306   :  { %2353 = vperm.xlu0 %4576, %v5884_v39   ;;  %6500 = vst [vmem:[#allocation67_spill] sm:$0xff] %v5901_v3  ;;  %v5903_v15 = vpop.eup %4666 }
 0x307   :  { %6501 = vst [vmem:[#allocation68_spill] sm:$0xff] %v5903_v15  ;;  %v5907_v44 = vpop.eup %4668 }
 0x308   :  { %6502 = vst [vmem:[#allocation69_spill] sm:$0xff] %v5907_v44  ;;  %v5909_v58 = vpop.eup %4670 }
 0x309   :  { %2347 = vperm.xlu1 %4577, %v5889_v9   ;;  %6503 = vst [vmem:[#allocation70_spill] sm:$0xff] %v5909_v58  ;;  %v5913_v53 = vpop.eup %4672 }
 0x30a   :  { %2362 = vperm.xlu0 %4576, %v5891_v56   ;;  %6504 = vst [vmem:[#allocation71_spill] sm:$0xff] %v5913_v53 }
 0x30d   :  { %2356 = vperm.xlu1 %4577, %v5895_v32  }
 0x30e   :  { %2365 = vperm.xlu0 %4576, %v5897_v21  }
 0x311   :  { %2359 = vperm.xlu1 %4577, %v5901_v3   ;;  %v6505_v3 = vld [vmem:[#allocation56_spill] sm:$0xff] }
 0x312   :  { %2368 = vperm.xlu0 %4576, %v5903_v15  }
 0x315   :  { %2350 = vperm.xlu1 %4577, %v5907_v44  }
 0x316   :  { %2371 = vperm.xlu0 %4576, %v5909_v58  }
 0x319   :  { %2374 = vperm.xlu1 %4577, %v5913_v53  }
 0x335   :  { %v2234_v2 = vpop.permute.xlu1 %2233 }
 0x336   :  { %v2237_v7 = vpop.permute.xlu0 %2236  ;;  %v2379_v15 = vrot.slane %v2234_v2, %v6505_v3 }
 0x337   :  { %v2383_v32 = vrot.slane %v2237_v7, %v6505_v3 }
 0x339   :  { %v2240_v59 = vpop.permute.xlu1 %2239  ;;  %v2568_v56 = vsel %vm1720_vm6, %v2383_v32, %v2379_v15 }
 0x33a   :  { %v2387_v44 = vrot.slane %v2240_v59, %v6505_v3 }
 0x33c   :  { %v2569_v39 = vsel %vm1722_vm7, %v2387_v44, %v2568_v56 }
 0x33d   :  { %v2243_v48 = vpop.permute.xlu1 %2242 }
 0x33e   :  { %v2391_v58 = vrot.slane %v2243_v48, %v6505_v3 }
 0x340   :  { %v2261_v52 = vpop.permute.xlu0 %2260  ;;  %v2570_v2 = vsel %vm1724_vm8, %v2391_v58, %v2569_v39 }
 0x341   :  { %v2246_v8 = vpop.permute.xlu1 %2245  ;;  %v2415_v44 = vrot.slane %v2261_v52, %v6505_v3 }
 0x342   :  { %v2395_v9 = vrot.slane %v2246_v8, %v6505_v3 }
 0x344   :  { %v2264_v17 = vpop.permute.xlu0 %2263  ;;  %v2571_v7 = vsel %vm1726_vm9, %v2395_v9, %v2570_v2 }
 0x345   :  { %v2249_v50 = vpop.permute.xlu1 %2248  ;;  %v2419_v9 = vrot.slane %v2264_v17, %v6505_v3 }
 0x346   :  { %v2399_v45 = vrot.slane %v2249_v50, %v6505_v3 }
 0x348   :  { %v2267_v21 = vpop.permute.xlu0 %2266  ;;  %v2572_v48 = vsel %vm1728_vm10, %v2399_v45, %v2571_v7 }
 0x349   :  { %v2252_v53 = vpop.permute.xlu1 %2251  ;;  %v2423_v58 = vrot.slane %v2267_v21, %v6505_v3 }
 0x34a   :  { %v2403_v28 = vrot.slane %v2252_v53, %v6505_v3 }
 0x34c   :  { %v2270_v26 = vpop.permute.xlu0 %2269  ;;  %v2573_v8 = vsel %vm1730_vm11, %v2403_v28, %v2572_v48 }
 0x34d   :  { %v2255_v59 = vpop.permute.xlu1 %2254  ;;  %v2427_v28 = vrot.slane %v2270_v26, %v6505_v3 }
 0x34e   :  { %v2407_v18 = vrot.slane %v2255_v59, %v6505_v3 }
 0x350   :  { %v2273_v63 = vpop.permute.xlu0 %2272  ;;  %v2574_v32 = vsel %vm1732_vm12, %v2407_v18, %v2573_v8 }
 0x351   :  { %v2258_v15 = vpop.permute.xlu1 %2257  ;;  %v2616_v56 = vsel %vm1775_vm13, %v2574_v32, 0.0  ;;  %v2431_v2 = vrot.slane %v2273_v63, %v6505_v3 }
 0x352   :  { %v2411_v39 = vrot.slane %v2258_v15, %v6505_v3  ;;  %2617 = vadd.xlane.f32.xlu0 %v2616_v56 }
 0x354   :  { %v2575_v45 = vsel %vm1720_vm6, %v2415_v44, %v2411_v39  ;;  %v2276_v53 = vpop.permute.xlu0 %2275 }
 0x355   :  { %v2576_v50 = vsel %vm1722_vm7, %v2419_v9, %v2575_v45  ;;  %v2279_v18 = vpop.permute.xlu1 %2278  ;;  %v2435_v52 = vrot.slane %v2276_v53, %v6505_v3 }
 0x356   :  { %v2577_v7 = vsel %vm1724_vm8, %v2423_v58, %v2576_v50  ;;  %v2439_v17 = vrot.slane %v2279_v18, %v6505_v3 }
 0x357   :  { %v2578_v59 = vsel %vm1726_vm9, %v2427_v28, %v2577_v7 }
 0x358   :  { %v2282_v48 = vpop.permute.xlu0 %2281  ;;  %v2579_v21 = vsel %vm1728_vm10, %v2431_v2, %v2578_v59 }
 0x359   :  { %v2285_v8 = vpop.permute.xlu1 %2284  ;;  %v2580_v32 = vsel %vm1730_vm11, %v2435_v52, %v2579_v21  ;;  %v2443_v39 = vrot.slane %v2282_v48, %v6505_v3 }
 0x35a   :  { %v2581_v26 = vsel %vm1732_vm12, %v2439_v17, %v2580_v32  ;;  %v2447_v9 = vrot.slane %v2285_v8, %v6505_v3 }
 0x35b   :  { %v2619_v15 = vsel %vm1775_vm13, %v2581_v26, 0.0 }
 0x35c   :  { %2620 = vadd.xlane.f32.xlu1 %v2619_v15  ;;  %v2288_v63 = vpop.permute.xlu0 %2287  ;;  %v2582_v28 = vsel %vm1720_vm6, %v2447_v9, %v2443_v39 }
 0x35d   :  { %v2291_v56 = vpop.permute.xlu1 %2290  ;;  %v2451_v45 = vrot.slane %v2288_v63, %v6505_v3 }
 0x35e   :  { %v2455_v50 = vrot.slane %v2291_v56, %v6505_v3 }
 0x35f   :  { %v2583_v2 = vsel %vm1722_vm7, %v2451_v45, %v2582_v28 }
 0x360   :  { %v2303_v44 = vpop.permute.xlu0 %2302  ;;  %v2584_v17 = vsel %vm1724_vm8, %v2455_v50, %v2583_v2 }
 0x361   :  { %v2294_v58 = vpop.permute.xlu1 %2293  ;;  %v2471_v32 = vrot.slane %v2303_v44, %v6505_v3 }
 0x362   :  { %v2459_v7 = vrot.slane %v2294_v58, %v6505_v3 }
 0x364   :  { %v2309_v53 = vpop.permute.xlu0 %2308  ;;  %v2585_v21 = vsel %vm1726_vm9, %v2459_v7, %v2584_v17 }
 0x365   :  { %v2297_v18 = vpop.permute.xlu1 %2296  ;;  %v2479_v9 = vrot.slane %v2309_v53, %v6505_v3 }
 0x366   :  { %v2463_v52 = vrot.slane %v2297_v18, %v6505_v3 }
 0x368   :  { %v2312_v59 = vpop.permute.xlu0 %2311  ;;  %v2586_v26 = vsel %vm1728_vm10, %v2463_v52, %v2585_v21 }
 0x369   :  { %v2300_v48 = vpop.permute.xlu1 %2299  ;;  %v2483_v28 = vrot.slane %v2312_v59, %v6505_v3 }
 0x36a   :  { %v2467_v8 = vrot.slane %v2300_v48, %v6505_v3 }
 0x36c   :  { %v2315_v15 = vpop.permute.xlu0 %2314  ;;  %v2587_v63 = vsel %vm1730_vm11, %v2467_v8, %v2586_v26 }
 0x36d   :  { %v2306_v56 = vpop.permute.xlu1 %2305  ;;  %v2588_v39 = vsel %vm1732_vm12, %v2471_v32, %v2587_v63  ;;  %v2487_v18 = vrot.slane %v2315_v15, %v6505_v3 }
 0x36e   :  { %v2475_v58 = vrot.slane %v2306_v56, %v6505_v3  ;;  %v2622_v45 = vsel %vm1775_vm13, %v2588_v39, 0.0 }
 0x36f   :  { %2623 = vadd.xlane.f32.xlu0 %v2622_v45 }
 0x370   :  { %v2589_v50 = vsel %vm1720_vm6, %v2479_v9, %v2475_v58  ;;  %v2318_v44 = vpop.permute.xlu0 %2317 }
 0x371   :  { %v2590_v2 = vsel %vm1722_vm7, %v2483_v28, %v2589_v50  ;;  %v2491_v7 = vrot.slane %v2318_v44, %v6505_v3  ;;  %v2324_v17 = vpop.permute.xlu1 %2323 }
 0x372   :  { %v2591_v52 = vsel %vm1724_vm8, %v2487_v18, %v2590_v2  ;;  %v2499_v32 = vrot.slane %v2324_v17, %v6505_v3 }
 0x373   :  { %v2592_v21 = vsel %vm1726_vm9, %v2491_v7, %v2591_v52 }
 0x374   :  { %v2321_v53 = vpop.permute.xlu0 %2320 }
 0x375   :  { %v2495_v48 = vrot.slane %v2321_v53, %v6505_v3 }
 0x377   :  { %v2593_v59 = vsel %vm1728_vm10, %v2495_v48, %v2592_v21 }
 0x378   :  { %v2330_v8 = vpop.permute.xlu1 %2329  ;;  %v2594_v63 = vsel %vm1730_vm11, %v2499_v32, %v2593_v59 }
 0x379   :  { %v2327_v26 = vpop.permute.xlu0 %2326  ;;  %v2507_v52 = vrot.slane %v2330_v8, %v6505_v3 }
 0x37a   :  { %v2503_v15 = vrot.slane %v2327_v26, %v6505_v3 }
 0x37c   :  { %v2336_v56 = vpop.permute.xlu1 %2335  ;;  %v2595_v39 = vsel %vm1732_vm12, %v2503_v15, %v2594_v63 }
 0x37d   :  { %v2333_v9 = vpop.permute.xlu0 %2332  ;;  %v2625_v58 = vsel %vm1775_vm13, %v2595_v39, 0.0  ;;  %v2515_v17 = vrot.slane %v2336_v56, %v6505_v3 }
 0x37e   :  { %2626 = vadd.xlane.f32.xlu0 %v2625_v58  ;;  %v2511_v2 = vrot.slane %v2333_v9, %v6505_v3 }
 0x380   :  { %v2342_v45 = vpop.permute.xlu1 %2341  ;;  %v2596_v48 = vsel %vm1720_vm6, %v2511_v2, %v2507_v52 }
 0x381   :  { %v2339_v28 = vpop.permute.xlu0 %2338  ;;  %v2523_v26 = vrot.slane %v2342_v45, %v6505_v3  ;;  %v2597_v15 = vsel %vm1722_vm7, %v2515_v17, %v2596_v48 }
 0x382   :  { %v2519_v21 = vrot.slane %v2339_v28, %v6505_v3 }
 0x384   :  { %v2345_v50 = vpop.permute.xlu1 %2344  ;;  %v2598_v9 = vsel %vm1724_vm8, %v2519_v21, %v2597_v15 }
 0x385   :  { %v2354_v44 = vpop.permute.xlu0 %2353  ;;  %v2527_v8 = vrot.slane %v2345_v50, %v6505_v3 }
 0x386   :  { %v2539_v63 = vrot.slane %v2354_v44, %v6505_v3  ;;  %v2599_v44 = vsel %vm1726_vm9, %v2523_v26, %v2598_v9 }
 0x387   :  { %v2600_v50 = vsel %vm1728_vm10, %v2527_v8, %v2599_v44 }
 0x388   :  { %v2348_v18 = vpop.permute.xlu1 %2347 }
 0x389   :  { %v2363_v7 = vpop.permute.xlu0 %2362  ;;  %v2531_v2 = vrot.slane %v2348_v18, %v6505_v3 }
 0x38a   :  { %v2551_v28 = vrot.slane %v2363_v7, %v6505_v3 }
 0x38c   :  { %v2357_v53 = vpop.permute.xlu1 %2356 }
 0x38d   :  { %v2366_v59 = vpop.permute.xlu0 %2365  ;;  %v2543_v32 = vrot.slane %v2357_v53, %v6505_v3 }
 0x38e   :  { %v2555_v45 = vrot.slane %v2366_v59, %v6505_v3  ;;  %v2601_v59 = vsel %vm1730_vm11, %v2531_v2, %v2600_v50 }
 0x38f   :  { %v2603_v52 = vsel %vm1720_vm6, %v2543_v32, %v2539_v63 }
 0x390   :  { %v2360_v39 = vpop.permute.xlu1 %2359 }
 0x391   :  { %v2547_v56 = vrot.slane %v2360_v39, %v6505_v3  ;;  %v2369_v58 = vpop.permute.xlu0 %2368 }
 0x392   :  { %v2559_v15 = vrot.slane %v2369_v58, %v6505_v3 }
 0x393   :  { %v2604_v17 = vsel %vm1722_vm7, %v2547_v56, %v2603_v52 }
 0x394   :  { %v2605_v53 = vsel %vm1724_vm8, %v2551_v28, %v2604_v17  ;;  %v2351_v48 = vpop.permute.xlu1 %2350 }
 0x395   :  { %v2606_v21 = vsel %vm1726_vm9, %v2555_v45, %v2605_v53  ;;  %v2535_v18 = vrot.slane %v2351_v48, %v6505_v3  ;;  %v2372_v7 = vpop.permute.xlu0 %2371 }
 0x396   :  { %v2563_v32 = vrot.slane %v2372_v7, %v6505_v3  ;;  %v2607_v63 = vsel %vm1728_vm10, %v2559_v15, %v2606_v21 }
 0x397   :  { %v2602_v26 = vsel %vm1732_vm12, %v2535_v18, %v2601_v59 }
 0x398   :  { %v2375_v39 = vpop.permute.xlu1 %2374  ;;  %v2628_v9 = vsel %vm1775_vm13, %v2602_v26, 0.0  ;;  %v2608_v56 = vsel %vm1730_vm11, %v2563_v32, %v2607_v63 }
 0x399   :  { %v2567_v8 = vrot.slane %v2375_v39, %v6505_v3  ;;  %2629 = vadd.xlane.f32.xlu1 %v2628_v9 }
 0x39b   :  { %v2609_v58 = vsel %vm1732_vm12, %v2567_v8, %v2608_v56 }
 0x39c   :  { %v2631_v28 = vsel %vm1775_vm13, %v2609_v58, 0.0 }
 0x39d   :  { %2632 = vadd.xlane.f32.xlu0 %v2631_v28 }
 0x3df   :  { %v2618_v52 = vpop.xlane.xlu0 %2617 }
 0x3e0   :  { %4674 = vrcp.f32 %v2618_v52 }
 0x3e9   :  { %v2621_v2 = vpop.xlane.xlu1 %2620 }
 0x3ea   :  { %v4675_v45 = vpop.eup %4674  ;;  %4676 = vrcp.f32 %v2621_v2 }
 0x3eb   :  { %v2653_v17 = vrot.slane %v4675_v45, %v5626_v40  ;;  %v2649_v44 = vrot.slane %v4675_v45, %v5077_v24  ;;  %v2657_v48 = vrot.slane %v4675_v45, %v5629_v13  ;;  %v2661_v21 = vrot.slane %v4675_v45, %v5632_v54 }
 0x3ec   :  { %v2665_v32 = vrot.slane %v4675_v45, %v5642_v47  ;;  %v2673_v9 = vrot.slane %v4675_v45, %v5650_v55  ;;  %v2677_v56 = vrot.slane %v4675_v45, %v5660_v43 }
 0x3ed   :  { %v2887_v53 = vmul.f32 %v5666_v41, %v2653_v17  ;;  %v2886_v3 = vmul.f32 %v5664_v57, %v2649_v44  ;;  %v2888_v50 = vmul.f32 %v5674_v5, %v2657_v48  ;;  %v2889_v18 = vmul.f32 %v5681_v33, %v2661_v21  ;;  %v3527_v44 = vld [vmem:[%s6349_s2 + $0x88] sm:$0xff]  ;;  %v3529_v48 = vld [vmem:[%s6349_s2 + $0x98] sm:$0xff] }
 0x3ee   :  { %v2890_v59 = vmul.f32 %v5692_v51, %v2665_v32  ;;  %v2669_v5 = vrot.slane %v4675_v45, %v5646_v38  ;;  %v2892_v51 = vmul.f32 %v5716_v23, %v2673_v9 }
 0x3ef   :  { %2941 = vperm.xlu0 %4576, %v2887_v53   ;;  %2936 = vperm.xlu1 %4577, %v2886_v3  }
 0x3f0   :  { %v2891_v39 = vmul.f32 %v5704_v62, %v2669_v5  ;;  %v2893_v62 = vmul.f32 %v5728_v12, %v2677_v56 }
 0x3f3   :  { %2946 = vperm.xlu1 %4577, %v2888_v50  }
 0x3f4   :  { %v4677_v15 = vpop.eup %4676 }
 0x3f5   :  { %v2685_v7 = vrot.slane %v4677_v15, %v5626_v40  ;;  %v2689_v57 = vrot.slane %v4677_v15, %v5629_v13  ;;  %v2693_v26 = vrot.slane %v4677_v15, %v5632_v54  ;;  %v2697_v8 = vrot.slane %v4677_v15, %v5642_v47 }
 0x3f6   :  { %v2701_v58 = vrot.slane %v4677_v15, %v5646_v38  ;;  %v2681_v28 = vrot.slane %v4677_v15, %v5077_v24  ;;  %v2705_v52 = vrot.slane %v4677_v15, %v5650_v55  ;;  %v2709_v45 = vrot.slane %v4677_v15, %v5660_v43 }
 0x3f7   :  { %2951 = vperm.xlu1 %4577, %v2889_v18   ;;  %v2895_v41 = vmul.f32 %v5690_v42, %v2685_v7  ;;  %v2896_v63 = vmul.f32 %v5702_v31, %v2689_v57  ;;  %v2897_v42 = vmul.f32 %v5714_v10, %v2693_v26  ;;  %v2898_v31 = vmul.f32 %v5726_v34, %v2697_v8  ;;  %v3530_v7 = vld [vmem:[%s6349_s2 + $0xa0] sm:$0xff] }
 0x3f8   :  { %v2899_v10 = vmul.f32 %v5736_v27, %v2701_v58  ;;  %v2894_v23 = vmul.f32 %v5738_v49, %v2681_v28  ;;  %v2900_v17 = vmul.f32 %v5747_v25, %v2705_v52  ;;  %v3526_v27 = vld [vmem:[%s6349_s2 + $0x80] sm:$0xff]  ;;  %v2901_v49 = vmul.f32 %v5750_v16, %v2709_v45  ;;  %v3528_v25 = vld [vmem:[%s6349_s2 + $0x90] sm:$0xff] }
 0x3f9   :  { %2981 = vperm.xlu0 %4576, %v2895_v41   ;;  %v4492_v3 = vpack.c.bf16 %v3527_v44, %v3526_v27  ;;  %v4496_v16 = vpack.c.bf16 %v3529_v48, %v3528_v25  ;;  %v3540_v44 = vld [vmem:[%s6349_s2 + $0xf0] sm:$0xff] }
 0x3fb   :  { %2956 = vperm.xlu1 %4577, %v2890_v59   ;;  %4493 = vmatprep.subr.bf16.mxu1 %v4492_v3 }
 0x3fc   :  { %v2624_v33 = vpop.xlane.xlu0 %2623  ;;  %4495 = vmatpush3.bf16.msra.mxu1 %v4492_v3 }
 0x3fd   :  { %2986 = vperm.xlu0 %4576, %v2896_v63   ;;  %4678 = vrcp.f32 %v2624_v33  ;;  %4497 = vmatprep.subr.bf16.mxu1 %v4496_v16 }
 0x3ff   :  { %2961 = vperm.xlu1 %4577, %v2891_v39   ;;  %v3533_v39 = vld [vmem:[%s6349_s2 + $0xb8] sm:$0xff] }
 0x400   :  { %4499 = vmatpush3.bf16.msra.mxu1 %v4496_v16 }
 0x401   :  { %2991 = vperm.xlu0 %4576, %v2897_v42  }
 0x403   :  { %2966 = vperm.xlu1 %4577, %v2892_v51  }
 0x405   :  { %2996 = vperm.xlu0 %4576, %v2898_v31  }
 0x407   :  { %2971 = vperm.xlu1 %4577, %v2893_v62   ;;  %v6040_v2 = vpop.eup %4678 }
 0x408   :  { %v2713_v12 = vrot.slane %v6040_v2, %v5077_v24  ;;  %v2717_v53 = vrot.slane %v6040_v2, %v5626_v40  ;;  %v2721_v21 = vrot.slane %v6040_v2, %v5629_v13  ;;  %v2725_v18 = vrot.slane %v6040_v2, %v5632_v54 }
 0x409   :  { %3001 = vperm.xlu0 %4576, %v2899_v10   ;;  %v2741_v57 = vrot.slane %v6040_v2, %v5660_v43  ;;  %v2729_v5 = vrot.slane %v6040_v2, %v5642_v47  ;;  %v2733_v33 = vrot.slane %v6040_v2, %v5646_v38  ;;  %v2737_v31 = vrot.slane %v6040_v2, %v5650_v55  ;;  %v3537_v10 = vld [vmem:[%s6349_s2 + $0xd8] sm:$0xff] }
 0x40a   :  { %v2902_v50 = vmul.f32 %v5758_v14, %v2713_v12  ;;  %v2903_v15 = vmul.f32 %v5760_v22, %v2717_v53  ;;  %v3531_v14 = vld [vmem:[%s6349_s2 + $0xa8] sm:$0xff]  ;;  %v2904_v41 = vmul.f32 %v5768_v1, %v2721_v21  ;;  %v2905_v59 = vmul.f32 %v5770_v46, %v2725_v18  ;;  %v3532_v46 = vld [vmem:[%s6349_s2 + $0xb0] sm:$0xff] }
 0x40b   :  { %v2627_v34 = vpop.xlane.xlu0 %2626  ;;  %2976 = vperm.xlu1 %4577, %v2894_v23   ;;  %v4500_v32 = vpack.c.bf16 %v3531_v14, %v3530_v7  ;;  %v2909_v63 = vmul.f32 %v5777_v6, %v2741_v57  ;;  %v2906_v1 = vmul.f32 %v5779_v0, %v2729_v5  ;;  %v3534_v6 = vld [vmem:[%s6349_s2 + $0xc0] sm:$0xff]  ;;  %v4504_v9 = vpack.c.bf16 %v3533_v39, %v3532_v46  ;;  %v3535_v0 = vld [vmem:[%s6349_s2 + $0xc8] sm:$0xff]  ;;  %v6511_v46 = vld [vmem:[#allocation57_spill] sm:$0xff] }
 0x40c   :  { %4680 = vrcp.f32 %v2627_v34  ;;  %v4508_v51 = vpack.c.bf16 %v3535_v0, %v3534_v6  ;;  %v2907_v56 = vmul.f32 %v5787_v19, %v2733_v33  ;;  %v3536_v19 = vld [vmem:[%s6349_s2 + $0xd0] sm:$0xff]  ;;  %v3539_v23 = vld [vmem:[%s6349_s2 + $0xe8] sm:$0xff] }
 0x40d   :  { %3006 = vperm.xlu0 %4576, %v2900_v17   ;;  %4501 = vmatprep.subr.bf16.mxu1 %v4500_v32  ;;  %v4512_v52 = vpack.c.bf16 %v3537_v10, %v3536_v19  ;;  %v6512_v6 = vld [vmem:[#allocation64_spill] sm:$0xff]  ;;  %v6517_v10 = vld [vmem:[#allocation67_spill] sm:$0xff] }
 0x40e   :  { %4503 = vmatpush3.bf16.msra.mxu1 %v4500_v32  ;;  %v6507_v32 = vld [vmem:[#allocation63_spill] sm:$0xff] }
 0x40f   :  { %3011 = vperm.xlu1 %4577, %v2901_v49   ;;  %4505 = vmatprep.subr.bf16.mxu1 %v4504_v9 }
 0x411   :  { %3016 = vperm.xlu0 %4576, %v2902_v50  }
 0x412   :  { %4507 = vmatpush3.bf16.msra.mxu1 %v4504_v9 }
 0x413   :  { %3021 = vperm.xlu1 %4577, %v2903_v15   ;;  %4509 = vmatprep.subr.bf16.mxu1 %v4508_v51  ;;  %v6506_v15 = vld [vmem:[#allocation61_spill] sm:$0xff] }
 0x415   :  { %3026 = vperm.xlu0 %4576, %v2904_v41  }
 0x416   :  { %v6077_v22 = vpop.eup %4680  ;;  %4511 = vmatpush3.bf16.msra.mxu1 %v4508_v51  ;;  %v6514_v51 = vld [vmem:[#allocation66_spill] sm:$0xff] }
 0x417   :  { %3031 = vperm.xlu1 %4577, %v2905_v59   ;;  %v2749_v26 = vrot.slane %v6077_v22, %v5626_v40  ;;  %v2753_v8 = vrot.slane %v6077_v22, %v5629_v13  ;;  %v2757_v62 = vrot.slane %v6077_v22, %v5632_v54  ;;  %v2745_v28 = vrot.slane %v6077_v22, %v5077_v24 }
 0x418   :  { %v2761_v2 = vrot.slane %v6077_v22, %v5642_v47  ;;  %4513 = vmatprep.subr.bf16.mxu1 %v4512_v52  ;;  %v2769_v17 = vrot.slane %v6077_v22, %v5650_v55  ;;  %v2765_v27 = vrot.slane %v6077_v22, %v5646_v38  ;;  %v2773_v25 = vrot.slane %v6077_v22, %v5660_v43 }
 0x419   :  { %3051 = vperm.xlu0 %4576, %v2909_v63   ;;  %v2911_v42 = vmul.f32 %v5785_v4, %v2749_v26  ;;  %v2912_v58 = vmul.f32 %v5800_v11, %v2753_v8  ;;  %v2908_v4 = vmul.f32 %v5802_v35, %v2737_v31  ;;  %v2913_v11 = vmul.f32 %v5813_v61, %v2757_v62  ;;  %v3538_v35 = vld [vmem:[%s6349_s2 + $0xe0] sm:$0xff]  ;;  %v6510_v63 = vld [vmem:[#allocation60_spill] sm:$0xff] }
 0x41a   :  { %v2910_v34 = vmul.f32 %v5815_v20, %v2745_v28  ;;  %4515 = vmatpush3.bf16.msra.mxu1 %v4512_v52  ;;  %v4516_v61 = vpack.c.bf16 %v3539_v23, %v3538_v35  ;;  %v2914_v12 = vmul.f32 %v5827_v37, %v2761_v2  ;;  %v3541_v20 = vld [vmem:[%s6349_s2 + $0xf8] sm:$0xff]  ;;  %v2916_v3 = vmul.f32 %v5829_v29, %v2769_v17 }
 0x41b   :  { %3036 = vperm.xlu1 %4577, %v2906_v1   ;;  %v4520_v49 = vpack.c.bf16 %v3541_v20, %v3540_v44  ;;  %v2915_v37 = vmul.f32 %v5839_v36, %v2765_v27  ;;  %v2917_v48 = vmul.f32 %v5850_v30, %v2773_v25  ;;  %v6508_v30 = vld [vmem:[#allocation62_spill] sm:$0xff]  ;;  %v6521_v27 = vld [vmem:[#allocation9_spill] sm:$0xff]  ;;  %v6522_v44 = vld [vmem:[#allocation8_spill] sm:$0xff] }
 0x41c   :  { %4517 = vmatprep.subr.bf16.mxu1 %v4516_v61 }
 0x41d   :  { %3061 = vperm.xlu0 %4576, %v2911_v42   ;;  %v6513_v42 = vld [vmem:[#allocation59_spill] sm:$0xff] }
 0x41e   :  { %4519 = vmatpush3.bf16.msra.mxu1 %v4516_v61 }
 0x41f   :  { %3041 = vperm.xlu1 %4577, %v2907_v56   ;;  %4521 = vmatprep.subr.bf16.mxu1 %v4520_v49 }
 0x421   :  { %3066 = vperm.xlu0 %4576, %v2912_v58   ;;  %v6515_v58 = vld [vmem:[#allocation65_spill] sm:$0xff] }
 0x422   :  { %4523 = vmatpush3.bf16.msra.mxu1 %v4520_v49 }
 0x423   :  { %3046 = vperm.xlu1 %4577, %v2908_v4   ;;  %v6516_v4 = vld [vmem:[#allocation68_spill] sm:$0xff] }
 0x425   :  { %3071 = vperm.xlu0 %4576, %v2913_v11   ;;  %v6518_v11 = vld [vmem:[#allocation70_spill] sm:$0xff] }
 0x426   :  { %v2630_v45 = vpop.xlane.xlu1 %2629 }
 0x427   :  { %4682 = vrcp.f32 %v2630_v45  ;;  %3056 = vperm.xlu1 %4577, %v2910_v34   ;;  %v6520_v45 = vld [vmem:[#allocation71_spill] sm:$0xff] }
 0x429   :  { %3076 = vperm.xlu0 %4576, %v2914_v12  }
 0x42a   :  { %v2633_v53 = vpop.xlane.xlu0 %2632 }
 0x42b   :  { %4684 = vrcp.f32 %v2633_v53  ;;  %3086 = vperm.xlu1 %4577, %v2916_v3  }
 0x42d   :  { %3081 = vperm.xlu0 %4576, %v2915_v37  }
 0x431   :  { %v4683_v50 = vpop.eup %4682  ;;  %3091 = vperm.xlu0 %4576, %v2917_v48   ;;  %v6523_v48 = vld [vmem:[#allocation11_spill] sm:$0xff] }
 0x432   :  { %v2781_v21 = vrot.slane %v4683_v50, %v5626_v40  ;;  %v2777_v16 = vrot.slane %v4683_v50, %v5077_v24  ;;  %v2789_v7 = vrot.slane %v4683_v50, %v5632_v54  ;;  %v2785_v36 = vrot.slane %v4683_v50, %v5629_v13 }
 0x433   :  { %v2793_v22 = vrot.slane %v4683_v50, %v5642_v47  ;;  %v2797_v1 = vrot.slane %v4683_v50, %v5646_v38  ;;  %v2801_v0 = vrot.slane %v4683_v50, %v5650_v55 }
 0x434   :  { %v2919_v29 = vmul.f32 %v5862_v60, %v2781_v21  ;;  %v2918_v18 = vmul.f32 %v6506_v15, %v2777_v16  ;;  %v2921_v41 = vmul.f32 %v6507_v32, %v2789_v7  ;;  %v2920_v57 = vmul.f32 %v6508_v30, %v2785_v36  ;;  %v6509_v60 = vld [vmem:[#allocation58_spill] sm:$0xff] }
 0x435   :  { %v4685_v14 = vpop.eup %4684  ;;  %v2922_v5 = vmul.f32 %v6509_v60, %v2793_v22  ;;  %v2923_v39 = vmul.f32 %v6511_v46, %v2797_v1  ;;  %v2924_v8 = vmul.f32 %v6513_v42, %v2801_v0  ;;  %v6525_v60 = vld [vmem:[#allocation16_spill] sm:$0xff] }
 0x436   :  { %3101 = vperm.xlu0 %4576, %v2919_v29   ;;  %3096 = vperm.xlu1 %4577, %v2918_v18   ;;  %v2809_v59 = vrot.slane %v4685_v14, %v5077_v24  ;;  %v2821_v33 = vrot.slane %v4685_v14, %v5632_v54  ;;  %v2825_v24 = vrot.slane %v4685_v14, %v5642_v47 }
 0x437   :  { %v2813_v31 = vrot.slane %v4685_v14, %v5626_v40  ;;  %v2829_v54 = vrot.slane %v4685_v14, %v5646_v38  ;;  %v2817_v19 = vrot.slane %v4685_v14, %v5629_v13  ;;  %v2833_v47 = vrot.slane %v4685_v14, %v5650_v55  ;;  %v6519_v38 = vld [vmem:[#allocation69_spill] sm:$0xff]  ;;  %v3510_v13 = vld [vmem:[%s6349_s2] sm:$0xff]  ;;  %v3511_v55 = vld [vmem:[%s6349_s2 + $0x8] sm:$0xff] }
 0x438   :  { %v2926_v26 = vmul.f32 %v6510_v63, %v2809_v59  ;;  %v2929_v9 = vmul.f32 %v6512_v6, %v2821_v33  ;;  %v2930_v56 = vmul.f32 %v6514_v51, %v2825_v24  ;;  %v2805_v40 = vrot.slane %v4683_v50, %v5660_v43  ;;  %v6526_v6 = vld [vmem:[#allocation13_spill] sm:$0xff]  ;;  %v6527_v51 = vld [vmem:[#allocation19_spill] sm:$0xff] }
 0x439   :  { %v2927_v62 = vmul.f32 %v6515_v58, %v2813_v31  ;;  %v2931_v28 = vmul.f32 %v6516_v4, %v2829_v54  ;;  %v2928_v52 = vmul.f32 %v6517_v10, %v2817_v19  ;;  %v2932_v2 = vmul.f32 %v6518_v11, %v2833_v47  ;;  %v6528_v19 = vld [vmem:[#allocation12_spill] sm:$0xff] }
 0x43a   :  { %3111 = vperm.xlu0 %4576, %v2921_v41   ;;  %3106 = vperm.xlu1 %4577, %v2920_v57   ;;  %v2925_v35 = vmul.f32 %v6519_v38, %v2805_v40  ;;  %v2837_v23 = vrot.slane %v4685_v14, %v5660_v43  ;;  %v6182_v17 = vpack.c.bf16 %v3511_v55, %v3510_v13  ;;  %v6524_v14 = vld [vmem:[#allocation10_spill] sm:$0xff] }
 0x43c   :  { %v2933_v34 = vmul.f32 %v6520_v45, %v2837_v23  ;;  %4525 = vmatprep.subr.bf16.mxu1 %v6182_v17 }
 0x43e   :  { %3116 = vperm.xlu1 %4577, %v2922_v5   ;;  %3136 = vperm.xlu0 %4576, %v2926_v26  }
 0x442   :  { %3121 = vperm.xlu1 %4577, %v2923_v39   ;;  %3151 = vperm.xlu0 %4576, %v2929_v9  }
 0x446   :  { %3126 = vperm.xlu1 %4577, %v2924_v8   ;;  %3156 = vperm.xlu0 %4576, %v2930_v56  }
 0x44a   :  { %3141 = vperm.xlu1 %4577, %v2927_v62   ;;  %3161 = vperm.xlu0 %4576, %v2931_v28  }
 0x44e   :  { %3146 = vperm.xlu1 %4577, %v2928_v52   ;;  %3166 = vperm.xlu0 %4576, %v2932_v2  }
 0x452   :  { %3131 = vperm.xlu1 %4577, %v2925_v35   ;;  %v6529_v35 = vld [vmem:[#allocation18_spill] sm:$0xff] }
 0x456   :  { %3171 = vperm.xlu1 %4577, %v2933_v34  }
 0x46e   :  { %v2937_v61 = vpop.permute.xlu1 %2936  ;;  %v2942_v12 = vpop.permute.xlu0 %2941 }
 0x46f   :  { %v3174_v43 = vmul.f32 %v2937_v61, %v6521_v27  ;;  %v3175_v20 = vmul.f32 %v6522_v44, %v2942_v12  ;;  %v6530_v44 = vld [vmem:[#allocation15_spill] sm:$0xff] }
 0x471   :  { %v3222_v49 = vrot.slane %v3174_v43, 4  ;;  %v3228_v53 = vrot.slane %v3175_v20, 4 }
 0x472   :  { %v2947_v3 = vpop.permute.xlu1 %2946 }
 0x473   :  { %v3223_v37 = vadd.f32 %v3222_v49, %v3174_v43  ;;  %v3229_v25 = vadd.f32 %v3228_v53, %v3175_v20  ;;  %v3176_v50 = vmul.f32 %v2947_v3, %v6523_v48 }
 0x475   :  { %v3224_v21 = vrot.slane %v3223_v37, 2  ;;  %v3230_v16 = vrot.slane %v3229_v25, 2  ;;  %v3234_v29 = vrot.slane %v3176_v50, 4 }
 0x476   :  { %v2952_v15 = vpop.permute.xlu1 %2951 }
 0x477   :  { %v3225_v18 = vadd.f32 %v3224_v21, %v3223_v37  ;;  %v3231_v7 = vadd.f32 %v3230_v16, %v3229_v25  ;;  %v3235_v36 = vadd.f32 %v3234_v29, %v3176_v50  ;;  %v3177_v32 = vmul.f32 %v6524_v14, %v2952_v15  ;;  %v6531_v25 = vld [vmem:[#allocation21_spill] sm:$0xff] }
 0x478   :  { %v2982_v41 = vpop.permute.xlu0 %2981 }
 0x479   :  { %v3226_v30 = vrot.slane %v3225_v18, 1  ;;  %v3232_v57 = vrot.slane %v3231_v7, 1  ;;  %v3236_v22 = vrot.slane %v3235_v36, 2  ;;  %v3240_v59 = vrot.slane %v3177_v32, 4 }
 0x47a   :  { %v3183_v5 = vmul.f32 %v6525_v60, %v2982_v41  ;;  %v2957_v63 = vpop.permute.xlu1 %2956 }
 0x47b   :  { %v3227_v26 = vadd.f32 %v3226_v30, %v3225_v18  ;;  %v3233_v1 = vadd.f32 %v3232_v57, %v3231_v7  ;;  %v3237_v33 = vadd.f32 %v3236_v22, %v3235_v36  ;;  %v3241_v46 = vadd.f32 %v3240_v59, %v3177_v32  ;;  %v6532_v32 = vld [vmem:[#allocation14_spill] sm:$0xff]  ;;  %v3512_v57 = vld [vmem:[%s6349_s2 + $0x10] sm:$0xff]  ;;  %v3513_v22 = vld [vmem:[%s6349_s2 + $0x18] sm:$0xff] }
 0x47c   :  { %v3276_v39 = vrot.slane %v3183_v5, 4  ;;  %v3178_v9 = vmul.f32 %v2957_v63, %v6526_v6  ;;  %v2987_v0 = vpop.permute.xlu0 %2986 }
 0x47d   :  { %v3590_v24 = vsel %vm1720_vm6, %v3233_v1, %v3227_v26  ;;  %v3238_v42 = vrot.slane %v3237_v33, 1  ;;  %v3242_v8 = vrot.slane %v3241_v46, 2  ;;  %v3184_v56 = vmul.f32 %v2987_v0, %v6527_v51 }
 0x47e   :  { %v3277_v31 = vadd.f32 %v3276_v39, %v3183_v5  ;;  %v3246_v54 = vrot.slane %v3178_v9, 4  ;;  %v2962_v58 = vpop.permute.xlu1 %2961 }
 0x47f   :  { %v3239_v62 = vadd.f32 %v3238_v42, %v3237_v33  ;;  %v3243_v4 = vadd.f32 %v3242_v8, %v3241_v46  ;;  %v3282_v28 = vrot.slane %v3184_v56, 4  ;;  %v3179_v47 = vmul.f32 %v6528_v19, %v2962_v58  ;;  %v6533_v33 = vld [vmem:[#allocation20_spill] sm:$0xff]  ;;  %v6535_v19 = vld [vmem:[#allocation23_spill] sm:$0xff] }
 0x480   :  { %v3278_v10 = vrot.slane %v3277_v31, 2  ;;  %v3247_v52 = vadd.f32 %v3246_v54, %v3178_v9  ;;  %v2992_v11 = vpop.permute.xlu0 %2991  ;;  %v6209_v8 = vpack.c.bf16 %v3513_v22, %v3512_v57 }
 0x481   :  { %v3244_v2 = vrot.slane %v3243_v4, 1  ;;  %v3283_v40 = vadd.f32 %v3282_v28, %v3184_v56  ;;  %v3252_v38 = vrot.slane %v3179_v47, 4  ;;  %v3185_v23 = vmul.f32 %v6529_v35, %v2992_v11 }
 0x482   :  { %v3248_v13 = vrot.slane %v3247_v52, 2  ;;  %v2967_v55 = vpop.permute.xlu1 %2966  ;;  %v3591_v45 = vsel %vm1722_vm7, %v3239_v62, %v3590_v24  ;;  %v3279_v53 = vadd.f32 %v3278_v10, %v3277_v31  ;;  %v6534_v24 = vld [vmem:[#allocation17_spill] sm:$0xff] }
 0x483   :  { %v3245_v34 = vadd.f32 %v3244_v2, %v3243_v4  ;;  %v3284_v61 = vrot.slane %v3283_v40, 2  ;;  %v3253_v12 = vadd.f32 %v3252_v38, %v3179_v47  ;;  %v3288_v27 = vrot.slane %v3185_v23, 4 }
 0x484   :  { %v3249_v43 = vadd.f32 %v3248_v13, %v3247_v52  ;;  %v3180_v20 = vmul.f32 %v2967_v55, %v6530_v44  ;;  %v2997_v49 = vpop.permute.xlu0 %2996  ;;  %v3280_v59 = vrot.slane %v3279_v53, 1  ;;  %v6536_v13 = vld [vmem:[#allocation22_spill] sm:$0xff] }
 0x485   :  { %v3254_v3 = vrot.slane %v3253_v12, 2  ;;  %v3289_v37 = vadd.f32 %v3288_v27, %v3185_v23  ;;  %v3186_v48 = vmul.f32 %v2997_v49, %v6531_v25  ;;  %v3592_v29 = vsel %vm1724_vm8, %v3245_v34, %v3591_v45 }
 0x486   :  { %v3250_v50 = vrot.slane %v3249_v43, 1  ;;  %v3258_v21 = vrot.slane %v3180_v20, 4  ;;  %v2972_v16 = vpop.permute.xlu1 %2971  ;;  %v3285_v15 = vadd.f32 %v3284_v61, %v3283_v40  ;;  %v3281_v62 = vadd.f32 %v3280_v59, %v3279_v53 }
 0x487   :  { %v3255_v18 = vadd.f32 %v3254_v3, %v3253_v12  ;;  %v3294_v7 = vrot.slane %v3186_v48, 4  ;;  %v3181_v41 = vmul.f32 %v6532_v32, %v2972_v16  ;;  %v3290_v5 = vrot.slane %v3289_v37, 2  ;;  %v6537_v3 = vld [vmem:[#allocation25_spill] sm:$0xff] }
 0x488   :  { %v3251_v36 = vadd.f32 %v3250_v50, %v3249_v43  ;;  %v3259_v14 = vadd.f32 %v3258_v21, %v3180_v20  ;;  %v3002_v30 = vpop.permute.xlu0 %3001  ;;  %v3286_v9 = vrot.slane %v3285_v15, 1 }
 0x489   :  { %v3256_v60 = vrot.slane %v3255_v18, 1  ;;  %v3295_v63 = vadd.f32 %v3294_v7, %v3186_v48  ;;  %v3264_v1 = vrot.slane %v3181_v41, 4  ;;  %v3187_v46 = vmul.f32 %v6533_v33, %v3002_v30 }
 0x48a   :  { %v3260_v26 = vrot.slane %v3259_v14, 2  ;;  %v2977_v39 = vpop.permute.xlu1 %2976  ;;  %v3593_v6 = vsel %vm1726_vm9, %v3251_v36, %v3592_v29  ;;  %v3291_v4 = vadd.f32 %v3290_v5, %v3289_v37  ;;  %v3287_v38 = vadd.f32 %v3286_v9, %v3285_v15  ;;  %v6538_v15 = vld [vmem:[#allocation24_spill] sm:$0xff] }
 0x48b   :  { %v3257_v0 = vadd.f32 %v3256_v60, %v3255_v18  ;;  %v3182_v42 = vmul.f32 %v2977_v39, %v6534_v24  ;;  %v3296_v56 = vrot.slane %v3295_v63, 2  ;;  %v3265_v31 = vadd.f32 %v3264_v1, %v3181_v41 }
 0x48c   :  { %v3261_v51 = vadd.f32 %v3260_v26, %v3259_v14  ;;  %v3300_v54 = vrot.slane %v3187_v46, 4  ;;  %v3007_v58 = vpop.permute.xlu0 %3006  ;;  %v3292_v43 = vrot.slane %v3291_v4, 1 }
 0x48d   :  { %v3270_v28 = vrot.slane %v3182_v42, 4  ;;  %v3188_v47 = vmul.f32 %v3007_v58, %v6535_v19  ;;  %v3266_v52 = vrot.slane %v3265_v31, 2  ;;  %v3594_v40 = vsel %vm1728_vm10, %v3257_v0, %v3593_v6 }
 0x48e   :  { %v3262_v10 = vrot.slane %v3261_v51, 1  ;;  %v3301_v11 = vadd.f32 %v3300_v54, %v3187_v46  ;;  %v3012_v2 = vpop.permute.xlu1 %3011  ;;  %v3297_v45 = vadd.f32 %v3296_v56, %v3295_v63  ;;  %v3293_v60 = vadd.f32 %v3292_v43, %v3291_v4  ;;  %v6539_v63 = vld [vmem:[#allocation27_spill] sm:$0xff] }
 0x48f   :  { %v3271_v35 = vadd.f32 %v3270_v28, %v3182_v42  ;;  %v3306_v23 = vrot.slane %v3188_v47, 4  ;;  %v3189_v55 = vmul.f32 %v6536_v13, %v3012_v2  ;;  %v3267_v34 = vadd.f32 %v3266_v52, %v3265_v31  ;;  %v6541_v52 = vld [vmem:[#allocation30_spill] sm:$0xff] }
 0x490   :  { %v3302_v61 = vrot.slane %v3301_v11, 2  ;;  %v3017_v12 = vpop.permute.xlu0 %3016  ;;  %v3263_v27 = vadd.f32 %v3262_v10, %v3261_v51  ;;  %v3298_v7 = vrot.slane %v3297_v45, 1  ;;  %v6540_v51 = vld [vmem:[#allocation26_spill] sm:$0xff] }
 0x491   :  { %v3272_v44 = vrot.slane %v3271_v35, 2  ;;  %v3307_v20 = vadd.f32 %v3306_v23, %v3188_v47  ;;  %v3312_v49 = vrot.slane %v3189_v55, 4  ;;  %v3190_v37 = vmul.f32 %v3017_v12, %v6537_v3  ;;  %v6542_v23 = vld [vmem:[#allocation29_spill] sm:$0xff] }
 0x492   :  { %v3303_v53 = vadd.f32 %v3302_v61, %v3301_v11  ;;  %v3022_v25 = vpop.permute.xlu1 %3021  ;;  %v3268_v48 = vrot.slane %v3267_v34, 1  ;;  %v3595_v50 = vsel %vm1730_vm11, %v3263_v27, %v3594_v40  ;;  %v3299_v0 = vadd.f32 %v3298_v7, %v3297_v45 }
 0x493   :  { %v3273_v21 = vadd.f32 %v3272_v44, %v3271_v35  ;;  %v3308_v16 = vrot.slane %v3307_v20, 2  ;;  %v3313_v29 = vadd.f32 %v3312_v49, %v3189_v55  ;;  %v3191_v18 = vmul.f32 %v6538_v15, %v3022_v25  ;;  %v6543_v44 = vld [vmem:[#allocation32_spill] sm:$0xff] }
 0x494   :  { %v3304_v36 = vrot.slane %v3303_v53, 1  ;;  %v3318_v14 = vrot.slane %v3190_v37, 4  ;;  %v3027_v32 = vpop.permute.xlu0 %3026  ;;  %v3269_v41 = vadd.f32 %v3268_v48, %v3267_v34 }
 0x495   :  { %v3274_v30 = vrot.slane %v3273_v21, 1  ;;  %v3309_v57 = vadd.f32 %v3308_v16, %v3307_v20  ;;  %v3314_v22 = vrot.slane %v3313_v29, 2  ;;  %v3324_v59 = vrot.slane %v3191_v18, 4 }
 0x496   :  { %v3319_v5 = vadd.f32 %v3318_v14, %v3190_v37  ;;  %v3192_v26 = vmul.f32 %v3027_v32, %v6539_v63  ;;  %v3032_v1 = vpop.permute.xlu1 %3031  ;;  %v3596_v33 = vsel %vm1732_vm12, %v3269_v41, %v3595_v50  ;;  %v3305_v54 = vadd.f32 %v3304_v36, %v3303_v53  ;;  %v3514_v32 = vld [vmem:[%s6349_s2 + $0x20] sm:$0xff]  ;;  %v3515_v41 = vld [vmem:[%s6349_s2 + $0x28] sm:$0xff] }
 0x497   :  { %v3275_v46 = vadd.f32 %v3274_v30, %v3273_v21  ;;  %v3310_v39 = vrot.slane %v3309_v57, 1  ;;  %v3315_v6 = vadd.f32 %v3314_v22, %v3313_v29  ;;  %v3325_v9 = vadd.f32 %v3324_v59, %v3191_v18  ;;  %4396 = vmatprep.mubr.f32.mxu1 %v3596_v33 }
 0x498   :  { %v3320_v24 = vrot.slane %v3319_v5, 2  ;;  %v3330_v42 = vrot.slane %v3192_v26, 4  ;;  %v3193_v56 = vmul.f32 %v6540_v51, %v3032_v1  ;;  %v3052_v31 = vpop.permute.xlu0 %3051 }
 0x499   :  { %v3597_v58 = vsel %vm1720_vm6, %v3281_v62, %v3275_v46  ;;  %v3311_v4 = vadd.f32 %v3310_v39, %v3309_v57  ;;  %v3326_v28 = vrot.slane %v3325_v9, 2  ;;  %v3197_v11 = vmul.f32 %v6541_v52, %v3052_v31  ;;  %v6546_v52 = vld [vmem:[#allocation31_spill] sm:$0xff] }
 0x49a   :  { %v3321_v19 = vadd.f32 %v3320_v24, %v3319_v5  ;;  %v3331_v47 = vadd.f32 %v3330_v42, %v3192_v26  ;;  %v3336_v10 = vrot.slane %v3193_v56, 4  ;;  %v3037_v2 = vpop.permute.xlu1 %3036  ;;  %v3316_v40 = vrot.slane %v3315_v6, 1  ;;  %v3517_v24 = vld [vmem:[%s6349_s2 + $0x38] sm:$0xff] }
 0x49b   :  { %v3327_v35 = vadd.f32 %v3326_v28, %v3325_v9  ;;  %v3194_v13 = vmul.f32 %v3037_v2, %v6542_v23  ;;  %v3598_v55 = vsel %vm1722_vm7, %v3287_v38, %v3597_v58  ;;  %v3360_v12 = vrot.slane %v3197_v11, 4  ;;  %v6544_v38 = vld [vmem:[#allocation28_spill] sm:$0xff]  ;;  %v3519_v58 = vld [vmem:[%s6349_s2 + $0x48] sm:$0xff]  ;;  %v6547_v2 = vld [vmem:[#allocation34_spill] sm:$0xff] }
 0x49c   :  { %v3322_v45 = vrot.slane %v3321_v19, 1  ;;  %v3332_v34 = vrot.slane %v3331_v47, 2  ;;  %v3337_v61 = vadd.f32 %v3336_v10, %v3193_v56  ;;  %v3062_v27 = vpop.permute.xlu0 %3061  ;;  %v3599_v49 = vsel %vm1724_vm8, %v3293_v60, %v3598_v55 }
 0x49d   :  { %v3328_v62 = vrot.slane %v3327_v35, 1  ;;  %v3342_v43 = vrot.slane %v3194_v13, 4  ;;  %v3199_v20 = vmul.f32 %v6543_v44, %v3062_v27  ;;  %v3361_v25 = vadd.f32 %v3360_v12, %v3197_v11 }
 0x49e   :  { %v3323_v53 = vadd.f32 %v3322_v45, %v3321_v19  ;;  %v3333_v3 = vadd.f32 %v3332_v34, %v3331_v47  ;;  %v3338_v37 = vrot.slane %v3337_v61, 2  ;;  %v3042_v48 = vpop.permute.xlu1 %3041  ;;  %v3600_v36 = vsel %vm1726_vm9, %v3299_v0, %v3599_v49  ;;  %v3516_v0 = vld [vmem:[%s6349_s2 + $0x30] sm:$0xff]  ;;  %v6545_v47 = vld [vmem:[#allocation35_spill] sm:$0xff] }
 0x49f   :  { %v3329_v50 = vadd.f32 %v3328_v62, %v3327_v35  ;;  %v3343_v21 = vadd.f32 %v3342_v43, %v3194_v13  ;;  %v3372_v16 = vrot.slane %v3199_v20, 4  ;;  %v3195_v29 = vmul.f32 %v6544_v38, %v3042_v48  ;;  %v6548_v43 = vld [vmem:[#allocation33_spill] sm:$0xff] }
 0x4a0   :  { %v3334_v15 = vrot.slane %v3333_v3, 1  ;;  %v3339_v18 = vadd.f32 %v3338_v37, %v3337_v61  ;;  %v3362_v7 = vrot.slane %v3361_v25, 2  ;;  %v3067_v14 = vpop.permute.xlu0 %3066  ;;  %v3317_v63 = vadd.f32 %v3316_v40, %v3315_v6  ;;  %v6549_v37 = vld [vmem:[#allocation37_spill] sm:$0xff] }
 0x4a1   :  { %v3604_v30 = vsel %vm1720_vm6, %v3329_v50, %v3323_v53  ;;  %v3344_v57 = vrot.slane %v3343_v21, 2  ;;  %v3373_v22 = vadd.f32 %v3372_v16, %v3199_v20  ;;  %v3348_v59 = vrot.slane %v3195_v29, 4 }
 0x4a2   :  { %v3335_v60 = vadd.f32 %v3334_v15, %v3333_v3  ;;  %v3340_v5 = vrot.slane %v3339_v18, 1  ;;  %v3601_v26 = vsel %vm1728_vm10, %v3305_v54, %v3600_v36  ;;  %v3047_v1 = vpop.permute.xlu1 %3046  ;;  %v4532_v9 = vpack.c.bf16 %v3515_v41, %v3514_v32  ;;  %v3518_v54 = vld [vmem:[%s6349_s2 + $0x40] sm:$0xff] }
 0x4a3   :  { %v3345_v33 = vadd.f32 %v3344_v57, %v3343_v21  ;;  %v3349_v46 = vadd.f32 %v3348_v59, %v3195_v29  ;;  %v3602_v39 = vsel %vm1730_vm11, %v3311_v4, %v3601_v26  ;;  %v3374_v6 = vrot.slane %v3373_v22, 2 }
 0x4a4   :  { %v3605_v42 = vsel %vm1722_vm7, %v3335_v60, %v3604_v30  ;;  %v3341_v51 = vadd.f32 %v3340_v5, %v3339_v18  ;;  %v3603_v56 = vsel %vm1732_vm12, %v3317_v63, %v3602_v39  ;;  %v3072_v31 = vpop.permute.xlu0 %3071  ;;  %v6251_v4 = vadd.f32 %v3362_v7, %v3361_v25  ;;  %v6550_v18 = vld [vmem:[#allocation39_spill] sm:$0xff]  ;;  %v6551_v60 = vld [vmem:[#allocation36_spill] sm:$0xff]  ;;  %v3521_v63 = vld [vmem:[%s6349_s2 + $0x58] sm:$0xff] }
 0x4a5   :  { %v3346_v28 = vrot.slane %v3345_v33, 1  ;;  %v3350_v19 = vrot.slane %v3349_v46, 2  ;;  %4397 = vmatmul.mubr.f32.vlgmr.msra.gmra.mrb[0].mxu1 %v3603_v56  ;;  %v3200_v10 = vmul.f32 %v3067_v14, %v6545_v47  ;;  %v3196_v11 = vmul.f32 %v3047_v1, %v6546_v52 }
 0x4a6   :  { %v3201_v40 = vmul.f32 %v6547_v2, %v3072_v31  ;;  %v3057_v35 = vpop.permute.xlu1 %3056  ;;  %v3606_v23 = vsel %vm1724_vm8, %v3341_v51, %v3605_v42  ;;  %4527 = vmatpush3.bf16.msra.mxu1 %v6182_v17  ;;  %v4536_v13 = vpack.c.bf16 %v3517_v24, %v3516_v0  ;;  %v6259_v61 = vpack.c.bf16 %v3519_v58, %v3518_v54  ;;  %v6552_v2 = vld [vmem:[#allocation38_spill] sm:$0xff] }
 0x4a7   :  { %v3347_v55 = vadd.f32 %v3346_v28, %v3345_v33  ;;  %v3351_v45 = vadd.f32 %v3350_v19, %v3349_v46  ;;  %v3378_v34 = vrot.slane %v3200_v10, 4  ;;  %4529 = vmatprep.subr.bf16.mxu1 %v6209_v8  ;;  %v3375_v12 = vadd.f32 %v3374_v6, %v3373_v22 }
 0x4a8   :  { %v3354_v27 = vrot.slane %v3196_v11, 4  ;;  %v3384_v62 = vrot.slane %v3201_v40, 4  ;;  %v3198_v44 = vmul.f32 %v3057_v35, %v6548_v43  ;;  %v3077_v20 = vpop.permute.xlu0 %3076  ;;  %v3364_v49 = vrot.slane %v6251_v4, 1 }
 0x4a9   :  { %v3352_v53 = vrot.slane %v3351_v45, 1  ;;  %v3379_v3 = vadd.f32 %v3378_v34, %v3200_v10  ;;  %v3202_v17 = vmul.f32 %v3077_v20, %v6549_v37  ;;  %v3607_v16 = vsel %vm1726_vm9, %v3347_v55, %v3606_v23 }
 0x4aa   :  { %v3355_v25 = vadd.f32 %v3354_v27, %v3196_v11  ;;  %v3385_v48 = vadd.f32 %v3384_v62, %v3201_v40  ;;  %v3366_v50 = vrot.slane %v3198_v44, 4  ;;  %v3087_v21 = vpop.permute.xlu1 %3086  ;;  %4531 = vmatpush3.bf16.msra.mxu1 %v6209_v8  ;;  %v3376_v36 = vrot.slane %v3375_v12, 1  ;;  %v3520_v8 = vld [vmem:[%s6349_s2 + $0x50] sm:$0xff] }
 0x4ab   :  { %v3353_v38 = vadd.f32 %v3352_v53, %v3351_v45  ;;  %v3380_v29 = vrot.slane %v3379_v3, 2  ;;  %v3390_v15 = vrot.slane %v3202_v17, 4  ;;  %v3204_v7 = vmul.f32 %v3087_v21, %v6550_v18  ;;  %4533 = vmatprep.subr.bf16.mxu1 %v4532_v9 }
 0x4ac   :  { %v3356_v14 = vrot.slane %v3355_v25, 2  ;;  %v3386_v32 = vrot.slane %v3385_v48, 2  ;;  %v3367_v41 = vadd.f32 %v3366_v50, %v3198_v44  ;;  %v3082_v30 = vpop.permute.xlu0 %3081  ;;  %v4544_v54 = vpack.c.bf16 %v3521_v63, %v3520_v8 }
 0x4ad   :  { %v3381_v57 = vadd.f32 %v3380_v29, %v3379_v3  ;;  %v3391_v22 = vadd.f32 %v3390_v15, %v3202_v17  ;;  %v3402_v59 = vrot.slane %v3204_v7, 4  ;;  %v3203_v5 = vmul.f32 %v6551_v60, %v3082_v30  ;;  %v6553_v17 = vld [vmem:[#allocation41_spill] sm:$0xff] }
 0x4ae   :  { %v3357_v26 = vadd.f32 %v3356_v14, %v3355_v25  ;;  %v3387_v1 = vadd.f32 %v3386_v32, %v3385_v48  ;;  %v3368_v33 = vrot.slane %v3367_v41, 2  ;;  %v3608_v46 = vsel %vm1728_vm10, %v3353_v38, %v3607_v16  ;;  %4535 = vmatpush3.bf16.msra.mxu1 %v4532_v9  ;;  %v6554_v48 = vld [vmem:[#allocation40_spill] sm:$0xff] }
 0x4af   :  { %v3382_v39 = vrot.slane %v3381_v57, 1  ;;  %v3392_v0 = vrot.slane %v3391_v22, 2  ;;  %v3403_v24 = vadd.f32 %v3402_v59, %v3204_v7  ;;  %v3396_v42 = vrot.slane %v3203_v5, 4  ;;  %4537 = vmatprep.subr.bf16.mxu1 %v4536_v13  ;;  %v3524_v32 = vld [vmem:[%s6349_s2 + $0x70] sm:$0xff] }
 0x4b0   :  { %v3358_v51 = vrot.slane %v3357_v26, 1  ;;  %v3388_v6 = vrot.slane %v3387_v1, 1  ;;  %v3369_v56 = vadd.f32 %v3368_v33, %v3367_v41  ;;  %v3092_v31 = vpop.permute.xlu0 %3091  ;;  %v3365_v47 = vadd.f32 %v3364_v49, %v6251_v4  ;;  %v3522_v4 = vld [vmem:[%s6349_s2 + $0x60] sm:$0xff]  ;;  %v3525_v41 = vld [vmem:[%s6349_s2 + $0x78] sm:$0xff] }
 0x4b1   :  { %v3393_v58 = vadd.f32 %v3392_v0, %v3391_v22  ;;  %v3404_v28 = vrot.slane %v3403_v24, 2  ;;  %v3397_v19 = vadd.f32 %v3396_v42, %v3203_v5  ;;  %v3377_v10 = vadd.f32 %v3376_v36, %v3375_v12  ;;  %v6556_v22 = vld [vmem:[#allocation42_spill] sm:$0xff] }
 0x4b2   :  { %v3359_v52 = vadd.f32 %v3358_v51, %v3357_v26  ;;  %v3370_v11 = vrot.slane %v3369_v56, 1  ;;  %v3205_v9 = vmul.f32 %v6552_v2, %v3092_v31  ;;  %4539 = vmatpush3.bf16.msra.mxu1 %v4536_v13  ;;  %v3383_v40 = vadd.f32 %v3382_v39, %v3381_v57  ;;  %v3523_v13 = vld [vmem:[%s6349_s2 + $0x68] sm:$0xff] }
 0x4b3   :  { %v3394_v35 = vrot.slane %v3393_v58, 1  ;;  %v3405_v23 = vadd.f32 %v3404_v28, %v3403_v24  ;;  %v3398_v55 = vrot.slane %v3397_v19, 2  ;;  %4541 = vmatprep.subr.bf16.mxu1 %v6259_v61  ;;  %v3389_v45 = vadd.f32 %v3388_v6, %v3387_v1  ;;  %v6555_v57 = vld [vmem:[#allocation43_spill] sm:$0xff]  ;;  %v6557_v28 = vld [vmem:[#allocation45_spill] sm:$0xff] }
 0x4b4   :  { %v3371_v34 = vadd.f32 %v3370_v11, %v3369_v56  ;;  %v3408_v27 = vrot.slane %v3205_v9, 4  ;;  %v3609_v62 = vsel %vm1730_vm11, %v3359_v52, %v3608_v46  ;;  %v4548_v38 = vpack.c.bf16 %v3523_v13, %v3522_v4 }
 0x4b5   :  { %v3097_v43 = vpop.permute.xlu1 %3096  ;;  %v3102_v44 = vpop.permute.xlu0 %3101  ;;  %v3395_v12 = vadd.f32 %v3394_v35, %v3393_v58  ;;  %v3406_v20 = vrot.slane %v3405_v23, 1  ;;  %v3399_v49 = vadd.f32 %v3398_v55, %v3397_v19  ;;  %v3610_v53 = vsel %vm1732_vm12, %v3365_v47, %v3609_v62  ;;  %v6558_v47 = vld [vmem:[#allocation49_spill] sm:$0xff] }
 0x4b6   :  { %v3611_v3 = vsel %vm1720_vm6, %v3377_v10, %v3371_v34  ;;  %v3409_v37 = vadd.f32 %v3408_v27, %v3205_v9  ;;  %4399 = vmatprep.mubr.f32.mxu1 %v3610_v53  ;;  %v3206_v25 = vmul.f32 %v3097_v43, %v6553_v17  ;;  %v3207_v50 = vmul.f32 %v6554_v48, %v3102_v44 }
 0x4b7   :  { %v3400_v21 = vrot.slane %v3399_v49, 1  ;;  %v3612_v16 = vsel %vm1722_vm7, %v3383_v40, %v3611_v3  ;;  %4543 = vmatpush3.bf16.msra.mxu1 %v6259_v61  ;;  %v3407_v5 = vadd.f32 %v3406_v20, %v3405_v23  ;;  %v4552_v39 = vpack.c.bf16 %v3525_v41, %v3524_v32 }
 0x4b8   :  { %v3410_v29 = vrot.slane %v3409_v37, 2  ;;  %v3414_v15 = vrot.slane %v3206_v25, 4  ;;  %v3420_v18 = vrot.slane %v3207_v50, 4  ;;  %v3613_v14 = vsel %vm1724_vm8, %v3389_v45, %v3612_v16  ;;  %4545 = vmatprep.subr.bf16.mxu1 %v4544_v54 }
 0x4b9   :  { %v3107_v7 = vpop.permute.xlu1 %3106  ;;  %v3112_v36 = vpop.permute.xlu0 %3111  ;;  %v3401_v30 = vadd.f32 %v3400_v21, %v3399_v49  ;;  %v3614_v60 = vsel %vm1726_vm9, %v3395_v12, %v3613_v14  ;;  %v6559_v12 = vld [vmem:[#allocation44_spill] sm:$0xff]  ;;  %v6560_v49 = vld [vmem:[#allocation50_spill] sm:$0xff]  ;;  %v6562_v14 = vld [vmem:[#allocation53_spill] sm:$0xff] }
 0x4ba   :  { %v3208_v61 = vmul.f32 %v3107_v7, %v6555_v57  ;;  %v3209_v59 = vmul.f32 %v6556_v22, %v3112_v36  ;;  %v3411_v8 = vadd.f32 %v3410_v29, %v3409_v37  ;;  %v3415_v63 = vadd.f32 %v3414_v15, %v3206_v25  ;;  %v6561_v7 = vld [vmem:[#allocation47_spill] sm:$0xff] }
 0x4bb   :  { %v3421_v26 = vadd.f32 %v3420_v18, %v3207_v50  ;;  %v3615_v46 = vsel %vm1728_vm10, %v3401_v30, %v3614_v60  ;;  %4547 = vmatpush3.bf16.msra.mxu1 %v4544_v54 }
 0x4bc   :  { %v3426_v1 = vrot.slane %v3208_v61, 4  ;;  %v3432_v33 = vrot.slane %v3209_v59, 4  ;;  %v3412_v0 = vrot.slane %v3411_v8, 1  ;;  %v3416_v24 = vrot.slane %v3415_v63, 2  ;;  %4549 = vmatprep.subr.bf16.mxu1 %v4548_v38 }
 0x4bd   :  { %v3422_v42 = vrot.slane %v3421_v26, 2  ;;  %v3117_v51 = vpop.permute.xlu1 %3116  ;;  %v3137_v6 = vpop.permute.xlu0 %3136  ;;  %v3616_v56 = vsel %vm1730_vm11, %v3407_v5, %v3615_v46 }
 0x4be   :  { %v3427_v31 = vadd.f32 %v3426_v1, %v3208_v61  ;;  %v3433_v58 = vadd.f32 %v3432_v33, %v3209_v59  ;;  %v3210_v19 = vmul.f32 %v3117_v51, %v6557_v28  ;;  %v3214_v10 = vmul.f32 %v3137_v6, %v6558_v47  ;;  %v6564_v1 = vld [vmem:[#allocation52_spill] sm:$0xff] }
 0x4bf   :  { %v3417_v52 = vadd.f32 %v3416_v24, %v3415_v63  ;;  %v3423_v11 = vadd.f32 %v3422_v42, %v3421_v26  ;;  %v3413_v2 = vadd.f32 %v3412_v0, %v3411_v8  ;;  %4551 = vmatpush3.bf16.msra.mxu1 %v4548_v38  ;;  %v6563_v63 = vld [vmem:[#allocation48_spill] sm:$0xff] }
 0x4c0   :  { %v3428_v9 = vrot.slane %v3427_v31, 2  ;;  %v3434_v54 = vrot.slane %v3433_v58, 2  ;;  %v3438_v40 = vrot.slane %v3210_v19, 4  ;;  %v3462_v35 = vrot.slane %v3214_v10, 4  ;;  %4553 = vmatprep.subr.bf16.mxu1 %v4552_v39 }
 0x4c1   :  { %v3418_v23 = vrot.slane %v3417_v52, 1  ;;  %v3424_v55 = vrot.slane %v3423_v11, 1  ;;  %v3617_v45 = vsel %vm1732_vm12, %v3413_v2, %v3616_v56  ;;  %v3122_v34 = vpop.permute.xlu1 %3121  ;;  %v3152_v27 = vpop.permute.xlu0 %3151 }
 0x4c2   :  { %v3429_v62 = vadd.f32 %v3428_v9, %v3427_v31  ;;  %v3435_v43 = vadd.f32 %v3434_v54, %v3433_v58  ;;  %v3439_v44 = vadd.f32 %v3438_v40, %v3210_v19  ;;  %4400 = vmatmul.mubr.f32.gmra.mrb[2].mxu1 %v3617_v45  ;;  %v3211_v20 = vmul.f32 %v6559_v12, %v3122_v34  ;;  %v6566_v9 = vld [vmem:[#allocation55_spill] sm:$0xff] }
 0x4c3   :  { %v3419_v4 = vadd.f32 %v3418_v23, %v3417_v52  ;;  %v3425_v13 = vadd.f32 %v3424_v55, %v3423_v11  ;;  %v3217_v53 = vmul.f32 %v6560_v49, %v3152_v27  ;;  %v3463_v25 = vadd.f32 %v3462_v35, %v3214_v10  ;;  %4555 = vmatpush3.bf16.msra.mxu1 %v4552_v39  ;;  %v6565_v11 = vld [vmem:[#allocation51_spill] sm:$0xff] }
 0x4c4   :  { %v3430_v3 = vrot.slane %v3429_v62, 1  ;;  %v3436_v37 = vrot.slane %v3435_v43, 1  ;;  %v3440_v17 = vrot.slane %v3439_v44, 2  ;;  %v3444_v50 = vrot.slane %v3211_v20, 4 }
 0x4c5   :  { %v3618_v48 = vsel %vm1720_vm6, %v3425_v13, %v3419_v4  ;;  %v3127_v21 = vpop.permute.xlu1 %3126  ;;  %v3157_v16 = vpop.permute.xlu0 %3156  ;;  %v3480_v18 = vrot.slane %v3217_v53, 4  ;;  %v3464_v57 = vrot.slane %v3463_v25, 2 }
 0x4c6   :  { %v3431_v38 = vadd.f32 %v3430_v3, %v3429_v62  ;;  %v3441_v29 = vadd.f32 %v3440_v17, %v3439_v44  ;;  %v3445_v15 = vadd.f32 %v3444_v50, %v3211_v20  ;;  %v3212_v36 = vmul.f32 %v3127_v21, %v6561_v7 }
 0x4c7   :  { %v3218_v32 = vmul.f32 %v3157_v16, %v6562_v14  ;;  %v3437_v30 = vadd.f32 %v3436_v37, %v3435_v43  ;;  %v3481_v39 = vadd.f32 %v3480_v18, %v3217_v53  ;;  %v3465_v31 = vadd.f32 %v3464_v57, %v3463_v25  ;;  %v6567_v37 = vld [vmem:[#allocation46_spill] sm:$0xff] }
 0x4c8   :  { %v3619_v41 = vsel %vm1722_vm7, %v3431_v38, %v3618_v48  ;;  %v3442_v61 = vrot.slane %v3441_v29, 1  ;;  %v3446_v22 = vrot.slane %v3445_v15, 2  ;;  %v3450_v59 = vrot.slane %v3212_v36, 4  ;;  %v6568_v57 = vld [vmem:[#allocation54_spill] sm:$0xff] }
 0x4c9   :  { %v3486_v60 = vrot.slane %v3218_v32, 4  ;;  %v3142_v5 = vpop.permute.xlu1 %3141  ;;  %v3162_v8 = vpop.permute.xlu0 %3161  ;;  %v3620_v6 = vsel %vm1724_vm8, %v3437_v30, %v3619_v41  ;;  %v3482_v35 = vrot.slane %v3481_v39, 2  ;;  %v3466_v13 = vrot.slane %v3465_v31, 1 }
 0x4ca   :  { %v3215_v26 = vmul.f32 %v6563_v63, %v3142_v5  ;;  %v3219_v33 = vmul.f32 %v6564_v1, %v3162_v8  ;;  %v3447_v46 = vadd.f32 %v3446_v22, %v3445_v15  ;;  %v3451_v0 = vadd.f32 %v3450_v59, %v3212_v36 }
 0x4cb   :  { %v3487_v24 = vadd.f32 %v3486_v60, %v3218_v32  ;;  %v3443_v56 = vadd.f32 %v3442_v61, %v3441_v29  ;;  %v3483_v53 = vadd.f32 %v3482_v35, %v3481_v39  ;;  %v3467_v7 = vadd.f32 %v3466_v13, %v3465_v31  ;;  %v6571_v35 = vld [vmem:[#allocation5_spill] sm:$0xff] }
 0x4cc   :  { %v3468_v42 = vrot.slane %v3215_v26, 4  ;;  %v3492_v51 = vrot.slane %v3219_v33, 4  ;;  %v3448_v58 = vrot.slane %v3447_v46, 1  ;;  %v3452_v28 = vrot.slane %v3451_v0, 2 }
 0x4cd   :  { %v3147_v19 = vpop.permute.xlu1 %3146  ;;  %v3167_v47 = vpop.permute.xlu0 %3166  ;;  %v3488_v55 = vrot.slane %v3487_v24, 2  ;;  %v3621_v4 = vsel %vm1726_vm9, %v3443_v56, %v3620_v6  ;;  %v3484_v41 = vrot.slane %v3483_v53, 1 }
 0x4ce   :  { %v3469_v10 = vadd.f32 %v3468_v42, %v3215_v26  ;;  %v3493_v52 = vadd.f32 %v3492_v51, %v3219_v33  ;;  %v3216_v2 = vmul.f32 %v3147_v19, %v6565_v11  ;;  %v3220_v54 = vmul.f32 %v3167_v47, %v6566_v9 }
 0x4cf   :  { %v3449_v40 = vadd.f32 %v3448_v58, %v3447_v46  ;;  %v3453_v23 = vadd.f32 %v3452_v28, %v3451_v0  ;;  %v3489_v48 = vadd.f32 %v3488_v55, %v3487_v24  ;;  %v3485_v33 = vadd.f32 %v3484_v41, %v3483_v53  ;;  %v6573_v55 = vld [vmem:[#allocation7_spill] sm:$0xff] }
 0x4d0   :  { %v3470_v45 = vrot.slane %v3469_v10, 2  ;;  %v3474_v34 = vrot.slane %v3216_v2, 4  ;;  %v3498_v27 = vrot.slane %v3220_v54, 4  ;;  %v3494_v43 = vrot.slane %v3493_v52, 2 }
 0x4d1   :  { %v3454_v62 = vrot.slane %v3453_v23, 1  ;;  %v3132_v44 = vpop.permute.xlu1 %3131  ;;  %v3622_v25 = vsel %vm1728_vm10, %v3449_v40, %v3621_v4  ;;  %v3490_v22 = vrot.slane %v3489_v48, 1  ;;  %v6570_v40 = vld [vmem:[#allocation2_spill] sm:$0xff] }
 0x4d2   :  { %v3471_v12 = vadd.f32 %v3470_v45, %v3469_v10  ;;  %v3475_v20 = vadd.f32 %v3474_v34, %v3216_v2  ;;  %v3499_v49 = vadd.f32 %v3498_v27, %v3220_v54  ;;  %v3213_v17 = vmul.f32 %v6567_v37, %v3132_v44  ;;  %v6569_v54 = vld [vmem:[#allocation3_spill] sm:$0xff]  ;;  %v6574_v45 = vld [vmem:[#allocation6_spill] sm:$0xff] }
 0x4d3   :  { %v3455_v3 = vadd.f32 %v3454_v62, %v3453_v23  ;;  %v3495_v38 = vadd.f32 %v3494_v43, %v3493_v52  ;;  %v3491_v0 = vadd.f32 %v3490_v22, %v3489_v48  ;;  %v6572_v23 = vld [vmem:[#allocation4_spill] sm:$0xff]  ;;  %v4705_v34 = vmov 0.0|0.0   ;;  %v4130_v62 = vld [vmem:[%s6350_s3] ss:$0 sm:$0xff] }
 0x4d4   :  { %v3472_v50 = vrot.slane %v3471_v12, 1  ;;  %v3476_v21 = vrot.slane %v3475_v20, 2  ;;  %v3500_v16 = vrot.slane %v3499_v49, 2  ;;  %v3456_v29 = vrot.slane %v3213_v17, 4  ;;  %4556 = vmatprep.subr.bf16.mxu1 %v4705_v34 }
 0x4d5   :  { %v3172_v15 = vpop.permute.xlu1 %3171  ;;  %v3623_v18 = vsel %vm1730_vm11, %v3455_v3, %v3622_v25  ;;  %v3496_v5 = vrot.slane %v3495_v38, 1  ;;  %v4707_v27 = vmov 0.0  }
 0x4d6   :  { %v3473_v36 = vadd.f32 %v3472_v50, %v3471_v12  ;;  %v3477_v14 = vadd.f32 %v3476_v21, %v3475_v20  ;;  %v3501_v32 = vadd.f32 %v3500_v16, %v3499_v49  ;;  %v3457_v30 = vadd.f32 %v3456_v29, %v3213_v17 }
 0x4d7   :  { %v3221_v61 = vmul.f32 %v6568_v57, %v3172_v15  ;;  %v3497_v42 = vadd.f32 %v3496_v5, %v3495_v38 }
 0x4d8   :  { %v3625_v59 = vsel %vm1720_vm6, %v3473_v36, %v3467_v7  ;;  %v3478_v60 = vrot.slane %v3477_v14, 1  ;;  %v3458_v8 = vrot.slane %v3457_v30, 2  ;;  %v3502_v1 = vrot.slane %v3501_v32, 1 }
 0x4d9   :  { %v3504_v63 = vrot.slane %v3221_v61, 4 }
 0x4da   :  { %v3479_v26 = vadd.f32 %v3478_v60, %v3477_v14  ;;  %v3459_v46 = vadd.f32 %v3458_v8, %v3457_v30  ;;  %v3503_v31 = vadd.f32 %v3502_v1, %v3501_v32 }
 0x4db   :  { %v3505_v39 = vadd.f32 %v3504_v63, %v3221_v61 }
 0x4dc   :  { %v3626_v24 = vsel %vm1722_vm7, %v3479_v26, %v3625_v59  ;;  %v3460_v51 = vrot.slane %v3459_v46, 1 }
 0x4dd   :  { %v3506_v6 = vrot.slane %v3505_v39, 2  ;;  %v3627_v56 = vsel %vm1724_vm8, %v3485_v33, %v3626_v24 }
 0x4de   :  { %v3628_v58 = vsel %vm1726_vm9, %v3491_v0, %v3627_v56  ;;  %v3461_v19 = vadd.f32 %v3460_v51, %v3459_v46 }
 0x4df   :  { %v3507_v28 = vadd.f32 %v3506_v6, %v3505_v39  ;;  %v3629_v47 = vsel %vm1728_vm10, %v3497_v42, %v3628_v58 }
 0x4e0   :  { %v3630_v10 = vsel %vm1730_vm11, %v3503_v31, %v3629_v47  ;;  %v3624_v11 = vsel %vm1732_vm12, %v3461_v19, %v3623_v18 }
 0x4e1   :  { %v3508_v52 = vrot.slane %v3507_v28, 1  ;;  %4402 = vmatprep.mubr.f32.mxu1 %v3624_v11 }
 0x4e3   :  { %v3509_v2 = vadd.f32 %v3508_v52, %v3507_v28 }
 0x4e5   :  { %v3631_v9 = vsel %vm1732_vm12, %v3509_v2, %v3630_v10 }
 0x4e6   :  { %4403 = vmatmul.mubr.f32.gmra.mrb[4].mxu1 %v3631_v9 }
 0x4e7   :  { %4437 = vmatprep.mubr.f32.mxu1 %v6569_v54 }
 0x4ea   :  { %4438 = vmatmul.mubr.f32.vlgmr.msra.gmra.mrb[0].mxu1 %v6570_v40 }
 0x4eb   :  { %4440 = vmatprep.mubr.f32.mxu1 %v6571_v35 }
 0x4ee   :  { %4441 = vmatmul.mubr.f32.gmra.mrb[2].mxu1 %v6572_v23 }
 0x4ef   :  { %4443 = vmatprep.mubr.f32.mxu1 %v6573_v55 }
 0x4f2   :  { %4444 = vmatmul.mubr.f32.gmra.mrb[4].mxu1 %v6574_v45 }
 0x4f3   :  { %4450 = vmatprep.mubr.msk.f32.mxu1 %vm4706_vm14, %v4707_v27 }
 0x5bd   :  { %v4439_v43 = vpop.f32.mrb[0].mxu1 }
 0x5be   :  { %v3836_v44 = vadd.f32 %v4439_v43, %v4130_v62  ;;  %v3799_v4 = vpop.f32.mrb[1].mxu1 }
 0x5bf   :  { %v3835_v13 = vadd.f32 %v4130_v62, %v3799_v4 }
 0x5c0   :  { %4686 = vtanh.f32 %v3836_v44 }
 0x5c1   :  { %4688 = vtanh.f32 %v3835_v13  ;;  %v4442_v12 = vpop.f32.mrb[2].mxu1 }
 0x5c2   :  { %v3809_v20 = vpop.f32.mrb[3].mxu1  ;;  %v3838_v49 = vadd.f32 %v4442_v12, %v4130_v62 }
 0x5c3   :  { %v3837_v29 = vadd.f32 %v4130_v62, %v3809_v20 }
 0x5c4   :  { %4690 = vtanh.f32 %v3838_v49 }
 0x5c5   :  { %v4445_v53 = vpop.f32.mrb[4].mxu1 }
 0x5c6   :  { %v3819_v3 = vpop.f32.mrb[5].mxu1  ;;  %v3840_v50 = vadd.f32 %v4445_v53, %v4130_v62 }
 0x5c7   :  { %v3839_v37 = vadd.f32 %v4130_v62, %v3819_v3 }
 0x5c9   :  { %4692 = vtanh.f32 %v3839_v37 }
 0x5ca   :  { %v4687_v17 = vpop.eup %4686  ;;  %4694 = vtanh.f32 %v3840_v50 }
 0x5cb   :  { %v4689_v25 = vpop.eup %4688  ;;  %4696 = vtanh.f32 %v3837_v29 }
 0x5cc   :  { %v4560_v48 = vpack.c.bf16 %v4687_v17, %v4689_v25 }
 0x5ce   :  { %v4691_v21 = vpop.eup %4690 }
 0x5d3   :  { %v4693_v16 = vpop.eup %4692 }
 0x5d4   :  { %v4557_v38 = vpack.c.bf16 %v4693_v16, %v4691_v21  ;;  %v4695_v15 = vpop.eup %4694 }
 0x5d5   :  { %v4697_v18 = vpop.eup %4696 }
 0x5d6   :  { %4558 = vmatpush3.bf16.xpose.msra.mxu1 %v4557_v38 }
 0x5d7   :  { %4559 = vmatprep.subr.bf16.mxu1 %v4705_v34 }
 0x5dd   :  { %4451 = vmatmul.mubr.f32.vlgmr.msra.gmra.mrb[6].mxu1 %v4695_v15 }
 0x5de   :  { %4561 = vmatpush3.bf16.xpose.msra.mxu1 %v4560_v48  ;;  %4457 = vmatprep.mubr.msk.f32.mxu1 %vm4706_vm14, %v4707_v27 }
 0x5e5   :  { %4458 = vmatmul.mubr.f32.vlgmr.msra.gmra.mrb[6].mxu1 %v4697_v18 }
 0x6b8   :  { %v3983_v7 = vpop.f32.mrb[6].mxu1 }
 0x6b9   :  { %v3988_v36 = vsel %vm3987_vm15, %v3983_v7, -inf  ;;  %v4459_v14 = vpop.f32.mrb[7].mxu1 }
 0x6ba   :  { %v3989_v32 = vrot.slane %v3988_v36, 4 }
 0x6bc   :  { %v3990_v41 = vmax.f32 %v3988_v36, %v3989_v32 }
 0x6be   :  { %v3991_v30 = vrot.slane %v3990_v41, 2 }
 0x6c0   :  { %v3992_v57 = vmax.f32 %v3990_v41, %v3991_v30 }
 0x6c2   :  { %v3993_v61 = vrot.slane %v3992_v57, 1 }
 0x6c4   :  { %v3994_v22 = vmax.f32 %v3992_v57, %v3993_v61 }
 0x6c6   :  { %v3995_v59 = vsub.f32 %v3983_v7, %v3994_v22 }
 0x6c8   :  { %v3996_v60 = vmul.f32 1.442695, %v3995_v59 }
 0x6ca   :  { %4698 = vpow2.f32 %v3996_v60 }
 0x6d4   :  { %v4699_v5 = vpop.eup %4698 }
 0x6d5   :  { %v3998_v8 = vsel %vm3987_vm15, %v4699_v5, 0.0 }
 0x6d6   :  { %v3999_v63 = vrot.slane %v3998_v8, 4 }
 0x6d8   :  { %v4000_v26 = vadd.f32 %v3999_v63, %v3998_v8 }
 0x6da   :  { %v4001_v1 = vrot.slane %v4000_v26, 2 }
 0x6dc   :  { %v4002_v33 = vadd.f32 %v4001_v1, %v4000_v26 }
 0x6de   :  { %v4003_v46 = vrot.slane %v4002_v33, 1 }
 0x6e0   :  { %v4004_v39 = vadd.f32 %v4003_v46, %v4002_v33 }
 0x6e2   :  { %4700 = vrcp.f32 %v4004_v39 }
 0x6ec   :  { %v4701_v0 = vpop.eup %4700 }
 0x6ed   :  { %v4006_v24 = vmul.f32 %v4701_v0, %v4699_v5 }
 0x6ef   :  { %v4007_v42 = vmul.f32 %v4006_v24, %v3983_v7 }
 0x6f1   :  { %v4008_v51 = vsel %vm3987_vm15, %v4007_v42, 0.0 }
 0x6f2   :  { %v4009_v6 = vrot.slane %v4008_v51, 4 }
 0x6f4   :  { %v4010_v56 = vadd.f32 %v4009_v6, %v4008_v51 }
 0x6f6   :  { %v4011_v31 = vrot.slane %v4010_v56, 2 }
 0x6f8   :  { %v4012_v58 = vadd.f32 %v4011_v31, %v4010_v56 }
 0x6fa   :  { %v4013_v28 = vrot.slane %v4012_v58, 1 }
 0x6fc   :  { %v4014_v19 = vadd.f32 %v4013_v28, %v4012_v58 }
 0x6fe   :  { %v4016_v47 = vsel %vm4015_vm0, %v4014_v19, 0.0 }
 0x6ff   :  { %4017 = vst [vmem:[%s6351_s4] sm:$0x1] %v4016_v47 }

</bundles_post_ra>
